<compile_context>
chip_gen: v5e
topology: v5e:2x2
jax: 0.10.0
libtpu: 0.0.40
codegen_flags: <defaults>
</compile_context>

<pallas_src>
import functools

import jax
import jax.numpy as jnp
from jax.experimental import pallas as pl
from jax.experimental.pallas import tpu as pltpu

EPS = 1e-5
PAD = 256   # pad M/K/N to 256-multiples: fills the 2x256x256 MXU on v6e/v7x;
            # v5e's 128x128 MXU is equally happy with 256-multiples.


# ----------------------------------------------------------------------------
# Pallas kernel: tiled  (patches @ W) -> f32 acc -> BN scale/bias
#                [+ residual] -> ReLU (whole tile or per-column masked)
# ----------------------------------------------------------------------------
def _fused_gemm_bn_kernel(x_ref, w_ref, scale_ref, bias_ref, *rest,
                          has_residual, has_relu_mask):
    rest = list(rest)
    mask_ref = rest.pop(0) if has_relu_mask else None
    res_ref = rest.pop(0) if has_residual else None
    o_ref, acc_ref = rest

    k = pl.program_id(2)
    prod = jnp.dot(x_ref[...], w_ref[...], preferred_element_type=jnp.float32)

    @pl.when(k == 0)
    def _init():                      # direct write: no zero-fill + RMW
        acc_ref[...] = prod

    @pl.when(k > 0)
    def _accum():
        acc_ref[...] += prod

    @pl.when(k == pl.num_programs(2) - 1)
    def _epilogue():
        out = acc_ref[...] * scale_ref[...] + bias_ref[...]
        if has_residual:
            out = out + res_ref[...].astype(jnp.float32)
        if has_relu_mask:
            # per-output-channel ReLU mask (1.0 -> ReLU, 0.0 -> linear)
            out = jnp.where(mask_ref[...] > 0.5, jnp.maximum(out, 0.0), out)
        else:
            out = jnp.maximum(out, 0.0)
        o_ref[...] = out.astype(o_ref.dtype)


def _round_up(x, m):
    return (x + m - 1) // m * m


def _pick_tile(dim, cap, step=PAD):
    # largest multiple of `step` that divides `dim` and is <= cap
    best = step
    t = step
    lim = min(dim, cap)
    while t <= lim:
        if dim % t == 0:
            best = t
        t += step
    return best


def fused_gemm_bn(patches, w_mat, scale, bias, *, relu_mask=None,
                  residual=None, residual_col_offset=0,
                  out_dtype=jnp.float32):
    """out = act((patches @ w_mat) * scale + bias [+ residual]).

    patches (M,K) bf16, w_mat (K,N) bf16, scale/bias (N,) f32.
    relu_mask (N,) f32 or None (None -> ReLU on every column).
    residual: (M, >= residual_col_offset+N) array; the tile for output column
      block j is read at column block (j + residual_col_offset//tn), which lets
      conv2 consume the shortcut half of the fused conv1+shortcut output
      in place, without an intermediate HBM copy.
    M, K, N must be multiples of PAD.
    """
    M, K = patches.shape
    N = w_mat.shape[1]
    tm = _pick_tile(M, 1024)
    tn = _pick_tile(N, 256)
    tk = _pick_tile(K, 1024)
    # v7x has 2 TensorCores: shrink tm (divisor-preserving halving) until the
    # parallel grid has at least 2 blocks when possible.
    while (M // tm) * (N // tn) < 2 and tm > PAD:
        tm //= 2
    grid = (M // tm, N // tn, K // tk)

    x_spec = pl.BlockSpec((tm, tk), lambda i, j, k: (i, k))
    w_spec = pl.BlockSpec((tk, tn), lambda i, j, k: (k, j))
    vec_spec = pl.BlockSpec((1, tn), lambda i, j, k: (0, j))
    out_spec = pl.BlockSpec((tm, tn), lambda i, j, k: (i, j))

    in_specs = [x_spec, w_spec, vec_spec, vec_spec]
    args = [patches, w_mat, scale.reshape(1, N), bias.reshape(1, N)]

    has_relu_mask = relu_mask is not None
    if has_relu_mask:
        in_specs.append(vec_spec)
        args.append(relu_mask.reshape(1, N))

    has_residual = residual is not None
    if has_residual:
        assert residual_col_offset % tn == 0
        off = residual_col_offset // tn
        in_specs.append(pl.BlockSpec((tm, tn),
                                     lambda i, j, k, _o=off: (i, j + _o)))
        args.append(residual)

    bytes_accessed = (M * K + K * N) * patches.dtype.itemsize
    bytes_accessed += M * N * jnp.dtype(out_dtype).itemsize
    if has_residual:
        bytes_accessed += M * N * residual.dtype.itemsize
    cost = pl.CostEstimate(flops=2 * M * N * K, transcendentals=0,
                           bytes_accessed=bytes_accessed)

    kernel = functools.partial(_fused_gemm_bn_kernel,
                               has_residual=has_residual,
                               has_relu_mask=has_relu_mask)
    return pl.pallas_call(
        kernel,
        out_shape=jax.ShapeDtypeStruct((M, N), out_dtype),
        grid_spec=pltpu.PrefetchScalarGridSpec(
            num_scalar_prefetch=0,
            grid=grid,
            in_specs=in_specs,
            out_specs=out_spec,
            scratch_shapes=[pltpu.VMEM((tm, tn), jnp.float32)],
        ),
        compiler_params=pltpu.CompilerParams(
            dimension_semantics=("parallel", "parallel", "arbitrary")),
        cost_estimate=cost,
    )(*args)


# ----------------------------------------------------------------------------
# Plain-JAX glue: im2col, weight reshaping, BN folding, padding
# ----------------------------------------------------------------------------
def im2col(x_nhwc, kh, kw, stride, pad):
    n, h, w, c = x_nhwc.shape
    xp = jnp.pad(x_nhwc, ((0, 0), (pad, pad), (pad, pad), (0, 0)))
    ho = (h + 2 * pad - kh) // stride + 1
    wo = (w + 2 * pad - kw) // stride + 1
    cols = []
    for i in range(kh):
        for j in range(kw):
            cols.append(xp[:, i:i + ho * stride:stride, j:j + wo * stride:stride, :])
    patches = jnp.stack(cols, axis=-2)                    # (n, ho, wo, kh*kw, c)
    return patches.reshape(n * ho * wo, kh * kw * c), ho, wo


def conv_w_to_mat(w_oihw):
    # (Cout, Cin, kh, kw) -> (kh*kw*Cin, Cout), matching im2col's (i, j, c) order
    cout = w_oihw.shape[0]
    return jnp.transpose(w_oihw, (2, 3, 1, 0)).reshape(-1, cout)


def fold_bn(conv_bias, gamma, beta, mean, var):
    scale = gamma / jnp.sqrt(var + EPS)
    bias = (conv_bias - mean) * scale + beta
    return scale, bias


def _pad_to(a, multiple, axes):
    widths = [(0, 0)] * a.ndim
    for ax in axes:
        widths[ax] = (0, (-a.shape[ax]) % multiple)
    if all(wd == (0, 0) for wd in widths):
        return a
    return jnp.pad(a, widths)


def _embed(vec, n_total, offset=0):
    out = jnp.zeros((n_total,), jnp.float32)
    return out.at[offset:offset + vec.shape[0]].set(vec)


# ----------------------------------------------------------------------------
# ResidualBlock forward (Pallas-backed)
# ----------------------------------------------------------------------------
def _residual_block_forward(x_nchw, p, *, downsample):
    stride = 2 if downsample else 1
    x = jnp.transpose(x_nchw, (0, 2, 3, 1)).astype(jnp.float32)   # NHWC
    n, h, w, cin = x.shape
    cout = p["conv1_w"].shape[0]
    n_pad = _round_up(cout, PAD)

    # ---- conv1 patches (shared with the fused 1x1 projection shortcut) ------
    pat1, ho, wo = im2col(x, 3, 3, stride, 1)
    m = n * ho * wo
    k1 = 9 * cin
    pat1_p = _pad_to(pat1, PAD, (0, 1)).astype(jnp.bfloat16)
    m_pad, k1_pad = pat1_p.shape

    w1 = conv_w_to_mat(p["conv1_w"])                              # (k1, cout)
    s1, b1 = fold_bn(p["conv1_b"], p["bn1_g"], p["bn1_b"], p["bn1_m"], p["bn1_v"])

    use_projection = downsample or cin != cout

    if use_projection:
        # Fuse conv1 + 1x1 projection shortcut: the 1x1 conv's input at output
        # position (y, x) is exactly the CENTER tap (i=j=1) of the 3x3 patch,
        # i.e. columns [4*cin, 5*cin) of pat1.  Concatenate along N; ReLU is
        # applied to the conv1 half only, via a per-column mask.
        wsc = conv_w_to_mat(p["sc_w"])                            # (cin, cout)
        ssc, bsc = fold_bn(p["sc_b"], p["scbn_g"], p["scbn_b"],
                           p["scbn_m"], p["scbn_v"])
        w_comb = jnp.zeros((k1_pad, 2 * n_pad), jnp.float32)
        w_comb = w_comb.at[:k1, :cout].set(w1)
        w_comb = w_comb.at[4 * cin:5 * cin, n_pad:n_pad + cout].set(wsc)
        scale = _embed(s1, 2 * n_pad, 0) + _embed(ssc, 2 * n_pad, n_pad)
        bias = _embed(b1, 2 * n_pad, 0) + _embed(bsc, 2 * n_pad, n_pad)
        mask = jnp.zeros((2 * n_pad,), jnp.float32).at[:n_pad].set(1.0)
        fused = fused_gemm_bn(pat1_p, w_comb.astype(jnp.bfloat16),
                              scale, bias, relu_mask=mask,
                              out_dtype=jnp.bfloat16)      # (m_pad, 2*n_pad)
        out1 = fused[:m, :cout]            # relu(bn1(conv1(x)))  (single read)
        residual = fused                   # shortcut half consumed in-kernel ..
        residual_off = n_pad               # .. at column-block offset n_pad/tn
    else:
        w1_p = jnp.zeros((k1_pad, n_pad), jnp.float32).at[:k1, :cout].set(w1)
        out1_p = fused_gemm_bn(pat1_p, w1_p.astype(jnp.bfloat16),
                               _embed(s1, n_pad), _embed(b1, n_pad),
                               out_dtype=jnp.bfloat16)
        out1 = out1_p[:m, :cout]
        # identity = x itself (cin == cout, stride 1): pad, no zeros+scatter
        residual = _pad_to(x.reshape(m, cin).astype(jnp.bfloat16), PAD, (0, 1))
        residual_off = 0

    # ---- conv2 + bn2 + residual add + ReLU (single fused call) --------------
    pat2, _, _ = im2col(out1.reshape(n, ho, wo, cout), 3, 3, 1, 1)  # bf16
    pat2_p = _pad_to(pat2, PAD, (0, 1))
    k2 = 9 * cout
    k2_pad = pat2_p.shape[1]

    w2 = conv_w_to_mat(p["conv2_w"])
    s2, b2 = fold_bn(p["conv2_b"], p["bn2_g"], p["bn2_b"], p["bn2_m"], p["bn2_v"])
    w2_p = jnp.zeros((k2_pad, n_pad), jnp.float32).at[:k2, :cout].set(w2)

    out2_p = fused_gemm_bn(pat2_p, w2_p.astype(jnp.bfloat16),
                           _embed(s2, n_pad), _embed(b2, n_pad),
                           residual=residual, residual_col_offset=residual_off,
                           out_dtype=jnp.float32)

    out2 = out2_p[:m, :cout].reshape(n, ho, wo, cout)
    return jnp.transpose(out2, (0, 3, 1, 2))                      # back to NCHW


residual_block_forward = jax.jit(_residual_block_forward,
                                 static_argnames=("downsample",))


# ----------------------------------------------------------------------------
# Pure-JAX reference (for correctness check only)
# ----------------------------------------------------------------------------
def _ref_conv(x, w, b, stride, pad):
    out = jax.lax.conv_general_dilated(
        x, w, (stride, stride), [(pad, pad), (pad, pad)],
        dimension_numbers=("NCHW", "OIHW", "NCHW"))
    return out + b[None, :, None, None]


def _ref_bn(x, g, bt, m, v):
    return g[None, :, None, None] * (x - m[None, :, None, None]) / \
        jnp.sqrt(v[None, :, None, None] + EPS) + bt[None, :, None, None]


def reference_forward(x, p, downsample):
    stride = 2 if downsample else 1
    cin, cout = x.shape[1], p["conv1_w"].shape[0]
    if downsample or cin != cout:
        identity = _ref_bn(_ref_conv(x, p["sc_w"], p["sc_b"], stride, 0),
                           p["scbn_g"], p["scbn_b"], p["scbn_m"], p["scbn_v"])
    else:
        identity = x
    out = jax.nn.relu(_ref_bn(_ref_conv(x, p["conv1_w"], p["conv1_b"], stride, 1),
                              p["bn1_g"], p["bn1_b"], p["bn1_m"], p["bn1_v"]))
    out = _ref_bn(_ref_conv(out, p["conv2_w"], p["conv2_b"], 1, 1),
                  p["bn2_g"], p["bn2_b"], p["bn2_m"], p["bn2_v"])
    return jax.nn.relu(out + identity)


# ----------------------------------------------------------------------------
def make_params(key, cin, cout):
    ks = jax.random.split(key, 14)
    f = lambda k, shape, s=0.1: (s * jax.random.normal(k, shape)).astype(jnp.float32)
    return {
        "conv1_w": f(ks[0], (cout, cin, 3, 3)),
        "conv1_b": f(ks[1], (cout,)),
        "bn1_g": 1.0 + f(ks[2], (cout,)), "bn1_b": f(ks[3], (cout,)),
        "bn1_m": f(ks[4], (cout,)), "bn1_v": 1.0 + 0.1 * jnp.abs(f(ks[5], (cout,))),
        "conv2_w": f(ks[6], (cout, cout, 3, 3)),
        "conv2_b": f(ks[7], (cout,)),
        "bn2_g": 1.0 + f(ks[8], (cout,)), "bn2_b": f(ks[9], (cout,)),
        "bn2_m": f(ks[10], (cout,)), "bn2_v": 1.0 + 0.1 * jnp.abs(f(ks[11], (cout,))),
        "sc_w": f(ks[12], (cout, cin, 1, 1)),
        "sc_b": f(ks[13], (cout,)),
        "scbn_g": jnp.ones((cout,), jnp.float32), "scbn_b": jnp.zeros((cout,), jnp.float32),
        "scbn_m": 0.05 * jnp.ones((cout,), jnp.float32),
        "scbn_v": 0.9 * jnp.ones((cout,), jnp.float32),
    }


if __name__ == "__main__":
    key = jax.random.PRNGKey(0)
    k_x1, k_p1, k_x2, k_p2 = jax.random.split(key, 4)

    # --- case 1: downsample=True (stride 2 + fused 1x1 projection shortcut) --
    batch, cin, cout, hw = 2, 4, 8, 16
    x1 = jax.random.normal(k_x1, (batch, cin, hw, hw), dtype=jnp.float32)
    p1 = make_params(k_p1, cin, cout)
    out1 = jax.block_until_ready(residual_block_forward(x1, p1, downsample=True))
    ref1 = jax.block_until_ready(reference_forward(x1, p1, True))
    assert out1.shape == ref1.shape == (batch, cout, hw // 2, hw // 2), out1.shape
    # bf16 MXU inputs + bf16 intermediate (f32 accumulation) -> looser tolerance
    assert jnp.allclose(out1, ref1, rtol=3e-2, atol=3e-2), \
        float(jnp.max(jnp.abs(out1 - ref1)))

    # --- case 2: downsample=False, cin == cout (identity shortcut path) ------
    cin2 = cout2 = 8
    x2 = jax.random.normal(k_x2, (batch, cin2, hw, hw), dtype=jnp.float32)
    p2 = make_params(k_p2, cin2, cout2)
    out2 = jax.block_until_ready(residual_block_forward(x2, p2, downsample=False))
    ref2 = jax.block_until_ready(reference_forward(x2, p2, False))
    assert out2.shape == ref2.shape == (batch, cout2, hw, hw), out2.shape
    assert jnp.allclose(out2, ref2, rtol=3e-2, atol=3e-2), \
        float(jnp.max(jnp.abs(out2 - ref2)))

    print("KERNEL_OK")
</pallas_src>

<mosaic_0001>
module attributes {stable_mosaic.version = 11 : i64} {
  func.func @_fused_gemm_bn_kernel(%arg0: i32, %arg1: i32, %arg2: i32, %arg3: memref<256x256xbf16, #tpu.memory_space<vmem>>, %arg4: memref<256x256xbf16, #tpu.memory_space<vmem>>, %arg5: memref<1x256xf32, #tpu.memory_space<vmem>>, %arg6: memref<1x256xf32, #tpu.memory_space<vmem>>, %arg7: memref<1x256xf32, #tpu.memory_space<vmem>>, %arg8: memref<256x256xbf16, #tpu.memory_space<vmem>>, %arg9: memref<256x256xf32, #tpu.memory_space<vmem>>) attributes {dimension_semantics = [#tpu.dimension_semantics<parallel>, #tpu.dimension_semantics<parallel>, #tpu.dimension_semantics<arbitrary>], iteration_bounds = array<i64: 1, 2, 1>, scalar_prefetch = 0 : i64, scratch_operands = 1 : i64, tpu.core_type = #tpu.core_type<tc>, window_params = [{transform_indices = @transform_0, window_bounds = array<i64: 256, 256>}, {transform_indices = @transform_1, window_bounds = array<i64: 256, 256>}, {transform_indices = @transform_2, window_bounds = array<i64: 1, 256>}, {transform_indices = @transform_3, window_bounds = array<i64: 1, 256>}, {transform_indices = @transform_4, window_bounds = array<i64: 1, 256>}, {transform_indices = @transform_5, window_bounds = array<i64: 256, 256>}]} {
    %c0 = arith.constant 0 : index
    %c0_0 = arith.constant 0 : index
    %0 = vector.load %arg3[%c0, %c0_0] : memref<256x256xbf16, #tpu.memory_space<vmem>>, vector<256x256xbf16>
    %c0_1 = arith.constant 0 : index
    %c0_2 = arith.constant 0 : index
    %1 = vector.load %arg4[%c0_1, %c0_2] : memref<256x256xbf16, #tpu.memory_space<vmem>>, vector<256x256xbf16>
    %cst = arith.constant dense<0.000000e+00> : vector<256x256xf32>
    %2 = tpu.matmul %0, %1, %cst {dimension_numbers = #tpu.dot_dimension_numbers<[1], [0], [0], [1], [0, 0, 1, 1], [], []>} : vector<256x256xbf16>, vector<256x256xbf16>, vector<256x256xf32> -> vector<256x256xf32>
    %c0_i32 = arith.constant 0 : i32
    %3 = arith.cmpi eq, %arg2, %c0_i32 : i32
    %4 = arith.extui %3 : i1 to i32
    %c0_i32_3 = arith.constant 0 : i32
    %5 = arith.cmpi ne, %4, %c0_i32_3 : i32
    scf.if %5 {
      %c0_8 = arith.constant 0 : index
      %c0_9 = arith.constant 0 : index
      %12 = vector.load %arg9[%c0_8, %c0_9] : memref<256x256xf32, #tpu.memory_space<vmem>>, vector<256x256xf32>
      tpu.vector_store %arg9[%c0_8, %c0_9], %2 {strides = array<i32>} : memref<256x256xf32, #tpu.memory_space<vmem>>, vector<256x256xf32>,
    } else {
    }
    %c0_i32_4 = arith.constant 0 : i32
    %6 = arith.cmpi sgt, %arg2, %c0_i32_4 : i32
    %7 = arith.extui %6 : i1 to i32
    %c0_i32_5 = arith.constant 0 : i32
    %8 = arith.cmpi ne, %7, %c0_i32_5 : i32
    scf.if %8 {
      %c0_8 = arith.constant 0 : index
      %c0_9 = arith.constant 0 : index
      %12 = vector.load %arg9[%c0_8, %c0_9] : memref<256x256xf32, #tpu.memory_space<vmem>>, vector<256x256xf32>
      %13 = arith.addf %12, %2 : vector<256x256xf32>
      %c0_10 = arith.constant 0 : index
      %c0_11 = arith.constant 0 : index
      %14 = vector.load %arg9[%c0_10, %c0_11] : memref<256x256xf32, #tpu.memory_space<vmem>>, vector<256x256xf32>
      tpu.vector_store %arg9[%c0_10, %c0_11], %13 {strides = array<i32>} : memref<256x256xf32, #tpu.memory_space<vmem>>, vector<256x256xf32>,
    } else {
    }
    %c0_i32_6 = arith.constant 0 : i32
    %9 = arith.cmpi eq, %arg2, %c0_i32_6 : i32
    %10 = arith.extui %9 : i1 to i32
    %c0_i32_7 = arith.constant 0 : i32
    %11 = arith.cmpi ne, %10, %c0_i32_7 : i32
    scf.if %11 {
      %c0_8 = arith.constant 0 : index
      %c0_9 = arith.constant 0 : index
      %12 = vector.load %arg9[%c0_8, %c0_9] : memref<256x256xf32, #tpu.memory_space<vmem>>, vector<256x256xf32>
      %c0_10 = arith.constant 0 : index
      %c0_11 = arith.constant 0 : index
      %13 = vector.load %arg5[%c0_10, %c0_11] : memref<1x256xf32, #tpu.memory_space<vmem>>, vector<1x256xf32>
      %14 = vector.broadcast %13 : vector<1x256xf32> to vector<256x256xf32>
      %15 = arith.mulf %12, %14 : vector<256x256xf32>
      %c0_12 = arith.constant 0 : index
      %c0_13 = arith.constant 0 : index
      %16 = vector.load %arg6[%c0_12, %c0_13] : memref<1x256xf32, #tpu.memory_space<vmem>>, vector<1x256xf32>
      %17 = vector.broadcast %16 : vector<1x256xf32> to vector<256x256xf32>
      %18 = arith.addf %15, %17 : vector<256x256xf32>
      %c0_14 = arith.constant 0 : index
      %c0_15 = arith.constant 0 : index
      %19 = vector.load %arg7[%c0_14, %c0_15] : memref<1x256xf32, #tpu.memory_space<vmem>>, vector<1x256xf32>
      %cst_16 = arith.constant 5.000000e-01 : f32
      %20 = vector.broadcast %cst_16 : f32 to vector<1x256xf32>
      %21 = arith.cmpf ogt, %19, %20 : vector<1x256xf32>
      %cst_17 = arith.constant 0.000000e+00 : f32
      %22 = vector.broadcast %cst_17 : f32 to vector<256x256xf32>
      %23 = arith.maximumf %18, %22 : vector<256x256xf32>
      %24 = vector.shape_cast %21 : vector<1x256xi1> to vector<1x256xi1>
      %25 = vector.broadcast %24 : vector<1x256xi1> to vector<256x256xi1>
      %26 = arith.select %25, %23, %18 : vector<256x256xi1>, vector<256x256xf32>
      %27 = arith.truncf %26 : vector<256x256xf32> to vector<256x256xbf16>
      %c0_18 = arith.constant 0 : index
      %c0_19 = arith.constant 0 : index
      %28 = vector.load %arg8[%c0_18, %c0_19] : memref<256x256xbf16, #tpu.memory_space<vmem>>, vector<256x256xbf16>
      tpu.vector_store %arg8[%c0_18, %c0_19], %27 {strides = array<i32>} : memref<256x256xbf16, #tpu.memory_space<vmem>>, vector<256x256xbf16>,
    } else {
    }
    return
  }
  func.func @transform_0(%arg0: i32, %arg1: i32, %arg2: i32) -> (i32, i32) {
    %c0_i32 = arith.constant 0 : i32
    return %arg0, %arg2 : i32, i32
  }
  func.func @transform_1(%arg0: i32, %arg1: i32, %arg2: i32) -> (i32, i32) {
    %c0_i32 = arith.constant 0 : i32
    return %arg2, %arg1 : i32, i32
  }
  func.func @transform_2(%arg0: i32, %arg1: i32, %arg2: i32) -> (i32, i32) {
    %c0_i32 = arith.constant 0 : i32
    %c0_i32_0 = arith.constant 0 : i32
    return %c0_i32, %arg1 : i32, i32
  }
  func.func @transform_3(%arg0: i32, %arg1: i32, %arg2: i32) -> (i32, i32) {
    %c0_i32 = arith.constant 0 : i32
    %c0_i32_0 = arith.constant 0 : i32
    return %c0_i32, %arg1 : i32, i32
  }
  func.func @transform_4(%arg0: i32, %arg1: i32, %arg2: i32) -> (i32, i32) {
    %c0_i32 = arith.constant 0 : i32
    %c0_i32_0 = arith.constant 0 : i32
    return %c0_i32, %arg1 : i32, i32
  }
  func.func @transform_5(%arg0: i32, %arg1: i32, %arg2: i32) -> (i32, i32) {
    %c0_i32 = arith.constant 0 : i32
    return %arg0, %arg1 : i32, i32
  }
}

module attributes {stable_mosaic.version = 11 : i64} {
  func.func @_fused_gemm_bn_kernel(%arg0: i32, %arg1: i32, %arg2: i32, %arg3: memref<256x256xbf16, #tpu.memory_space<vmem>>, %arg4: memref<256x256xbf16, #tpu.memory_space<vmem>>, %arg5: memref<1x256xf32, #tpu.memory_space<vmem>>, %arg6: memref<1x256xf32, #tpu.memory_space<vmem>>, %arg7: memref<256x256xbf16, #tpu.memory_space<vmem>>, %arg8: memref<256x256xf32, #tpu.memory_space<vmem>>, %arg9: memref<256x256xf32, #tpu.memory_space<vmem>>) attributes {dimension_semantics = [#tpu.dimension_semantics<parallel>, #tpu.dimension_semantics<parallel>, #tpu.dimension_semantics<arbitrary>], iteration_bounds = array<i64: 1, 1, 1>, scalar_prefetch = 0 : i64, scratch_operands = 1 : i64, tpu.core_type = #tpu.core_type<tc>, window_params = [{transform_indices = @transform_0, window_bounds = array<i64: 256, 256>}, {transform_indices = @transform_1, window_bounds = array<i64: 256, 256>}, {transform_indices = @transform_2, window_bounds = array<i64: 1, 256>}, {transform_indices = @transform_3, window_bounds = array<i64: 1, 256>}, {transform_indices = @transform_4, window_bounds = array<i64: 256, 256>}, {transform_indices = @transform_5, window_bounds = array<i64: 256, 256>}]} {
    %c0 = arith.constant 0 : index
    %c0_0 = arith.constant 0 : index
    %0 = vector.load %arg3[%c0, %c0_0] : memref<256x256xbf16, #tpu.memory_space<vmem>>, vector<256x256xbf16>
    %c0_1 = arith.constant 0 : index
    %c0_2 = arith.constant 0 : index
    %1 = vector.load %arg4[%c0_1, %c0_2] : memref<256x256xbf16, #tpu.memory_space<vmem>>, vector<256x256xbf16>
    %cst = arith.constant dense<0.000000e+00> : vector<256x256xf32>
    %2 = tpu.matmul %0, %1, %cst {dimension_numbers = #tpu.dot_dimension_numbers<[1], [0], [0], [1], [0, 0, 1, 1], [], []>} : vector<256x256xbf16>, vector<256x256xbf16>, vector<256x256xf32> -> vector<256x256xf32>
    %c0_i32 = arith.constant 0 : i32
    %3 = arith.cmpi eq, %arg2, %c0_i32 : i32
    %4 = arith.extui %3 : i1 to i32
    %c0_i32_3 = arith.constant 0 : i32
    %5 = arith.cmpi ne, %4, %c0_i32_3 : i32
    scf.if %5 {
      %c0_8 = arith.constant 0 : index
      %c0_9 = arith.constant 0 : index
      %12 = vector.load %arg9[%c0_8, %c0_9] : memref<256x256xf32, #tpu.memory_space<vmem>>, vector<256x256xf32>
      tpu.vector_store %arg9[%c0_8, %c0_9], %2 {strides = array<i32>} : memref<256x256xf32, #tpu.memory_space<vmem>>, vector<256x256xf32>,
    } else {
    }
    %c0_i32_4 = arith.constant 0 : i32
    %6 = arith.cmpi sgt, %arg2, %c0_i32_4 : i32
    %7 = arith.extui %6 : i1 to i32
    %c0_i32_5 = arith.constant 0 : i32
    %8 = arith.cmpi ne, %7, %c0_i32_5 : i32
    scf.if %8 {
      %c0_8 = arith.constant 0 : index
      %c0_9 = arith.constant 0 : index
      %12 = vector.load %arg9[%c0_8, %c0_9] : memref<256x256xf32, #tpu.memory_space<vmem>>, vector<256x256xf32>
      %13 = arith.addf %12, %2 : vector<256x256xf32>
      %c0_10 = arith.constant 0 : index
      %c0_11 = arith.constant 0 : index
      %14 = vector.load %arg9[%c0_10, %c0_11] : memref<256x256xf32, #tpu.memory_space<vmem>>, vector<256x256xf32>
      tpu.vector_store %arg9[%c0_10, %c0_11], %13 {strides = array<i32>} : memref<256x256xf32, #tpu.memory_space<vmem>>, vector<256x256xf32>,
    } else {
    }
    %c0_i32_6 = arith.constant 0 : i32
    %9 = arith.cmpi eq, %arg2, %c0_i32_6 : i32
    %10 = arith.extui %9 : i1 to i32
    %c0_i32_7 = arith.constant 0 : i32
    %11 = arith.cmpi ne, %10, %c0_i32_7 : i32
    scf.if %11 {
      %c0_8 = arith.constant 0 : index
      %c0_9 = arith.constant 0 : index
      %12 = vector.load %arg9[%c0_8, %c0_9] : memref<256x256xf32, #tpu.memory_space<vmem>>, vector<256x256xf32>
      %c0_10 = arith.constant 0 : index
      %c0_11 = arith.constant 0 : index
      %13 = vector.load %arg5[%c0_10, %c0_11] : memref<1x256xf32, #tpu.memory_space<vmem>>, vector<1x256xf32>
      %14 = vector.broadcast %13 : vector<1x256xf32> to vector<256x256xf32>
      %15 = arith.mulf %12, %14 : vector<256x256xf32>
      %c0_12 = arith.constant 0 : index
      %c0_13 = arith.constant 0 : index
      %16 = vector.load %arg6[%c0_12, %c0_13] : memref<1x256xf32, #tpu.memory_space<vmem>>, vector<1x256xf32>
      %17 = vector.broadcast %16 : vector<1x256xf32> to vector<256x256xf32>
      %18 = arith.addf %15, %17 : vector<256x256xf32>
      %c0_14 = arith.constant 0 : index
      %c0_15 = arith.constant 0 : index
      %19 = vector.load %arg7[%c0_14, %c0_15] : memref<256x256xbf16, #tpu.memory_space<vmem>>, vector<256x256xbf16>
      %20 = arith.extf %19 : vector<256x256xbf16> to vector<256x256xf32>
      %21 = arith.addf %18, %20 : vector<256x256xf32>
      %cst_16 = arith.constant 0.000000e+00 : f32
      %22 = vector.broadcast %cst_16 : f32 to vector<256x256xf32>
      %23 = arith.maximumf %21, %22 : vector<256x256xf32>
      %c0_17 = arith.constant 0 : index
      %c0_18 = arith.constant 0 : index
      %24 = vector.load %arg8[%c0_17, %c0_18] : memref<256x256xf32, #tpu.memory_space<vmem>>, vector<256x256xf32>
      tpu.vector_store %arg8[%c0_17, %c0_18], %23 {strides = array<i32>} : memref<256x256xf32, #tpu.memory_space<vmem>>, vector<256x256xf32>,
    } else {
    }
    return
  }
  func.func @transform_0(%arg0: i32, %arg1: i32, %arg2: i32) -> (i32, i32) {
    %c0_i32 = arith.constant 0 : i32
    return %arg0, %arg2 : i32, i32
  }
  func.func @transform_1(%arg0: i32, %arg1: i32, %arg2: i32) -> (i32, i32) {
    %c0_i32 = arith.constant 0 : i32
    return %arg2, %arg1 : i32, i32
  }
  func.func @transform_2(%arg0: i32, %arg1: i32, %arg2: i32) -> (i32, i32) {
    %c0_i32 = arith.constant 0 : i32
    %c0_i32_0 = arith.constant 0 : i32
    return %c0_i32, %arg1 : i32, i32
  }
  func.func @transform_3(%arg0: i32, %arg1: i32, %arg2: i32) -> (i32, i32) {
    %c0_i32 = arith.constant 0 : i32
    %c0_i32_0 = arith.constant 0 : i32
    return %c0_i32, %arg1 : i32, i32
  }
  func.func @transform_4(%arg0: i32, %arg1: i32, %arg2: i32) -> (i32, i32) {
    %c1_i32 = arith.constant 1 : i32
    %0 = arith.addi %arg1, %c1_i32 : i32
    %c0_i32 = arith.constant 0 : i32
    return %arg0, %0 : i32, i32
  }
  func.func @transform_5(%arg0: i32, %arg1: i32, %arg2: i32) -> (i32, i32) {
    %c0_i32 = arith.constant 0 : i32
    return %arg0, %arg1 : i32, i32
  }
}

</mosaic_0001>

<bundles_post_ra>
// kernel: _residual_block_forward.2
= control target key start
LH: loop header
LB: loop body
LE: loop exit
PB: predicated region body
PF: predicated region fallthrough
CT: control target
= control target key end

     0   :  { %s2662_s18 = smov 0   ;;  %s2664_s19 = smov 0   ;;  %s3446_s0 = inlined_call_operand.vmem [shape: bf16[256,256], index: 0, kind: input, shape index: {}]   ;;  %s3447_s1 = inlined_call_operand.vmem [shape: bf16[256,512], index: 1, kind: input, shape index: {}]   ;;  %s3448_s2 = inlined_call_operand.vmem [shape: f32[1,512], index: 2, kind: input, shape index: {}]   ;;  %s3449_s3 = inlined_call_operand.vmem [shape: f32[1,512], index: 3, kind: input, shape index: {}]   ;;  %s3450_s4 = inlined_call_operand.vmem [shape: f32[1,512], index: 4, kind: input, shape index: {}]   ;;  %s3451_s5 = inlined_call_operand.vmem [shape: bf16[256,512], index: 5, kind: output, shape index: {}]  }
   0x1   :  { %s2666_s20 = smov 0   ;;  %s2668_s21 = smov 0  }
   0x2   :  { %s2670_s22 = smov 0  }
   0x3 LB: > { %s30_s23 = sadd.s32 1, %s2625_s21  ;;  %s2209_s24 = sadd.s32 4294967295, %s2629_s22   ;;  %s2629_s22 = sphi %s2670_s22, %s15_s22   ;;  %s2625_s21 = sphi %s2668_s21, %s3460_s21   ;;  %s2621_s20 = sphi %s2666_s20, %s3459_s20   ;;  %s2617_s19 = sphi %s2664_s19, %s3458_s19   ;;  %s2613_s18 = sphi %s2662_s18, %s3457_s18  }
   0x4   : > { %p32_p0 = scmp.ge.s32.totalorder %s30_s23, 2  ;;  %p78_p1 = scmp.ne.s32.totalorder %s2617_s19, %s2613_s18 }
   0x5   : > { %p79_p2 = scmp.eq.s32.totalorder %s2629_s22, 0  ;;  %p188_p4 = scmp.eq.s32.totalorder %s2209_s24, 1 }
   0x6   : > { %s3462_s23 = smov (%p32_p0, %s30_s23), 0  ;;  %s71_s26 = sadd.s32 1, %s2617_s19 }
   0x7   : > { %p80_p3 = por %p79_p2, %p78_p1  ;;  %s67_s25 = ssub.s32 %s2625_s21, %s3462_s23 }
   0x8   : > { %p69_p5 = scmp.eq.s32.totalorder %s67_s25, 0  ;;  %p2697_p6 = por %p188_p4, %p78_p1 }
   0x9   : > { %p2213_p7 = scmp.ge.s32.totalorder %s2629_s22, 2 }
   0xa   : > { %s2702_s28 = scalar_select %p69_p5, %s2617_s19, %s71_s26  }
   0xb   : > { %225 = sbr.rel (%p2213_p7) target bundleno = 52 (0x34), region = 20 }
  0x10   : > { %228 = sbr.rel (!%p80_p3) target bundleno = 52 (0x34), region = 24  ;;  %s230_s29 = sand.u32 (%p80_p3), 1, %s2617_s19  }
  0x11   : > { %s2484_s30 = sshll.u32 (%p80_p3), %s2625_s21, 3  ;;  %s2214_s6 = sshll.u32 (%p80_p3), %s230_s29, 8 }
  0x12   : > { %s2710_s9 = scalar_lea.vmem (%p80_p3), %s3447_s1, %s2484_s30  ;;  %s2715_s10 = scalar_lea.vmem (%p80_p3), [#allocation3], %s2214_s6 }
  0x13   : > { %v329_v0 = vld [vmem:[%s2710_s9] sm:$0xff] (%p80_p3)  ;;  %v331_v1 = vld [vmem:[%s2710_s9 + $0x10] sm:$0xff] (%p80_p3) }
  0x14   : > { %v333_v2 = vld [vmem:[%s2710_s9 + $0x20] sm:$0xff] (%p80_p3)  ;;  %330 = vst [vmem:[%s2715_s10] sm:$0xff] (%p80_p3), %v329_v0  ;;  %v335_v3 = vld [vmem:[%s2710_s9 + $0x30] sm:$0xff] (%p80_p3) }
  0x15   : > { %332 = vst [vmem:[%s2715_s10 + $0x8] sm:$0xff] %v331_v1  ;;  %v337_v4 = vld [vmem:[%s2710_s9 + $0x40] sm:$0xff]  ;;  %v339_v5 = vld [vmem:[%s2710_s9 + $0x50] sm:$0xff] }
  0x16   : > { %334 = vst [vmem:[%s2715_s10 + $0x10] sm:$0xff] %v333_v2  ;;  %v341_v6 = vld [vmem:[%s2710_s9 + $0x60] sm:$0xff]  ;;  %v343_v7 = vld [vmem:[%s2710_s9 + $0x70] sm:$0xff] }
  0x17   : > { %336 = vst [vmem:[%s2715_s10 + $0x18] sm:$0xff] %v335_v3  ;;  %v345_v8 = vld [vmem:[%s2710_s9 + $0x80] sm:$0xff]  ;;  %v347_v9 = vld [vmem:[%s2710_s9 + $0x90] sm:$0xff] }
  0x18   : > { %338 = vst [vmem:[%s2715_s10 + $0x20] sm:$0xff] %v337_v4  ;;  %v349_v10 = vld [vmem:[%s2710_s9 + $0xa0] sm:$0xff]  ;;  %v351_v11 = vld [vmem:[%s2710_s9 + $0xb0] sm:$0xff] }
  0x19   : > { %340 = vst [vmem:[%s2715_s10 + $0x28] sm:$0xff] %v339_v5  ;;  %v353_v12 = vld [vmem:[%s2710_s9 + $0xc0] sm:$0xff]  ;;  %v355_v13 = vld [vmem:[%s2710_s9 + $0xd0] sm:$0xff] }
  0x1a   : > { %342 = vst [vmem:[%s2715_s10 + $0x30] sm:$0xff] %v341_v6  ;;  %v357_v14 = vld [vmem:[%s2710_s9 + $0xe0] sm:$0xff]  ;;  %v359_v15 = vld [vmem:[%s2710_s9 + $0xf0] sm:$0xff] }
  0x1b   : > { %344 = vst [vmem:[%s2715_s10 + $0x38] sm:$0xff] %v343_v7  ;;  %v361_v16 = vld [vmem:[%s2710_s9 + $0x100] sm:$0xff]  ;;  %v363_v17 = vld [vmem:[%s2710_s9 + $0x110] sm:$0xff] }
  0x1c   : > { %346 = vst [vmem:[%s2715_s10 + $0x40] sm:$0xff] %v345_v8  ;;  %v365_v18 = vld [vmem:[%s2710_s9 + $0x120] sm:$0xff]  ;;  %v367_v19 = vld [vmem:[%s2710_s9 + $0x130] sm:$0xff] }
  0x1d   : > { %348 = vst [vmem:[%s2715_s10 + $0x48] sm:$0xff] %v347_v9  ;;  %v369_v20 = vld [vmem:[%s2710_s9 + $0x140] sm:$0xff]  ;;  %v371_v21 = vld [vmem:[%s2710_s9 + $0x150] sm:$0xff] }
  0x1e   : > { %350 = vst [vmem:[%s2715_s10 + $0x50] sm:$0xff] %v349_v10  ;;  %v373_v22 = vld [vmem:[%s2710_s9 + $0x160] sm:$0xff]  ;;  %v375_v23 = vld [vmem:[%s2710_s9 + $0x170] sm:$0xff] }
  0x1f   : > { %352 = vst [vmem:[%s2715_s10 + $0x58] sm:$0xff] %v351_v11  ;;  %v377_v24 = vld [vmem:[%s2710_s9 + $0x180] sm:$0xff]  ;;  %v379_v25 = vld [vmem:[%s2710_s9 + $0x190] sm:$0xff] }
  0x20   : > { %354 = vst [vmem:[%s2715_s10 + $0x60] sm:$0xff] %v353_v12  ;;  %v381_v26 = vld [vmem:[%s2710_s9 + $0x1a0] sm:$0xff]  ;;  %v383_v27 = vld [vmem:[%s2710_s9 + $0x1b0] sm:$0xff] }
  0x21   : > { %356 = vst [vmem:[%s2715_s10 + $0x68] sm:$0xff] %v355_v13  ;;  %v385_v28 = vld [vmem:[%s2710_s9 + $0x1c0] sm:$0xff]  ;;  %v387_v29 = vld [vmem:[%s2710_s9 + $0x1d0] sm:$0xff] }
  0x22   : > { %358 = vst [vmem:[%s2715_s10 + $0x70] sm:$0xff] %v357_v14  ;;  %v389_v30 = vld [vmem:[%s2710_s9 + $0x1e0] sm:$0xff]  ;;  %v391_v31 = vld [vmem:[%s2710_s9 + $0x1f0] sm:$0xff] }
  0x23   : > { %360 = vst [vmem:[%s2715_s10 + $0x78] sm:$0xff] %v359_v15 }
  0x24   : > { %362 = vst [vmem:[%s2715_s10 + $0x80] sm:$0xff] %v361_v16 }
  0x25   : > { %364 = vst [vmem:[%s2715_s10 + $0x88] sm:$0xff] %v363_v17 }
  0x26   : > { %366 = vst [vmem:[%s2715_s10 + $0x90] sm:$0xff] %v365_v18 }
  0x27   : > { %368 = vst [vmem:[%s2715_s10 + $0x98] sm:$0xff] %v367_v19 }
  0x28   : > { %370 = vst [vmem:[%s2715_s10 + $0xa0] sm:$0xff] %v369_v20 }
  0x29   : > { %372 = vst [vmem:[%s2715_s10 + $0xa8] sm:$0xff] %v371_v21 }
  0x2a   : > { %374 = vst [vmem:[%s2715_s10 + $0xb0] sm:$0xff] %v373_v22 }
  0x2b   : > { %376 = vst [vmem:[%s2715_s10 + $0xb8] sm:$0xff] %v375_v23 }
  0x2c   : > { %378 = vst [vmem:[%s2715_s10 + $0xc0] sm:$0xff] %v377_v24 }
  0x2d   : > { %380 = vst [vmem:[%s2715_s10 + $0xc8] sm:$0xff] %v379_v25 }
  0x2e   : > { %382 = vst [vmem:[%s2715_s10 + $0xd0] sm:$0xff] %v381_v26 }
  0x2f   : > { %384 = vst [vmem:[%s2715_s10 + $0xd8] sm:$0xff] %v383_v27 }
  0x30   : > { %386 = vst [vmem:[%s2715_s10 + $0xe0] sm:$0xff] %v385_v28 }
  0x31   : > { %388 = vst [vmem:[%s2715_s10 + $0xe8] sm:$0xff] %v387_v29 }
  0x32   : > { %390 = vst [vmem:[%s2715_s10 + $0xf0] sm:$0xff] %v389_v30 }
  0x33   : > { %392 = vst [vmem:[%s2715_s10 + $0xf8] sm:$0xff] %v391_v31 }
  0x34 PF: > { %p2217_p8 = scmp.ge.s32.totalorder %s2629_s22, 1  ;;  %p421_p9 = scmp.lt.s32.totalorder %s2629_s22, 3 }
  0x36   : > { %p422_p10 = pnand %p2217_p8, %p421_p9 }
  0x37   : > { %s428_s11 = sand.u32 (!%p422_p10), 1, %s2613_s18   ;;  %s2220_s9 = sshll.u32 (!%p422_p10), %s2621_s20, 1 }
  0x38   : > { %425 = sbr.rel (%p422_p10) target bundleno = 497 (0x1f1), region = 74  ;;  %s2781_s12 = sshll.u32 (!%p422_p10), %s428_s11, 8 }
  0x39   : > { %s2784_s13 = scalar_lea.vmem (!%p422_p10), [#allocation3], %s2781_s12  ;;  %p491_p11 = scmp.lt.s32.totalorder (!%p422_p10), %s2220_s9, 3 }
  0x3a   : > { %s3008_s24 = scalar_lea.vmem (!%p422_p10), [#allocation4], %s2781_s12 }
  0x3d   : > { %v2409_v32 = vld [vmem:[%s2784_s13 + $0x70] sm:$0xf]  ;;  %v2532_v33 = vld [vmem:[%s2784_s13 + $0x74] sm:$0xf0]  ;;  %v2531_v37 = vld [vmem:[%s2784_s13 + $0x74] sm:$0xf] }
  0x3e   : > { %v2473_v34 = vld [vmem:[%s2784_s13 + $0xf0] sm:$0xf]  ;;  %v2410_v35 = vor.u32 %v2532_v33, %v2409_v32  ;;  %v2548_v36 = vld [vmem:[%s2784_s13 + $0xf4] sm:$0xf0]  ;;  %v2411_v38 = vld [vmem:[%s2784_s13 + $0x78] sm:$0xf0] }
  0x3f   : > { %v2474_v39 = vor.u32 %v2548_v36, %v2473_v34  ;;  %v2414_v40 = vor.u32 %v2531_v37, %v2411_v38  ;;  %v2547_v41 = vld [vmem:[%s2784_s13 + $0xf4] sm:$0xf]  ;;  %v2475_v42 = vld [vmem:[%s2784_s13 + $0xf8] sm:$0xf0]  ;;  %v2401_v43 = vld [vmem:[%s2784_s13 + $0x60] sm:$0xf] }
  0x40   : > { %891 = vmatpush.bf16.msra.mxu0 %v2410_v35  ;;  %v2478_v44 = vor.u32 %v2547_v41, %v2475_v42  ;;  %v2530_v45 = vld [vmem:[%s2784_s13 + $0x64] sm:$0xf0]  ;;  %v2465_v46 = vld [vmem:[%s2784_s13 + $0xe0] sm:$0xf]  ;;  %v2529_v50 = vld [vmem:[%s2784_s13 + $0x64] sm:$0xf] }
  0x41   : > { %v2546_v47 = vld [vmem:[%s2784_s13 + $0xe4] sm:$0xf0]  ;;  %980 = vmatpush.bf16.msra.mxu1 %v2474_v39  ;;  %1069 = vmatpush.bf16.msra.mxu2 %v2414_v40  ;;  %v2402_v48 = vor.u32 %v2530_v45, %v2401_v43  ;;  %v2403_v51 = vld [vmem:[%s2784_s13 + $0x68] sm:$0xf0]  ;;  %v2545_v52 = vld [vmem:[%s2784_s13 + $0xe4] sm:$0xf] }
  0x42   : > { %v2466_v49 = vor.u32 %v2546_v47, %v2465_v46  ;;  %1158 = vmatpush.bf16.msra.mxu3 %v2478_v44  ;;  %v2406_v53 = vor.u32 %v2529_v50, %v2403_v51  ;;  %v2467_v54 = vld [vmem:[%s2784_s13 + $0xe8] sm:$0xf0]  ;;  %v2393_v55 = vld [vmem:[%s2784_s13 + $0x50] sm:$0xf]  ;;  %v2528_v56 = vld [vmem:[%s2784_s13 + $0x54] sm:$0xf0] }
  0x43   : > { %v2470_v57 = vor.u32 %v2545_v52, %v2467_v54  ;;  %v2457_v58 = vld [vmem:[%s2784_s13 + $0xd0] sm:$0xf]  ;;  %v2544_v59 = vld [vmem:[%s2784_s13 + $0xd4] sm:$0xf0]  ;;  %v2527_v60 = vld [vmem:[%s2784_s13 + $0x54] sm:$0xf]  ;;  %v2394_v61 = vor.u32 %v2528_v56, %v2393_v55 }
  0x44   : > { %892 = vmatpush.bf16.msra.mxu0 %v2402_v48  ;;  %v2395_v62 = vld [vmem:[%s2784_s13 + $0x58] sm:$0xf0]  ;;  %v2543_v63 = vld [vmem:[%s2784_s13 + $0xd4] sm:$0xf]  ;;  %v2458_v1 = vor.u32 %v2544_v59, %v2457_v58  ;;  %v2385_v3 = vld [vmem:[%s2784_s13 + $0x40] sm:$0xf] }
  0x45   : > { %v2459_v0 = vld [vmem:[%s2784_s13 + $0xd8] sm:$0xf0]  ;;  %981 = vmatpush.bf16.msra.mxu1 %v2466_v49  ;;  %1070 = vmatpush.bf16.msra.mxu2 %v2406_v53  ;;  %v2398_v2 = vor.u32 %v2527_v60, %v2395_v62  ;;  %v2526_v4 = vld [vmem:[%s2784_s13 + $0x44] sm:$0xf0]  ;;  %v2449_v5 = vld [vmem:[%s2784_s13 + $0xc0] sm:$0xf] }
  0x46   : > { %1159 = vmatpush.bf16.msra.mxu3 %v2470_v57  ;;  %v2462_v6 = vor.u32 %v2543_v63, %v2459_v0  ;;  %v2542_v7 = vld [vmem:[%s2784_s13 + $0xc4] sm:$0xf0]  ;;  %v2525_v8 = vld [vmem:[%s2784_s13 + $0x44] sm:$0xf]  ;;  %v2387_v9 = vld [vmem:[%s2784_s13 + $0x48] sm:$0xf0]  ;;  %v2386_v12 = vor.u32 %v2526_v4, %v2385_v3 }
  0x47   : > { %v2541_v10 = vld [vmem:[%s2784_s13 + $0xc4] sm:$0xf]  ;;  %v2451_v11 = vld [vmem:[%s2784_s13 + $0xc8] sm:$0xf0]  ;;  %v2450_v13 = vor.u32 %v2542_v7, %v2449_v5  ;;  %v2390_v14 = vor.u32 %v2525_v8, %v2387_v9  ;;  %v2377_v15 = vld [vmem:[%s2784_s13 + $0x30] sm:$0xf] }
  0x48   : > { %893 = vmatpush.bf16.msra.mxu0 %v2394_v61  ;;  %v2524_v16 = vld [vmem:[%s2784_s13 + $0x34] sm:$0xf0]  ;;  %v2441_v17 = vld [vmem:[%s2784_s13 + $0xb0] sm:$0xf]  ;;  %v2454_v18 = vor.u32 %v2541_v10, %v2451_v11  ;;  %v2523_v20 = vld [vmem:[%s2784_s13 + $0x34] sm:$0xf] }
  0x49   : > { %982 = vmatpush.bf16.msra.mxu1 %v2458_v1  ;;  %1071 = vmatpush.bf16.msra.mxu2 %v2398_v2  ;;  %v2540_v19 = vld [vmem:[%s2784_s13 + $0xb4] sm:$0xf0]  ;;  %v2379_v21 = vld [vmem:[%s2784_s13 + $0x38] sm:$0xf0]  ;;  %v2539_v22 = vld [vmem:[%s2784_s13 + $0xb4] sm:$0xf]  ;;  %v2378_v24 = vor.u32 %v2524_v16, %v2377_v15 }
  0x4a   : > { %1160 = vmatpush.bf16.msra.mxu3 %v2462_v6  ;;  %v2443_v23 = vld [vmem:[%s2784_s13 + $0xb8] sm:$0xf0]  ;;  %v2442_v25 = vor.u32 %v2540_v19, %v2441_v17  ;;  %v2382_v26 = vor.u32 %v2523_v20, %v2379_v21  ;;  %v2369_v27 = vld [vmem:[%s2784_s13 + $0x20] sm:$0xf]  ;;  %v2522_v28 = vld [vmem:[%s2784_s13 + $0x24] sm:$0xf0] }
  0x4b   : > { %v2433_v29 = vld [vmem:[%s2784_s13 + $0xa0] sm:$0xf]  ;;  %v2446_v30 = vor.u32 %v2539_v22, %v2443_v23  ;;  %v2538_v31 = vld [vmem:[%s2784_s13 + $0xa4] sm:$0xf0]  ;;  %v2521_v32 = vld [vmem:[%s2784_s13 + $0x24] sm:$0xf]  ;;  %v2370_v36 = vor.u32 %v2522_v28, %v2369_v27 }
  0x4c   : > { %894 = vmatpush.bf16.msra.mxu0 %v2386_v12  ;;  %v2371_v33 = vld [vmem:[%s2784_s13 + $0x28] sm:$0xf0]  ;;  %v2537_v34 = vld [vmem:[%s2784_s13 + $0xa4] sm:$0xf]  ;;  %v2434_v37 = vor.u32 %v2538_v31, %v2433_v29  ;;  %v2361_v39 = vld [vmem:[%s2784_s13 + $0x10] sm:$0xf] }
  0x4d   : > { %983 = vmatpush.bf16.msra.mxu1 %v2450_v13  ;;  %1072 = vmatpush.bf16.msra.mxu2 %v2390_v14  ;;  %v2435_v35 = vld [vmem:[%s2784_s13 + $0xa8] sm:$0xf0]  ;;  %v2374_v38 = vor.u32 %v2521_v32, %v2371_v33  ;;  %v2520_v40 = vld [vmem:[%s2784_s13 + $0x14] sm:$0xf0]  ;;  %v2425_v41 = vld [vmem:[%s2784_s13 + $0x90] sm:$0xf] }
  0x4e   : > { %1161 = vmatpush.bf16.msra.mxu3 %v2454_v18  ;;  %v2438_v42 = vor.u32 %v2537_v34, %v2435_v35  ;;  %v2536_v43 = vld [vmem:[%s2784_s13 + $0x94] sm:$0xf0]  ;;  %v2519_v44 = vld [vmem:[%s2784_s13 + $0x14] sm:$0xf]  ;;  %v2363_v45 = vld [vmem:[%s2784_s13 + $0x18] sm:$0xf0]  ;;  %v2362_v48 = vor.u32 %v2520_v40, %v2361_v39 }
  0x4f   : > { %v2535_v46 = vld [vmem:[%s2784_s13 + $0x94] sm:$0xf]  ;;  %v2427_v47 = vld [vmem:[%s2784_s13 + $0x98] sm:$0xf0]  ;;  %v2426_v49 = vor.u32 %v2536_v43, %v2425_v41  ;;  %v2366_v50 = vor.u32 %v2519_v44, %v2363_v45  ;;  %v2353_v51 = vld [vmem:[%s2784_s13] sm:$0xf] }
  0x50   : > { %895 = vmatpush.bf16.msra.mxu0 %v2378_v24  ;;  %v2518_v52 = vld [vmem:[%s2784_s13 + $0x4] sm:$0xf0]  ;;  %v2417_v53 = vld [vmem:[%s2784_s13 + $0x80] sm:$0xf]  ;;  %v2430_v54 = vor.u32 %v2535_v46, %v2427_v47  ;;  %v2517_v56 = vld [vmem:[%s2784_s13 + $0x4] sm:$0xf] }
  0x51   : > { %984 = vmatpush.bf16.msra.mxu1 %v2442_v25  ;;  %1073 = vmatpush.bf16.msra.mxu2 %v2382_v26  ;;  %v2534_v55 = vld [vmem:[%s2784_s13 + $0x84] sm:$0xf0]  ;;  %v2355_v57 = vld [vmem:[%s2784_s13 + $0x8] sm:$0xf0]  ;;  %v2533_v58 = vld [vmem:[%s2784_s13 + $0x84] sm:$0xf]  ;;  %v2354_v60 = vor.u32 %v2518_v52, %v2353_v51 }
  0x52   : > { %1162 = vmatpush.bf16.msra.mxu3 %v2446_v30  ;;  %v2419_v59 = vld [vmem:[%s2784_s13 + $0x88] sm:$0xf0]  ;;  %v2225_v61 = vld [vmem:[%s3446_s0] sm:$0xf]  ;;  %v2486_v62 = vld [vmem:[%s3446_s0 + $0x4] sm:$0xf0]  ;;  %v2418_v63 = vor.u32 %v2534_v55, %v2417_v53  ;;  %v2358_v0 = vor.u32 %v2517_v56, %v2355_v57 }
  0x53   : > { %v2485_v1 = vld [vmem:[%s3446_s0 + $0x4] sm:$0xf]  ;;  %v2227_v2 = vld [vmem:[%s3446_s0 + $0x8] sm:$0xf0]  ;;  %v2422_v3 = vor.u32 %v2533_v58, %v2419_v59  ;;  %v2226_v4 = vor.u32 %v2486_v62, %v2225_v61  ;;  %v2233_v6 = vld [vmem:[%s3446_s0 + $0x10] sm:$0xf] }
  0x54   : > { %896 = vmatpush.bf16.msra.mxu0 %v2370_v36  ;;  %v2230_v5 = vor.u32 %v2485_v1, %v2227_v2  ;;  %v2488_v7 = vld [vmem:[%s3446_s0 + $0x14] sm:$0xf0]  ;;  %v2487_v8 = vld [vmem:[%s3446_s0 + $0x14] sm:$0xf]  ;;  %v2235_v9 = vld [vmem:[%s3446_s0 + $0x18] sm:$0xf0] }
  0x55   : > { %985 = vmatpush.bf16.msra.mxu1 %v2434_v37  ;;  %1074 = vmatpush.bf16.msra.mxu2 %v2374_v38  ;;  %v2234_v10 = vor.u32 %v2488_v7, %v2233_v6  ;;  %v2238_v11 = vor.u32 %v2487_v8, %v2235_v9  ;;  %v2241_v12 = vld [vmem:[%s3446_s0 + $0x20] sm:$0xf]  ;;  %v2490_v13 = vld [vmem:[%s3446_s0 + $0x24] sm:$0xf0]  ;;  %v2489_v14 = vld [vmem:[%s3446_s0 + $0x24] sm:$0xf] }
  0x56   : > { %1163 = vmatpush.bf16.msra.mxu3 %v2438_v42  ;;  %v2243_v15 = vld [vmem:[%s3446_s0 + $0x28] sm:$0xf0]  ;;  %v2242_v16 = vor.u32 %v2490_v13, %v2241_v12  ;;  %v2249_v18 = vld [vmem:[%s3446_s0 + $0x30] sm:$0xf]  ;;  %v2492_v19 = vld [vmem:[%s3446_s0 + $0x34] sm:$0xf0] }
  0x57   : > { %v2246_v17 = vor.u32 %v2489_v14, %v2243_v15  ;;  %v2491_v20 = vld [vmem:[%s3446_s0 + $0x34] sm:$0xf]  ;;  %v2251_v21 = vld [vmem:[%s3446_s0 + $0x38] sm:$0xf0]  ;;  %v2250_v22 = vor.u32 %v2492_v19, %v2249_v18  ;;  %v2257_v24 = vld [vmem:[%s3446_s0 + $0x40] sm:$0xf] }
  0x58   : > { %897 = vmatpush.bf16.msra.mxu0 %v2362_v48  ;;  %v2254_v23 = vor.u32 %v2491_v20, %v2251_v21  ;;  %v2494_v25 = vld [vmem:[%s3446_s0 + $0x44] sm:$0xf0]  ;;  %v2493_v26 = vld [vmem:[%s3446_s0 + $0x44] sm:$0xf]  ;;  %v2259_v27 = vld [vmem:[%s3446_s0 + $0x48] sm:$0xf0] }
  0x59   : > { %986 = vmatpush.bf16.msra.mxu1 %v2426_v49  ;;  %1075 = vmatpush.bf16.msra.mxu2 %v2366_v50  ;;  %v2258_v28 = vor.u32 %v2494_v25, %v2257_v24  ;;  %v2262_v29 = vor.u32 %v2493_v26, %v2259_v27  ;;  %v2265_v30 = vld [vmem:[%s3446_s0 + $0x50] sm:$0xf]  ;;  %v2496_v31 = vld [vmem:[%s3446_s0 + $0x54] sm:$0xf0]  ;;  %v2495_v32 = vld [vmem:[%s3446_s0 + $0x54] sm:$0xf] }
  0x5a   : > { %1164 = vmatpush.bf16.msra.mxu3 %v2430_v54  ;;  %v2267_v33 = vld [vmem:[%s3446_s0 + $0x58] sm:$0xf0]  ;;  %v2266_v34 = vor.u32 %v2496_v31, %v2265_v30  ;;  %v2273_v36 = vld [vmem:[%s3446_s0 + $0x60] sm:$0xf]  ;;  %v2498_v37 = vld [vmem:[%s3446_s0 + $0x64] sm:$0xf0] }
  0x5b   : > { %v2270_v35 = vor.u32 %v2495_v32, %v2267_v33  ;;  %v2497_v38 = vld [vmem:[%s3446_s0 + $0x64] sm:$0xf]  ;;  %v2275_v39 = vld [vmem:[%s3446_s0 + $0x68] sm:$0xf0]  ;;  %v2274_v40 = vor.u32 %v2498_v37, %v2273_v36  ;;  %v2281_v42 = vld [vmem:[%s3446_s0 + $0x70] sm:$0xf] }
  0x5c   : > { %898 = vmatpush.bf16.msra.mxu0 %v2354_v60  ;;  %v2278_v41 = vor.u32 %v2497_v38, %v2275_v39  ;;  %v2500_v43 = vld [vmem:[%s3446_s0 + $0x74] sm:$0xf0]  ;;  %v2499_v44 = vld [vmem:[%s3446_s0 + $0x74] sm:$0xf]  ;;  %v2283_v45 = vld [vmem:[%s3446_s0 + $0x78] sm:$0xf0] }
  0x5d   : > { %987 = vmatpush.bf16.msra.mxu1 %v2418_v63  ;;  %1076 = vmatpush.bf16.msra.mxu2 %v2358_v0  ;;  %v2282_v46 = vor.u32 %v2500_v43, %v2281_v42  ;;  %v2286_v47 = vor.u32 %v2499_v44, %v2283_v45  ;;  %s3464_s9 = smov (!%p491_p11, %s2220_s9), 3  ;;  %v2289_v48 = vld [vmem:[%s3446_s0 + $0x80] sm:$0xf]  ;;  %v2502_v49 = vld [vmem:[%s3446_s0 + $0x84] sm:$0xf0]  ;;  %v2631_v63 = vmov 0  }
  0x5e   : > { %1165 = vmatpush.bf16.msra.mxu3 %v2422_v3  ;;  %s493_s13 = scalar_lea.vmem %s3448_s2, %s3464_s9  ;;  %v2501_v50 = vld [vmem:[%s3446_s0 + $0x84] sm:$0xf]  ;;  %v2291_v51 = vld [vmem:[%s3446_s0 + $0x88] sm:$0xf0]  ;;  %s503_s6 = scalar_lea.vmem %s3450_s4, %s3464_s9  ;;  %v2290_v53 = vor.u32 %v2502_v49, %v2289_v48  ;;  %v2297_v13 = vld [vmem:[%s3446_s0 + $0x90] sm:$0xf] }
  0x5f   : > { %899 = vmatmul.bf16.vlgmr.msra.gmra.mxu0 %v2226_v4  ;;  %v1578_v52 = vld [vmem:[%s493_s13] sm:$0x3]  ;;  %s498_s10 = scalar_lea.vmem %s3449_s3, %s3464_s9  ;;  %v2294_v55 = vor.u32 %v2501_v50, %v2291_v51  ;;  %v2504_v14 = vld [vmem:[%s3446_s0 + $0x94] sm:$0xf0]  ;;  %v2503_v18 = vld [vmem:[%s3446_s0 + $0x94] sm:$0xf] }
  0x60   : > { %988 = vmatmul.bf16.vlgmr.msra.gmra.mxu1 %v2230_v5  ;;  %1077 = vmatmul.bf16.vlgmr.msra.gmra.mxu2 %v2226_v4  ;;  %v2968_v57 = vperm.slane %v1578_v52, 0  ;;  %v1718_v58 = vld [vmem:[%s503_s6] sm:$0x3]  ;;  %v2973_v2 = vperm.slane %v1578_v52, 1  ;;  %v2299_v19 = vld [vmem:[%s3446_s0 + $0x98] sm:$0xf0]  ;;  %v2298_v24 = vor.u32 %v2504_v14, %v2297_v13 }
  0x61   : > { %1166 = vmatmul.bf16.vlgmr.msra.gmra.mxu3 %v2230_v5  ;;  %v1648_v60 = vld [vmem:[%s498_s10] sm:$0x3]  ;;  %vm1719_vm0 = vcmp.gt.f32.partialorder %v1718_v58, 0.5  ;;  %v2302_v27 = vor.u32 %v2503_v18, %v2299_v19  ;;  %v2506_v52 = vld [vmem:[%s3446_s0 + $0xa4] sm:$0xf0]  ;;  %s2549_s16 = sshll.u32 (%p2697_p6), %s2621_s20, 3 }
  0x62   : > { %v2971_v62 = vperm.slane %v1648_v60, 0  ;;  %v1784_v0 = vsel %vm1719_vm0, 1, %v2631_v63  ;;  %v2976_v7 = vperm.slane %v1648_v60, 1  ;;  %v2305_v51 = vld [vmem:[%s3446_s0 + $0xa0] sm:$0xf]  ;;  %s3367_s12 = scalar_lea.vmem (%p2697_p6), %s3451_s5, %s2549_s16 }
  0x63   : > { %v1785_v9 = vperm.slane %v1784_v0, 0  ;;  %v2307_v58 = vld [vmem:[%s3446_s0 + $0xa8] sm:$0xf0] }
  0x65   : > { %vm2993_vm1 = vcmp.eq.s32.totalorder %v1785_v9, 1 }
  0x6f   : > { %904 = vmatmul.bf16.gmra.mxu0 %v2234_v10 }
  0x70   : > { %993 = vmatmul.bf16.gmra.mxu1 %v2238_v11  ;;  %1082 = vmatmul.bf16.gmra.mxu2 %v2234_v10  ;;  %v1786_v10 = vperm.slane %v1784_v0, 1 }
  0x71   : > { %1171 = vmatmul.bf16.gmra.mxu3 %v2238_v11 }
  0x72   : > { %vm2997_vm2 = vcmp.eq.s32.totalorder %v1786_v10, 1 }
  0x7f   : > { %909 = vmatmul.bf16.gmra.mxu0 %v2242_v16 }
  0x80   : > { %998 = vmatmul.bf16.gmra.mxu1 %v2246_v17  ;;  %1087 = vmatmul.bf16.gmra.mxu2 %v2242_v16 }
  0x81   : > { %1176 = vmatmul.bf16.gmra.mxu3 %v2246_v17 }
  0x8f   : > { %914 = vmatmul.bf16.gmra.mxu0 %v2250_v22 }
  0x90   : > { %1003 = vmatmul.bf16.gmra.mxu1 %v2254_v23  ;;  %1092 = vmatmul.bf16.gmra.mxu2 %v2250_v22 }
  0x91   : > { %1181 = vmatmul.bf16.gmra.mxu3 %v2254_v23 }
  0x9f   : > { %919 = vmatmul.bf16.gmra.mxu0 %v2258_v28 }
  0xa0   : > { %1008 = vmatmul.bf16.gmra.mxu1 %v2262_v29  ;;  %1097 = vmatmul.bf16.gmra.mxu2 %v2258_v28 }
  0xa1   : > { %1186 = vmatmul.bf16.gmra.mxu3 %v2262_v29 }
  0xaf   : > { %924 = vmatmul.bf16.gmra.mxu0 %v2266_v34 }
  0xb0   : > { %1013 = vmatmul.bf16.gmra.mxu1 %v2270_v35  ;;  %1102 = vmatmul.bf16.gmra.mxu2 %v2266_v34 }
  0xb1   : > { %1191 = vmatmul.bf16.gmra.mxu3 %v2270_v35 }
  0xbf   : > { %929 = vmatmul.bf16.gmra.mxu0 %v2274_v40 }
  0xc0   : > { %1018 = vmatmul.bf16.gmra.mxu1 %v2278_v41  ;;  %1107 = vmatmul.bf16.gmra.mxu2 %v2274_v40 }
  0xc1   : > { %1196 = vmatmul.bf16.gmra.mxu3 %v2278_v41 }
  0xcf   : > { %934 = vmatmul.bf16.gmra.mxu0 %v2282_v46 }
  0xd0   : > { %1023 = vmatmul.bf16.gmra.mxu1 %v2286_v47  ;;  %1112 = vmatmul.bf16.gmra.mxu2 %v2282_v46 }
  0xd1   : > { %1201 = vmatmul.bf16.gmra.mxu3 %v2286_v47 }
  0xdc   : > { %v900_v54 = vpop.f32.mrf.mxu0 }
  0xdd   : > { %v989_v56 = vpop.f32.mrf.mxu1 }
  0xde   : > { %v990_v59 = vadd.f32 %v989_v56, %v900_v54  ;;  %v2505_v56 = vld [vmem:[%s3446_s0 + $0xa4] sm:$0xf] }
  0xdf   : > { %939 = vmatmul.bf16.gmra.mxu0 %v2290_v53 }
  0xe0   : > { %1028 = vmatmul.bf16.gmra.mxu1 %v2294_v55  ;;  %1117 = vmatmul.bf16.gmra.mxu2 %v2290_v53  ;;  %v1584_v61 = vmul.f32 %v2968_v57, %v990_v59 }
  0xe1   : > { %1206 = vmatmul.bf16.gmra.mxu3 %v2294_v55 }
  0xe2   : > { %v1654_v5 = vadd.f32 %v2971_v62, %v1584_v61  ;;  %v2306_v61 = vor.u32 %v2506_v52, %v2305_v51 }
  0xe3   : > { %v1078_v1 = vpop.f32.mrf.mxu2 }
  0xe4   : > { %v1167_v3 = vpop.f32.mrf.mxu3  ;;  %v902_v4 = vpop.f32.mrf.mxu0  ;;  %v1720_v15 = vmax.f32 %v1654_v5, 0.0 }
  0xe5   : > { %v1168_v6 = vadd.f32 %v1167_v3, %v1078_v1  ;;  %v991_v8 = vpop.f32.mrf.mxu1  ;;  %v2310_v1 = vor.u32 %v2505_v56, %v2307_v58 }
  0xe6   : > { %v992_v11 = vadd.f32 %v991_v8, %v902_v4  ;;  %v1789_v28 = vsel %vm2993_vm1, %v1720_v15, %v1654_v5 }
  0xe7   : > { %v1585_v12 = vmul.f32 %v2973_v2, %v1168_v6 }
  0xe8   : > { %v1586_v17 = vmul.f32 %v2968_v57, %v992_v11 }
  0xe9   : > { %v1655_v16 = vadd.f32 %v2976_v7, %v1585_v12 }
  0xea   : > { %v1656_v30 = vadd.f32 %v2971_v62, %v1586_v17 }
  0xeb   : > { %v1721_v22 = vmax.f32 %v1655_v16, 0.0  ;;  %v1080_v23 = vpop.f32.mrf.mxu2 }
  0xec   : > { %v1169_v25 = vpop.f32.mrf.mxu3  ;;  %v905_v26 = vpop.f32.mrf.mxu0  ;;  %v1722_v36 = vmax.f32 %v1656_v30, 0.0 }
  0xed   : > { %v1790_v29 = vsel %vm2997_vm2, %v1721_v22, %v1655_v16  ;;  %v1170_v31 = vadd.f32 %v1169_v25, %v1080_v23  ;;  %v994_v32 = vpop.f32.mrf.mxu1 }
  0xee   : > { %v1853_v33 = vpack.c.bf16 %v1790_v29, %v1789_v28  ;;  %v995_v34 = vadd.f32 %v994_v32, %v905_v26  ;;  %v1791_v43 = vsel %vm2993_vm1, %v1722_v36, %v1656_v30  ;;  %v2313_v29 = vld [vmem:[%s3446_s0 + $0xb0] sm:$0xf]  ;;  %v2508_v30 = vld [vmem:[%s3446_s0 + $0xb4] sm:$0xf0] }
  0xef   : > { %v1587_v35 = vmul.f32 %v2973_v2, %v1170_v31  ;;  %944 = vmatmul.bf16.gmra.mxu0 %v2298_v24 }
  0xf0   : > { %1885 = vst [vmem:[%s3008_s24] sm:$0xff] %v1853_v33  ;;  %1033 = vmatmul.bf16.gmra.mxu1 %v2302_v27  ;;  %1122 = vmatmul.bf16.gmra.mxu2 %v2298_v24  ;;  %v1588_v38 = vmul.f32 %v2968_v57, %v995_v34  ;;  %v2507_v34 = vld [vmem:[%s3446_s0 + $0xb4] sm:$0xf] }
  0xf1   : > { %v1657_v37 = vadd.f32 %v2976_v7, %v1587_v35  ;;  %1211 = vmatmul.bf16.gmra.mxu3 %v2302_v27  ;;  %v2315_v35 = vld [vmem:[%s3446_s0 + $0xb8] sm:$0xf0] }
  0xf2   : > { %v1658_v45 = vadd.f32 %v2971_v62, %v1588_v38  ;;  %v2314_v38 = vor.u32 %v2508_v30, %v2313_v29 }
  0xf3   : > { %v1723_v39 = vmax.f32 %v1657_v37, 0.0  ;;  %v1083_v40 = vpop.f32.mrf.mxu2 }
  0xf4   : > { %v1172_v41 = vpop.f32.mrf.mxu3  ;;  %v907_v42 = vpop.f32.mrf.mxu0  ;;  %v1724_v53 = vmax.f32 %v1658_v45, 0.0 }
  0xf5   : > { %v1792_v44 = vsel %vm2997_vm2, %v1723_v39, %v1657_v37  ;;  %v1173_v46 = vadd.f32 %v1172_v41, %v1083_v40  ;;  %v996_v47 = vpop.f32.mrf.mxu1  ;;  %v2318_v41 = vor.u32 %v2507_v34, %v2315_v35 }
  0xf6   : > { %v1854_v48 = vpack.c.bf16 %v1792_v44, %v1791_v43  ;;  %v997_v49 = vadd.f32 %v996_v47, %v907_v42  ;;  %v1793_v3 = vsel %vm2993_vm1, %v1724_v53, %v1658_v45 }
  0xf7   : > { %v1589_v50 = vmul.f32 %v2973_v2, %v1173_v46 }
  0xf8   : > { %1886 = vst [vmem:[%s3008_s24 + $0x8] sm:$0xff] %v1854_v48  ;;  %v1590_v55 = vmul.f32 %v2968_v57, %v997_v49 }
  0xf9   : > { %v1659_v54 = vadd.f32 %v2976_v7, %v1589_v50 }
  0xfa   : > { %v1660_v5 = vadd.f32 %v2971_v62, %v1590_v55 }
  0xfb   : > { %v1725_v59 = vmax.f32 %v1659_v54, 0.0  ;;  %v1085_v60 = vpop.f32.mrf.mxu2 }
  0xfc   : > { %v1174_v63 = vpop.f32.mrf.mxu3  ;;  %v910_v0 = vpop.f32.mrf.mxu0  ;;  %v1726_v12 = vmax.f32 %v1660_v5, 0.0 }
  0xfd   : > { %v1794_v4 = vsel %vm2997_vm2, %v1725_v59, %v1659_v54  ;;  %v1175_v6 = vadd.f32 %v1174_v63, %v1085_v60  ;;  %v999_v8 = vpop.f32.mrf.mxu1 }
  0xfe   : > { %v1855_v9 = vpack.c.bf16 %v1794_v4, %v1793_v3  ;;  %v1000_v10 = vadd.f32 %v999_v8, %v910_v0  ;;  %v1795_v19 = vsel %vm2993_vm1, %v1726_v12, %v1660_v5  ;;  %v2321_v4 = vld [vmem:[%s3446_s0 + $0xc0] sm:$0xf]  ;;  %v2510_v5 = vld [vmem:[%s3446_s0 + $0xc4] sm:$0xf0] }
  0xff   : > { %v1591_v11 = vmul.f32 %v2973_v2, %v1175_v6  ;;  %949 = vmatmul.bf16.gmra.mxu0 %v2306_v61 }
 0x100   : > { %1887 = vst [vmem:[%s3008_s24 + $0x10] sm:$0xff] %v1855_v9  ;;  %1038 = vmatmul.bf16.gmra.mxu1 %v2310_v1  ;;  %1127 = vmatmul.bf16.gmra.mxu2 %v2306_v61  ;;  %v1592_v14 = vmul.f32 %v2968_v57, %v1000_v10  ;;  %v2509_v10 = vld [vmem:[%s3446_s0 + $0xc4] sm:$0xf] }
 0x101   : > { %v1661_v13 = vadd.f32 %v2976_v7, %v1591_v11  ;;  %1216 = vmatmul.bf16.gmra.mxu3 %v2310_v1  ;;  %v2323_v11 = vld [vmem:[%s3446_s0 + $0xc8] sm:$0xf0] }
 0x102   : > { %v1662_v23 = vadd.f32 %v2971_v62, %v1592_v14  ;;  %v2322_v14 = vor.u32 %v2510_v5, %v2321_v4 }
 0x103   : > { %v1727_v15 = vmax.f32 %v1661_v13, 0.0  ;;  %v1088_v16 = vpop.f32.mrf.mxu2 }
 0x104   : > { %v1177_v17 = vpop.f32.mrf.mxu3  ;;  %v912_v18 = vpop.f32.mrf.mxu0  ;;  %v1728_v31 = vmax.f32 %v1662_v23, 0.0 }
 0x105   : > { %v1796_v22 = vsel %vm2997_vm2, %v1727_v15, %v1661_v13  ;;  %v1178_v24 = vadd.f32 %v1177_v17, %v1088_v16  ;;  %v1001_v25 = vpop.f32.mrf.mxu1  ;;  %v2326_v17 = vor.u32 %v2509_v10, %v2323_v11 }
 0x106   : > { %v1856_v26 = vpack.c.bf16 %v1796_v22, %v1795_v19  ;;  %v1002_v27 = vadd.f32 %v1001_v25, %v912_v18  ;;  %v1797_v42 = vsel %vm2993_vm1, %v1728_v31, %v1662_v23 }
 0x107   : > { %v1593_v28 = vmul.f32 %v2973_v2, %v1178_v24 }
 0x108   : > { %1888 = vst [vmem:[%s3008_s24 + $0x18] sm:$0xff] %v1856_v26  ;;  %v1594_v33 = vmul.f32 %v2968_v57, %v1002_v27 }
 0x109   : > { %v1663_v32 = vadd.f32 %v2976_v7, %v1593_v28 }
 0x10a   : > { %v1664_v44 = vadd.f32 %v2971_v62, %v1594_v33 }
 0x10b   : > { %v1729_v36 = vmax.f32 %v1663_v32, 0.0  ;;  %v1090_v37 = vpop.f32.mrf.mxu2 }
 0x10c   : > { %v1179_v39 = vpop.f32.mrf.mxu3  ;;  %v915_v40 = vpop.f32.mrf.mxu0  ;;  %v1730_v50 = vmax.f32 %v1664_v44, 0.0 }
 0x10d   : > { %v1798_v43 = vsel %vm2997_vm2, %v1729_v36, %v1663_v32  ;;  %v1180_v45 = vadd.f32 %v1179_v39, %v1090_v37  ;;  %v1004_v46 = vpop.f32.mrf.mxu1 }
 0x10e   : > { %v1857_v47 = vpack.c.bf16 %v1798_v43, %v1797_v42  ;;  %v1005_v48 = vadd.f32 %v1004_v46, %v915_v40  ;;  %v1799_v58 = vsel %vm2993_vm1, %v1730_v50, %v1664_v44  ;;  %v2329_v43 = vld [vmem:[%s3446_s0 + $0xd0] sm:$0xf]  ;;  %v2512_v44 = vld [vmem:[%s3446_s0 + $0xd4] sm:$0xf0] }
 0x10f   : > { %v1595_v49 = vmul.f32 %v2973_v2, %v1180_v45  ;;  %954 = vmatmul.bf16.gmra.mxu0 %v2314_v38  ;;  %v2026_v20 = vld [vmem:[%s3008_s24 + $0x18] sm:$0xff] (%p2697_p6) }
 0x110   : > { %1889 = vst [vmem:[%s3008_s24 + $0x20] sm:$0xff] %v1857_v47  ;;  %1043 = vmatmul.bf16.gmra.mxu1 %v2318_v41  ;;  %1132 = vmatmul.bf16.gmra.mxu2 %v2314_v38  ;;  %v1596_v52 = vmul.f32 %v2968_v57, %v1005_v48  ;;  %v2511_v48 = vld [vmem:[%s3446_s0 + $0xd4] sm:$0xf] }
 0x111   : > { %v1665_v51 = vadd.f32 %v2976_v7, %v1595_v49  ;;  %1221 = vmatmul.bf16.gmra.mxu3 %v2318_v41  ;;  %v2331_v49 = vld [vmem:[%s3446_s0 + $0xd8] sm:$0xf0]  ;;  %2027 = vst [vmem:[%s3367_s12 + $0x30] sm:$0xff] (%p2697_p6), %v2026_v20 }
 0x112   : > { %v1666_v60 = vadd.f32 %v2971_v62, %v1596_v52  ;;  %v2330_v52 = vor.u32 %v2512_v44, %v2329_v43 }
 0x113   : > { %v1731_v53 = vmax.f32 %v1665_v51, 0.0  ;;  %v1093_v54 = vpop.f32.mrf.mxu2 }
 0x114   : > { %v1182_v55 = vpop.f32.mrf.mxu3  ;;  %v917_v56 = vpop.f32.mrf.mxu0  ;;  %v1732_v6 = vmax.f32 %v1666_v60, 0.0 }
 0x115   : > { %v1800_v59 = vsel %vm2997_vm2, %v1731_v53, %v1665_v51  ;;  %v1183_v61 = vadd.f32 %v1182_v55, %v1093_v54  ;;  %v1006_v63 = vpop.f32.mrf.mxu1  ;;  %v2334_v55 = vor.u32 %v2511_v48, %v2331_v49 }
 0x116   : > { %v1858_v0 = vpack.c.bf16 %v1800_v59, %v1799_v58  ;;  %v1007_v1 = vadd.f32 %v1006_v63, %v917_v56  ;;  %v1801_v18 = vsel %vm2993_vm1, %v1732_v6, %v1666_v60 }
 0x117   : > { %v1597_v3 = vmul.f32 %v2973_v2, %v1183_v61  ;;  %v2028_v21 = vld [vmem:[%s3008_s24 + $0x20] sm:$0xff] (%p2697_p6) }
 0x118   : > { %1890 = vst [vmem:[%s3008_s24 + $0x28] sm:$0xff] %v1858_v0  ;;  %v1598_v9 = vmul.f32 %v2968_v57, %v1007_v1 }
 0x119   : > { %v1667_v8 = vadd.f32 %v2976_v7, %v1597_v3  ;;  %2029 = vst [vmem:[%s3367_s12 + $0x40] sm:$0xff] (%p2697_p6), %v2028_v21 }
 0x11a   : > { %v1668_v22 = vadd.f32 %v2971_v62, %v1598_v9 }
 0x11b   : > { %v1733_v12 = vmax.f32 %v1667_v8, 0.0  ;;  %v1095_v13 = vpop.f32.mrf.mxu2 }
 0x11c   : > { %v1184_v15 = vpop.f32.mrf.mxu3  ;;  %v920_v16 = vpop.f32.mrf.mxu0  ;;  %v1734_v28 = vmax.f32 %v1668_v22, 0.0 }
 0x11d   : > { %v1802_v19 = vsel %vm2997_vm2, %v1733_v12, %v1667_v8  ;;  %v1185_v23 = vadd.f32 %v1184_v15, %v1095_v13  ;;  %v1009_v24 = vpop.f32.mrf.mxu1 }
 0x11e   : > { %v1859_v25 = vpack.c.bf16 %v1802_v19, %v1801_v18  ;;  %v1010_v26 = vadd.f32 %v1009_v24, %v920_v16  ;;  %v1803_v35 = vsel %vm2993_vm1, %v1734_v28, %v1668_v22  ;;  %v2337_v19 = vld [vmem:[%s3446_s0 + $0xe0] sm:$0xf]  ;;  %v2514_v22 = vld [vmem:[%s3446_s0 + $0xe4] sm:$0xf0] }
 0x11f   : > { %v1599_v27 = vmul.f32 %v2973_v2, %v1185_v23  ;;  %959 = vmatmul.bf16.gmra.mxu0 %v2322_v14 }
 0x120   : > { %1891 = vst [vmem:[%s3008_s24 + $0x30] sm:$0xff] %v1859_v25  ;;  %1048 = vmatmul.bf16.gmra.mxu1 %v2326_v17  ;;  %1137 = vmatmul.bf16.gmra.mxu2 %v2322_v14  ;;  %v1600_v30 = vmul.f32 %v2968_v57, %v1010_v26  ;;  %v2513_v26 = vld [vmem:[%s3446_s0 + $0xe4] sm:$0xf] }
 0x121   : > { %v1669_v29 = vadd.f32 %v2976_v7, %v1599_v27  ;;  %1226 = vmatmul.bf16.gmra.mxu3 %v2326_v17  ;;  %v2339_v27 = vld [vmem:[%s3446_s0 + $0xe8] sm:$0xf0] }
 0x122   : > { %v1670_v37 = vadd.f32 %v2971_v62, %v1600_v30  ;;  %v2338_v30 = vor.u32 %v2514_v22, %v2337_v19 }
 0x123   : > { %v1735_v31 = vmax.f32 %v1669_v29, 0.0  ;;  %v1098_v32 = vpop.f32.mrf.mxu2 }
 0x124   : > { %v1187_v33 = vpop.f32.mrf.mxu3  ;;  %v922_v34 = vpop.f32.mrf.mxu0  ;;  %v1736_v45 = vmax.f32 %v1670_v37, 0.0 }
 0x125   : > { %v1804_v36 = vsel %vm2997_vm2, %v1735_v31, %v1669_v29  ;;  %v1188_v38 = vadd.f32 %v1187_v33, %v1098_v32  ;;  %v1011_v39 = vpop.f32.mrf.mxu1  ;;  %v2342_v33 = vor.u32 %v2513_v26, %v2339_v27 }
 0x126   : > { %v1860_v40 = vpack.c.bf16 %v1804_v36, %v1803_v35  ;;  %v1012_v41 = vadd.f32 %v1011_v39, %v922_v34  ;;  %v1805_v56 = vsel %vm2993_vm1, %v1736_v45, %v1670_v37 }
 0x127   : > { %v1601_v42 = vmul.f32 %v2973_v2, %v1188_v38 }
 0x128   : > { %1892 = vst [vmem:[%s3008_s24 + $0x38] sm:$0xff] %v1860_v40  ;;  %v1602_v47 = vmul.f32 %v2968_v57, %v1012_v41 }
 0x129   : > { %v1671_v46 = vadd.f32 %v2976_v7, %v1601_v42 }
 0x12a   : > { %v1672_v59 = vadd.f32 %v2971_v62, %v1602_v47 }
 0x12b   : > { %v1737_v50 = vmax.f32 %v1671_v46, 0.0  ;;  %v1100_v51 = vpop.f32.mrf.mxu2 }
 0x12c   : > { %v1189_v53 = vpop.f32.mrf.mxu3  ;;  %v925_v54 = vpop.f32.mrf.mxu0  ;;  %v1738_v3 = vmax.f32 %v1672_v59, 0.0 }
 0x12d   : > { %v1806_v58 = vsel %vm2997_vm2, %v1737_v50, %v1671_v46  ;;  %v1190_v60 = vadd.f32 %v1189_v53, %v1100_v51  ;;  %v1014_v61 = vpop.f32.mrf.mxu1 }
 0x12e   : > { %v1861_v63 = vpack.c.bf16 %v1806_v58, %v1805_v56  ;;  %v1015_v0 = vadd.f32 %v1014_v61, %v925_v54  ;;  %v1807_v11 = vsel %vm2993_vm1, %v1738_v3, %v1672_v59  ;;  %v2345_v58 = vld [vmem:[%s3446_s0 + $0xf0] sm:$0xf]  ;;  %v2516_v59 = vld [vmem:[%s3446_s0 + $0xf4] sm:$0xf0] }
 0x12f   : > { %v1603_v1 = vmul.f32 %v2973_v2, %v1190_v60  ;;  %964 = vmatmul.bf16.gmra.mxu0 %v2330_v52 }
 0x130   : > { %1893 = vst [vmem:[%s3008_s24 + $0x40] sm:$0xff] %v1861_v63  ;;  %1053 = vmatmul.bf16.gmra.mxu1 %v2334_v55  ;;  %1142 = vmatmul.bf16.gmra.mxu2 %v2330_v52  ;;  %v1604_v5 = vmul.f32 %v2968_v57, %v1015_v0  ;;  %v2515_v0 = vld [vmem:[%s3446_s0 + $0xf4] sm:$0xf] }
 0x131   : > { %v1673_v4 = vadd.f32 %v2976_v7, %v1603_v1  ;;  %1231 = vmatmul.bf16.gmra.mxu3 %v2334_v55  ;;  %v2347_v1 = vld [vmem:[%s3446_s0 + $0xf8] sm:$0xf0] }
 0x132   : > { %v1674_v13 = vadd.f32 %v2971_v62, %v1604_v5  ;;  %v2346_v5 = vor.u32 %v2516_v59, %v2345_v58 }
 0x133   : > { %v1739_v6 = vmax.f32 %v1673_v4, 0.0  ;;  %v1103_v8 = vpop.f32.mrf.mxu2 }
 0x134   : > { %v1192_v9 = vpop.f32.mrf.mxu3  ;;  %v927_v10 = vpop.f32.mrf.mxu0  ;;  %v1740_v23 = vmax.f32 %v1674_v13, 0.0 }
 0x135   : > { %v1808_v12 = vsel %vm2997_vm2, %v1739_v6, %v1673_v4  ;;  %v1193_v14 = vadd.f32 %v1192_v9, %v1103_v8  ;;  %v1016_v15 = vpop.f32.mrf.mxu1  ;;  %v2350_v9 = vor.u32 %v2515_v0, %v2347_v1 }
 0x136   : > { %v1862_v16 = vpack.c.bf16 %v1808_v12, %v1807_v11  ;;  %v1017_v17 = vadd.f32 %v1016_v15, %v927_v10  ;;  %v1809_v34 = vsel %vm2993_vm1, %v1740_v23, %v1674_v13 }
 0x137   : > { %v1605_v18 = vmul.f32 %v2973_v2, %v1193_v14 }
 0x138   : > { %1894 = vst [vmem:[%s3008_s24 + $0x48] sm:$0xff] %v1862_v16  ;;  %v1606_v25 = vmul.f32 %v2968_v57, %v1017_v17 }
 0x139   : > { %v1675_v24 = vadd.f32 %v2976_v7, %v1605_v18 }
 0x13a   : > { %v1676_v36 = vadd.f32 %v2971_v62, %v1606_v25 }
 0x13b   : > { %v1741_v28 = vmax.f32 %v1675_v24, 0.0  ;;  %v1105_v29 = vpop.f32.mrf.mxu2 }
 0x13c   : > { %v1194_v31 = vpop.f32.mrf.mxu3  ;;  %v930_v32 = vpop.f32.mrf.mxu0  ;;  %v1742_v42 = vmax.f32 %v1676_v36, 0.0 }
 0x13d   : > { %v1810_v35 = vsel %vm2997_vm2, %v1741_v28, %v1675_v24  ;;  %v1195_v37 = vadd.f32 %v1194_v31, %v1105_v29  ;;  %v1019_v38 = vpop.f32.mrf.mxu1 }
 0x13e   : > { %v1863_v39 = vpack.c.bf16 %v1810_v35, %v1809_v34  ;;  %v1020_v40 = vadd.f32 %v1019_v38, %v930_v32  ;;  %v1811_v49 = vsel %vm2993_vm1, %v1742_v42, %v1676_v36 }
 0x13f   : > { %v1607_v41 = vmul.f32 %v2973_v2, %v1195_v37  ;;  %969 = vmatmul.bf16.gmra.mxu0 %v2338_v30 }
 0x140   : > { %1895 = vst [vmem:[%s3008_s24 + $0x50] sm:$0xff] %v1863_v39  ;;  %1058 = vmatmul.bf16.gmra.mxu1 %v2342_v33  ;;  %1147 = vmatmul.bf16.gmra.mxu2 %v2338_v30  ;;  %v1608_v44 = vmul.f32 %v2968_v57, %v1020_v40 }
 0x141   : > { %v1677_v43 = vadd.f32 %v2976_v7, %v1607_v41  ;;  %1236 = vmatmul.bf16.gmra.mxu3 %v2342_v33 }
 0x142   : > { %v1678_v51 = vadd.f32 %v2971_v62, %v1608_v44 }
 0x143   : > { %v1743_v45 = vmax.f32 %v1677_v43, 0.0  ;;  %v1108_v46 = vpop.f32.mrf.mxu2 }
 0x144   : > { %v1197_v47 = vpop.f32.mrf.mxu3  ;;  %v932_v48 = vpop.f32.mrf.mxu0  ;;  %v1744_v60 = vmax.f32 %v1678_v51, 0.0 }
 0x145   : > { %v1812_v50 = vsel %vm2997_vm2, %v1743_v45, %v1677_v43  ;;  %v1198_v52 = vadd.f32 %v1197_v47, %v1108_v46  ;;  %v1021_v53 = vpop.f32.mrf.mxu1 }
 0x146   : > { %v1864_v54 = vpack.c.bf16 %v1812_v50, %v1811_v49  ;;  %v1022_v55 = vadd.f32 %v1021_v53, %v932_v48  ;;  %v1813_v10 = vsel %vm2993_vm1, %v1744_v60, %v1678_v51 }
 0x147   : > { %v1609_v56 = vmul.f32 %v2973_v2, %v1198_v52 }
 0x148   : > { %1896 = vst [vmem:[%s3008_s24 + $0x58] sm:$0xff] %v1864_v54  ;;  %v1610_v63 = vmul.f32 %v2968_v57, %v1022_v55 }
 0x149   : > { %v1679_v61 = vadd.f32 %v2976_v7, %v1609_v56 }
 0x14a   : > { %v1680_v12 = vadd.f32 %v2971_v62, %v1610_v63 }
 0x14b   : > { %v1745_v3 = vmax.f32 %v1679_v61, 0.0  ;;  %v1110_v4 = vpop.f32.mrf.mxu2 }
 0x14c   : > { %v1199_v6 = vpop.f32.mrf.mxu3  ;;  %v935_v8 = vpop.f32.mrf.mxu0  ;;  %v1746_v18 = vmax.f32 %v1680_v12, 0.0 }
 0x14d   : > { %v1814_v11 = vsel %vm2997_vm2, %v1745_v3, %v1679_v61  ;;  %v1200_v13 = vadd.f32 %v1199_v6, %v1110_v4  ;;  %v1024_v14 = vpop.f32.mrf.mxu1 }
 0x14e   : > { %v1865_v15 = vpack.c.bf16 %v1814_v11, %v1813_v10  ;;  %v1025_v16 = vadd.f32 %v1024_v14, %v935_v8  ;;  %v1815_v27 = vsel %vm2993_vm1, %v1746_v18, %v1680_v12 }
 0x14f   : > { %v1611_v17 = vmul.f32 %v2973_v2, %v1200_v13  ;;  %974 = vmatmul.bf16.gmra.mxu0 %v2346_v5 }
 0x150   : > { %1897 = vst [vmem:[%s3008_s24 + $0x60] sm:$0xff] %v1865_v15  ;;  %1063 = vmatmul.bf16.gmra.mxu1 %v2350_v9  ;;  %1152 = vmatmul.bf16.gmra.mxu2 %v2346_v5  ;;  %v1612_v22 = vmul.f32 %v2968_v57, %v1025_v16 }
 0x151   : > { %v1681_v19 = vadd.f32 %v2976_v7, %v1611_v17  ;;  %1241 = vmatmul.bf16.gmra.mxu3 %v2350_v9 }
 0x152   : > { %v1682_v29 = vadd.f32 %v2971_v62, %v1612_v22 }
 0x153   : > { %v1747_v23 = vmax.f32 %v1681_v19, 0.0  ;;  %v1113_v24 = vpop.f32.mrf.mxu2 }
 0x154   : > { %v1202_v25 = vpop.f32.mrf.mxu3  ;;  %v937_v26 = vpop.f32.mrf.mxu0  ;;  %v1748_v35 = vmax.f32 %v1682_v29, 0.0 }
 0x155   : > { %v1816_v28 = vsel %vm2997_vm2, %v1747_v23, %v1681_v19  ;;  %v1203_v30 = vadd.f32 %v1202_v25, %v1113_v24  ;;  %v1026_v31 = vpop.f32.mrf.mxu1 }
 0x156   : > { %v1866_v32 = vpack.c.bf16 %v1816_v28, %v1815_v27  ;;  %v1027_v33 = vadd.f32 %v1026_v31, %v937_v26  ;;  %v1817_v42 = vsel %vm2993_vm1, %v1748_v35, %v1682_v29 }
 0x157   : > { %v1613_v34 = vmul.f32 %v2973_v2, %v1203_v30 }
 0x158   : > { %1898 = vst [vmem:[%s3008_s24 + $0x68] sm:$0xff] %v1866_v32  ;;  %v1614_v37 = vmul.f32 %v2968_v57, %v1027_v33 }
 0x159   : > { %v1683_v36 = vadd.f32 %v2976_v7, %v1613_v34 }
 0x15a   : > { %v1684_v44 = vadd.f32 %v2971_v62, %v1614_v37 }
 0x15b   : > { %v1749_v38 = vmax.f32 %v1683_v36, 0.0  ;;  %v1115_v39 = vpop.f32.mrf.mxu2 }
 0x15c   : > { %v1204_v40 = vpop.f32.mrf.mxu3  ;;  %v940_v41 = vpop.f32.mrf.mxu0  ;;  %v1750_v50 = vmax.f32 %v1684_v44, 0.0 }
 0x15d   : > { %v1818_v43 = vsel %vm2997_vm2, %v1749_v38, %v1683_v36  ;;  %v1205_v45 = vadd.f32 %v1204_v40, %v1115_v39  ;;  %v1029_v46 = vpop.f32.mrf.mxu1 }
 0x15e   : > { %v1867_v47 = vpack.c.bf16 %v1818_v43, %v1817_v42  ;;  %v1030_v48 = vadd.f32 %v1029_v46, %v940_v41  ;;  %v1819_v58 = vsel %vm2993_vm1, %v1750_v50, %v1684_v44 }
 0x15f   : > { %v1615_v49 = vmul.f32 %v2973_v2, %v1205_v45 }
 0x160   : > { %1899 = vst [vmem:[%s3008_s24 + $0x70] sm:$0xff] %v1867_v47  ;;  %v1616_v52 = vmul.f32 %v2968_v57, %v1030_v48 }
 0x161   : > { %v1685_v51 = vadd.f32 %v2976_v7, %v1615_v49 }
 0x162   : > { %v1686_v60 = vadd.f32 %v2971_v62, %v1616_v52 }
 0x163   : > { %v1751_v53 = vmax.f32 %v1685_v51, 0.0  ;;  %v1118_v54 = vpop.f32.mrf.mxu2 }
 0x164   : > { %v1207_v55 = vpop.f32.mrf.mxu3  ;;  %v942_v56 = vpop.f32.mrf.mxu0  ;;  %v1752_v4 = vmax.f32 %v1686_v60, 0.0 }
 0x165   : > { %v1820_v59 = vsel %vm2997_vm2, %v1751_v53, %v1685_v51  ;;  %v1208_v61 = vadd.f32 %v1207_v55, %v1118_v54  ;;  %v1031_v63 = vpop.f32.mrf.mxu1 }
 0x166   : > { %v1868_v0 = vpack.c.bf16 %v1820_v59, %v1819_v58  ;;  %v1032_v1 = vadd.f32 %v1031_v63, %v942_v56  ;;  %v1821_v12 = vsel %vm2993_vm1, %v1752_v4, %v1686_v60 }
 0x167   : > { %v1617_v3 = vmul.f32 %v2973_v2, %v1208_v61 }
 0x168   : > { %1900 = vst [vmem:[%s3008_s24 + $0x78] sm:$0xff] %v1868_v0  ;;  %v1618_v6 = vmul.f32 %v2968_v57, %v1032_v1 }
 0x169   : > { %v1687_v5 = vadd.f32 %v2976_v7, %v1617_v3 }
 0x16a   : > { %v1688_v14 = vadd.f32 %v2971_v62, %v1618_v6 }
 0x16b   : > { %v1753_v8 = vmax.f32 %v1687_v5, 0.0  ;;  %v1120_v9 = vpop.f32.mrf.mxu2 }
 0x16c   : > { %v1209_v10 = vpop.f32.mrf.mxu3  ;;  %v945_v11 = vpop.f32.mrf.mxu0  ;;  %v1754_v22 = vmax.f32 %v1688_v14, 0.0 }
 0x16d   : > { %v1822_v13 = vsel %vm2997_vm2, %v1753_v8, %v1687_v5  ;;  %v1210_v15 = vadd.f32 %v1209_v10, %v1120_v9  ;;  %v1034_v16 = vpop.f32.mrf.mxu1 }
 0x16e   : > { %v1869_v17 = vpack.c.bf16 %v1822_v13, %v1821_v12  ;;  %v1035_v18 = vadd.f32 %v1034_v16, %v945_v11  ;;  %v1823_v29 = vsel %vm2993_vm1, %v1754_v22, %v1688_v14 }
 0x16f   : > { %v1619_v19 = vmul.f32 %v2973_v2, %v1210_v15 }
 0x170   : > { %1901 = vst [vmem:[%s3008_s24 + $0x80] sm:$0xff] %v1869_v17  ;;  %v1620_v24 = vmul.f32 %v2968_v57, %v1035_v18 }
 0x171   : > { %v1689_v23 = vadd.f32 %v2976_v7, %v1619_v19 }
 0x172   : > { %v1690_v31 = vadd.f32 %v2971_v62, %v1620_v24 }
 0x173   : > { %v1755_v25 = vmax.f32 %v1689_v23, 0.0  ;;  %v1123_v26 = vpop.f32.mrf.mxu2 }
 0x174   : > { %v1212_v27 = vpop.f32.mrf.mxu3  ;;  %v947_v28 = vpop.f32.mrf.mxu0  ;;  %v1756_v37 = vmax.f32 %v1690_v31, 0.0 }
 0x175   : > { %v1824_v30 = vsel %vm2997_vm2, %v1755_v25, %v1689_v23  ;;  %v1213_v32 = vadd.f32 %v1212_v27, %v1123_v26  ;;  %v1036_v33 = vpop.f32.mrf.mxu1 }
 0x176   : > { %v1870_v34 = vpack.c.bf16 %v1824_v30, %v1823_v29  ;;  %v1037_v35 = vadd.f32 %v1036_v33, %v947_v28  ;;  %v1825_v44 = vsel %vm2993_vm1, %v1756_v37, %v1690_v31 }
 0x177   : > { %v1621_v36 = vmul.f32 %v2973_v2, %v1213_v32 }
 0x178   : > { %1902 = vst [vmem:[%s3008_s24 + $0x88] sm:$0xff] %v1870_v34  ;;  %v1622_v39 = vmul.f32 %v2968_v57, %v1037_v35 }
 0x179   : > { %v1691_v38 = vadd.f32 %v2976_v7, %v1621_v36 }
 0x17a   : > { %v1692_v46 = vadd.f32 %v2971_v62, %v1622_v39 }
 0x17b   : > { %v1757_v40 = vmax.f32 %v1691_v38, 0.0  ;;  %v1125_v41 = vpop.f32.mrf.mxu2 }
 0x17c   : > { %v1214_v42 = vpop.f32.mrf.mxu3  ;;  %v950_v43 = vpop.f32.mrf.mxu0  ;;  %v1758_v52 = vmax.f32 %v1692_v46, 0.0 }
 0x17d   : > { %v1826_v45 = vsel %vm2997_vm2, %v1757_v40, %v1691_v38  ;;  %v1215_v47 = vadd.f32 %v1214_v42, %v1125_v41  ;;  %v1039_v48 = vpop.f32.mrf.mxu1 }
 0x17e   : > { %v1871_v49 = vpack.c.bf16 %v1826_v45, %v1825_v44  ;;  %v1040_v50 = vadd.f32 %v1039_v48, %v950_v43  ;;  %v1827_v60 = vsel %vm2993_vm1, %v1758_v52, %v1692_v46 }
 0x17f   : > { %v1623_v51 = vmul.f32 %v2973_v2, %v1215_v47 }
 0x180   : > { %1903 = vst [vmem:[%s3008_s24 + $0x90] sm:$0xff] %v1871_v49  ;;  %v1624_v54 = vmul.f32 %v2968_v57, %v1040_v50 }
 0x181   : > { %v1693_v53 = vadd.f32 %v2976_v7, %v1623_v51 }
 0x182   : > { %v1694_v63 = vadd.f32 %v2971_v62, %v1624_v54 }
 0x183   : > { %v1759_v55 = vmax.f32 %v1693_v53, 0.0  ;;  %v1128_v56 = vpop.f32.mrf.mxu2 }
 0x184   : > { %v1217_v58 = vpop.f32.mrf.mxu3  ;;  %v952_v59 = vpop.f32.mrf.mxu0  ;;  %v1760_v6 = vmax.f32 %v1694_v63, 0.0 }
 0x185   : > { %v1828_v61 = vsel %vm2997_vm2, %v1759_v55, %v1693_v53  ;;  %v1218_v0 = vadd.f32 %v1217_v58, %v1128_v56  ;;  %v1041_v1 = vpop.f32.mrf.mxu1 }
 0x186   : > { %v1872_v3 = vpack.c.bf16 %v1828_v61, %v1827_v60  ;;  %v1042_v4 = vadd.f32 %v1041_v1, %v952_v59  ;;  %v1829_v14 = vsel %vm2993_vm1, %v1760_v6, %v1694_v63 }
 0x187   : > { %v1625_v5 = vmul.f32 %v2973_v2, %v1218_v0 }
 0x188   : > { %1904 = vst [vmem:[%s3008_s24 + $0x98] sm:$0xff] %v1872_v3  ;;  %v1626_v9 = vmul.f32 %v2968_v57, %v1042_v4 }
 0x189   : > { %v1695_v8 = vadd.f32 %v2976_v7, %v1625_v5 }
 0x18a   : > { %v1696_v16 = vadd.f32 %v2971_v62, %v1626_v9 }
 0x18b   : > { %v1761_v10 = vmax.f32 %v1695_v8, 0.0  ;;  %v1130_v11 = vpop.f32.mrf.mxu2 }
 0x18c   : > { %v1219_v12 = vpop.f32.mrf.mxu3  ;;  %v955_v13 = vpop.f32.mrf.mxu0  ;;  %v1762_v24 = vmax.f32 %v1696_v16, 0.0 }
 0x18d   : > { %v1830_v15 = vsel %vm2997_vm2, %v1761_v10, %v1695_v8  ;;  %v1220_v17 = vadd.f32 %v1219_v12, %v1130_v11  ;;  %v1044_v18 = vpop.f32.mrf.mxu1 }
 0x18e   : > { %v1873_v19 = vpack.c.bf16 %v1830_v15, %v1829_v14  ;;  %v1045_v22 = vadd.f32 %v1044_v18, %v955_v13  ;;  %v1831_v31 = vsel %vm2993_vm1, %v1762_v24, %v1696_v16 }
 0x18f   : > { %v1627_v23 = vmul.f32 %v2973_v2, %v1220_v17 }
 0x190   : > { %1905 = vst [vmem:[%s3008_s24 + $0xa0] sm:$0xff] %v1873_v19  ;;  %v1628_v26 = vmul.f32 %v2968_v57, %v1045_v22 }
 0x191   : > { %v1697_v25 = vadd.f32 %v2976_v7, %v1627_v23 }
 0x192   : > { %v1698_v33 = vadd.f32 %v2971_v62, %v1628_v26 }
 0x193   : > { %v1763_v27 = vmax.f32 %v1697_v25, 0.0  ;;  %v1133_v28 = vpop.f32.mrf.mxu2 }
 0x194   : > { %v1222_v29 = vpop.f32.mrf.mxu3  ;;  %v957_v30 = vpop.f32.mrf.mxu0  ;;  %v1764_v39 = vmax.f32 %v1698_v33, 0.0 }
 0x195   : > { %v1832_v32 = vsel %vm2997_vm2, %v1763_v27, %v1697_v25  ;;  %v1223_v34 = vadd.f32 %v1222_v29, %v1133_v28  ;;  %v1046_v35 = vpop.f32.mrf.mxu1 }
 0x196   : > { %v1874_v36 = vpack.c.bf16 %v1832_v32, %v1831_v31  ;;  %v1047_v37 = vadd.f32 %v1046_v35, %v957_v30  ;;  %v1833_v46 = vsel %vm2993_vm1, %v1764_v39, %v1698_v33 }
 0x197   : > { %v1629_v38 = vmul.f32 %v2973_v2, %v1223_v34 }
 0x198   : > { %1906 = vst [vmem:[%s3008_s24 + $0xa8] sm:$0xff] %v1874_v36  ;;  %v1630_v41 = vmul.f32 %v2968_v57, %v1047_v37 }
 0x199   : > { %v1699_v40 = vadd.f32 %v2976_v7, %v1629_v38 }
 0x19a   : > { %v1700_v48 = vadd.f32 %v2971_v62, %v1630_v41 }
 0x19b   : > { %v1765_v42 = vmax.f32 %v1699_v40, 0.0  ;;  %v1135_v43 = vpop.f32.mrf.mxu2 }
 0x19c   : > { %v1224_v44 = vpop.f32.mrf.mxu3  ;;  %v960_v45 = vpop.f32.mrf.mxu0  ;;  %v1766_v54 = vmax.f32 %v1700_v48, 0.0 }
 0x19d   : > { %v1834_v47 = vsel %vm2997_vm2, %v1765_v42, %v1699_v40  ;;  %v1225_v49 = vadd.f32 %v1224_v44, %v1135_v43  ;;  %v1049_v50 = vpop.f32.mrf.mxu1 }
 0x19e   : > { %v1875_v51 = vpack.c.bf16 %v1834_v47, %v1833_v46  ;;  %v1050_v52 = vadd.f32 %v1049_v50, %v960_v45  ;;  %v1835_v63 = vsel %vm2993_vm1, %v1766_v54, %v1700_v48 }
 0x19f   : > { %v1631_v53 = vmul.f32 %v2973_v2, %v1225_v49 }
 0x1a0   : > { %1907 = vst [vmem:[%s3008_s24 + $0xb0] sm:$0xff] %v1875_v51  ;;  %v1632_v56 = vmul.f32 %v2968_v57, %v1050_v52 }
 0x1a1   : > { %v1701_v55 = vadd.f32 %v2976_v7, %v1631_v53 }
 0x1a2   : > { %v1702_v1 = vadd.f32 %v2971_v62, %v1632_v56 }
 0x1a3   : > { %v1767_v58 = vmax.f32 %v1701_v55, 0.0  ;;  %v1138_v59 = vpop.f32.mrf.mxu2 }
 0x1a4   : > { %v1227_v60 = vpop.f32.mrf.mxu3  ;;  %v962_v61 = vpop.f32.mrf.mxu0  ;;  %v1768_v9 = vmax.f32 %v1702_v1, 0.0 }
 0x1a5   : > { %v1836_v0 = vsel %vm2997_vm2, %v1767_v58, %v1701_v55  ;;  %v1228_v3 = vadd.f32 %v1227_v60, %v1138_v59  ;;  %v1051_v4 = vpop.f32.mrf.mxu1 }
 0x1a6   : > { %v1876_v5 = vpack.c.bf16 %v1836_v0, %v1835_v63  ;;  %v1052_v6 = vadd.f32 %v1051_v4, %v962_v61  ;;  %v1837_v16 = vsel %vm2993_vm1, %v1768_v9, %v1702_v1 }
 0x1a7   : > { %v1633_v8 = vmul.f32 %v2973_v2, %v1228_v3 }
 0x1a8   : > { %1908 = vst [vmem:[%s3008_s24 + $0xb8] sm:$0xff] %v1876_v5  ;;  %v1634_v11 = vmul.f32 %v2968_v57, %v1052_v6 }
 0x1a9   : > { %v1703_v10 = vadd.f32 %v2976_v7, %v1633_v8 }
 0x1aa   : > { %v1704_v18 = vadd.f32 %v2971_v62, %v1634_v11 }
 0x1ab   : > { %v1769_v12 = vmax.f32 %v1703_v10, 0.0  ;;  %v1140_v13 = vpop.f32.mrf.mxu2 }
 0x1ac   : > { %v1229_v14 = vpop.f32.mrf.mxu3  ;;  %v965_v15 = vpop.f32.mrf.mxu0  ;;  %v1770_v26 = vmax.f32 %v1704_v18, 0.0 }
 0x1ad   : > { %v1838_v17 = vsel %vm2997_vm2, %v1769_v12, %v1703_v10  ;;  %v1230_v19 = vadd.f32 %v1229_v14, %v1140_v13  ;;  %v1054_v22 = vpop.f32.mrf.mxu1 }
 0x1ae   : > { %v1877_v23 = vpack.c.bf16 %v1838_v17, %v1837_v16  ;;  %v1055_v24 = vadd.f32 %v1054_v22, %v965_v15  ;;  %v1839_v33 = vsel %vm2993_vm1, %v1770_v26, %v1704_v18 }
 0x1af   : > { %v1635_v25 = vmul.f32 %v2973_v2, %v1230_v19 }
 0x1b0   : > { %1909 = vst [vmem:[%s3008_s24 + $0xc0] sm:$0xff] %v1877_v23  ;;  %v1636_v28 = vmul.f32 %v2968_v57, %v1055_v24 }
 0x1b1   : > { %v1705_v27 = vadd.f32 %v2976_v7, %v1635_v25 }
 0x1b2   : > { %v1706_v35 = vadd.f32 %v2971_v62, %v1636_v28 }
 0x1b3   : > { %v1771_v29 = vmax.f32 %v1705_v27, 0.0  ;;  %v1143_v30 = vpop.f32.mrf.mxu2 }
 0x1b4   : > { %v1232_v31 = vpop.f32.mrf.mxu3  ;;  %v967_v32 = vpop.f32.mrf.mxu0  ;;  %v1772_v41 = vmax.f32 %v1706_v35, 0.0 }
 0x1b5   : > { %v1840_v34 = vsel %vm2997_vm2, %v1771_v29, %v1705_v27  ;;  %v1233_v36 = vadd.f32 %v1232_v31, %v1143_v30  ;;  %v1056_v37 = vpop.f32.mrf.mxu1 }
 0x1b6   : > { %v1878_v38 = vpack.c.bf16 %v1840_v34, %v1839_v33  ;;  %v1057_v39 = vadd.f32 %v1056_v37, %v967_v32  ;;  %v1841_v48 = vsel %vm2993_vm1, %v1772_v41, %v1706_v35 }
 0x1b7   : > { %v1637_v40 = vmul.f32 %v2973_v2, %v1233_v36 }
 0x1b8   : > { %1910 = vst [vmem:[%s3008_s24 + $0xc8] sm:$0xff] %v1878_v38  ;;  %v1638_v43 = vmul.f32 %v2968_v57, %v1057_v39 }
 0x1b9   : > { %v1707_v42 = vadd.f32 %v2976_v7, %v1637_v40 }
 0x1ba   : > { %v1708_v50 = vadd.f32 %v2971_v62, %v1638_v43 }
 0x1bb   : > { %v1773_v44 = vmax.f32 %v1707_v42, 0.0  ;;  %v1145_v45 = vpop.f32.mrf.mxu2 }
 0x1bc   : > { %v1234_v46 = vpop.f32.mrf.mxu3  ;;  %v970_v47 = vpop.f32.mrf.mxu0  ;;  %v1774_v56 = vmax.f32 %v1708_v50, 0.0 }
 0x1bd   : > { %v1842_v49 = vsel %vm2997_vm2, %v1773_v44, %v1707_v42  ;;  %v1235_v51 = vadd.f32 %v1234_v46, %v1145_v45  ;;  %v1059_v52 = vpop.f32.mrf.mxu1 }
 0x1be   : > { %v1879_v53 = vpack.c.bf16 %v1842_v49, %v1841_v48  ;;  %v1060_v54 = vadd.f32 %v1059_v52, %v970_v47  ;;  %v1843_v1 = vsel %vm2993_vm1, %v1774_v56, %v1708_v50 }
 0x1bf   : > { %v1639_v55 = vmul.f32 %v2973_v2, %v1235_v51 }
 0x1c0   : > { %1911 = vst [vmem:[%s3008_s24 + $0xd0] sm:$0xff] %v1879_v53  ;;  %v1640_v59 = vmul.f32 %v2968_v57, %v1060_v54 }
 0x1c1   : > { %v1709_v58 = vadd.f32 %v2976_v7, %v1639_v55 }
 0x1c2   : > { %v1710_v4 = vadd.f32 %v2971_v62, %v1640_v59 }
 0x1c3   : > { %v1775_v60 = vmax.f32 %v1709_v58, 0.0  ;;  %v1148_v61 = vpop.f32.mrf.mxu2 }
 0x1c4   : > { %v1237_v63 = vpop.f32.mrf.mxu3  ;;  %v972_v0 = vpop.f32.mrf.mxu0  ;;  %v1776_v11 = vmax.f32 %v1710_v4, 0.0 }
 0x1c5   : > { %v1844_v3 = vsel %vm2997_vm2, %v1775_v60, %v1709_v58  ;;  %v1238_v5 = vadd.f32 %v1237_v63, %v1148_v61  ;;  %v1061_v6 = vpop.f32.mrf.mxu1  ;;  %v2030_v61 = vld [vmem:[%s3008_s24 + $0x28] sm:$0xff] (%p2697_p6)  ;;  %v2032_v63 = vld [vmem:[%s3008_s24 + $0x30] sm:$0xff] (%p2697_p6) }
 0x1c6   : > { %v1880_v8 = vpack.c.bf16 %v1844_v3, %v1843_v1  ;;  %v1062_v9 = vadd.f32 %v1061_v6, %v972_v0  ;;  %v1845_v18 = vsel %vm2993_vm1, %v1776_v11, %v1710_v4  ;;  %v2034_v0 = vld [vmem:[%s3008_s24 + $0x38] sm:$0xff] (%p2697_p6)  ;;  %2031 = vst [vmem:[%s3367_s12 + $0x50] sm:$0xff] (%p2697_p6), %v2030_v61  ;;  %v2036_v1 = vld [vmem:[%s3008_s24 + $0x40] sm:$0xff] (%p2697_p6)  ;;  %v2038_v3 = vld [vmem:[%s3008_s24 + $0x48] sm:$0xff] (%p2697_p6) }
 0x1c7   : > { %v1641_v10 = vmul.f32 %v2973_v2, %v1238_v5  ;;  %2033 = vst [vmem:[%s3367_s12 + $0x60] sm:$0xff] (%p2697_p6), %v2032_v63  ;;  %v2040_v4 = vld [vmem:[%s3008_s24 + $0x50] sm:$0xff] (%p2697_p6)  ;;  %v2042_v5 = vld [vmem:[%s3008_s24 + $0x58] sm:$0xff] (%p2697_p6)  ;;  %v2044_v6 = vld [vmem:[%s3008_s24 + $0x60] sm:$0xff] (%p2697_p6) }
 0x1c8   : > { %1912 = vst [vmem:[%s3008_s24 + $0xd8] sm:$0xff] %v1880_v8  ;;  %v1642_v13 = vmul.f32 %v2968_v57, %v1062_v9  ;;  %v2046_v8 = vld [vmem:[%s3008_s24 + $0x68] sm:$0xff] (%p2697_p6)  ;;  %v2048_v9 = vld [vmem:[%s3008_s24 + $0x70] sm:$0xff] (%p2697_p6)  ;;  %v2052_v11 = vld [vmem:[%s3008_s24 + $0x80] sm:$0xff] (%p2697_p6) }
 0x1c9   : > { %v1711_v12 = vadd.f32 %v2976_v7, %v1641_v10  ;;  %2035 = vst [vmem:[%s3367_s12 + $0x70] sm:$0xff] (%p2697_p6), %v2034_v0  ;;  %v2050_v10 = vld [vmem:[%s3008_s24 + $0x78] sm:$0xff] (%p2697_p6) }
 0x1ca   : > { %v1712_v22 = vadd.f32 %v2971_v62, %v1642_v13  ;;  %2037 = vst [vmem:[%s3367_s12 + $0x80] sm:$0xff] (%p2697_p6), %v2036_v1  ;;  %v2056_v13 = vld [vmem:[%s3008_s24 + $0x90] sm:$0xff] (%p2697_p6) }
 0x1cb   : > { %v1777_v14 = vmax.f32 %v1711_v12, 0.0  ;;  %v1150_v15 = vpop.f32.mrf.mxu2  ;;  %2039 = vst [vmem:[%s3367_s12 + $0x90] sm:$0xff] (%p2697_p6), %v2038_v3 }
 0x1cc   : > { %v1239_v16 = vpop.f32.mrf.mxu3  ;;  %v975_v17 = vpop.f32.mrf.mxu0  ;;  %v1778_v28 = vmax.f32 %v1712_v22, 0.0  ;;  %2041 = vst [vmem:[%s3367_s12 + $0xa0] sm:$0xff] (%p2697_p6), %v2040_v4 }
 0x1cd   : > { %v1846_v19 = vsel %vm2997_vm2, %v1777_v14, %v1711_v12  ;;  %v1240_v23 = vadd.f32 %v1239_v16, %v1150_v15  ;;  %v1064_v24 = vpop.f32.mrf.mxu1  ;;  %2043 = vst [vmem:[%s3367_s12 + $0xb0] sm:$0xff] (%p2697_p6), %v2042_v5  ;;  %v2054_v12 = vld [vmem:[%s3008_s24 + $0x88] sm:$0xff] (%p2697_p6)  ;;  %v2058_v14 = vld [vmem:[%s3008_s24 + $0x98] sm:$0xff] (%p2697_p6)  ;;  %v2060_v15 = vld [vmem:[%s3008_s24 + $0xa0] sm:$0xff] (%p2697_p6) }
 0x1ce   : > { %v1881_v25 = vpack.c.bf16 %v1846_v19, %v1845_v18  ;;  %v1065_v26 = vadd.f32 %v1064_v24, %v975_v17  ;;  %v1847_v35 = vsel %vm2993_vm1, %v1778_v28, %v1712_v22  ;;  %2045 = vst [vmem:[%s3367_s12 + $0xc0] sm:$0xff] (%p2697_p6), %v2044_v6  ;;  %v2062_v16 = vld [vmem:[%s3008_s24 + $0xa8] sm:$0xff] (%p2697_p6)  ;;  %v2064_v17 = vld [vmem:[%s3008_s24 + $0xb0] sm:$0xff] (%p2697_p6)  ;;  %v2066_v18 = vld [vmem:[%s3008_s24 + $0xb8] sm:$0xff] (%p2697_p6) }
 0x1cf   : > { %v1643_v27 = vmul.f32 %v2973_v2, %v1240_v23  ;;  %2047 = vst [vmem:[%s3367_s12 + $0xd0] sm:$0xff] (%p2697_p6), %v2046_v8  ;;  %v2068_v19 = vld [vmem:[%s3008_s24 + $0xc0] sm:$0xff] (%p2697_p6)  ;;  %v2070_v22 = vld [vmem:[%s3008_s24 + $0xc8] sm:$0xff] (%p2697_p6)  ;;  %v2072_v23 = vld [vmem:[%s3008_s24 + $0xd0] sm:$0xff] (%p2697_p6) }
 0x1d0   : > { %1913 = vst [vmem:[%s3008_s24 + $0xe0] sm:$0xff] %v1881_v25  ;;  %v1644_v30 = vmul.f32 %v2968_v57, %v1065_v26  ;;  %v2074_v24 = vld [vmem:[%s3008_s24 + $0xd8] sm:$0xff] (%p2697_p6) }
 0x1d1   : > { %v1713_v29 = vadd.f32 %v2976_v7, %v1643_v27  ;;  %2049 = vst [vmem:[%s3367_s12 + $0xe0] sm:$0xff] (%p2697_p6), %v2048_v9 }
 0x1d2   : > { %v1714_v37 = vadd.f32 %v2971_v62, %v1644_v30  ;;  %2051 = vst [vmem:[%s3367_s12 + $0xf0] sm:$0xff] (%p2697_p6), %v2050_v10 }
 0x1d3   : > { %v1779_v31 = vmax.f32 %v1713_v29, 0.0  ;;  %v1153_v32 = vpop.f32.mrf.mxu2  ;;  %2053 = vst [vmem:[%s3367_s12 + $0x100] sm:$0xff] (%p2697_p6), %v2052_v11 }
 0x1d4   : > { %v1242_v33 = vpop.f32.mrf.mxu3  ;;  %v977_v34 = vpop.f32.mrf.mxu0  ;;  %v1780_v43 = vmax.f32 %v1714_v37, 0.0  ;;  %2055 = vst [vmem:[%s3367_s12 + $0x110] sm:$0xff] (%p2697_p6), %v2054_v12 }
 0x1d5   : > { %v1848_v36 = vsel %vm2997_vm2, %v1779_v31, %v1713_v29  ;;  %v1243_v38 = vadd.f32 %v1242_v33, %v1153_v32  ;;  %v1066_v39 = vpop.f32.mrf.mxu1  ;;  %2057 = vst [vmem:[%s3367_s12 + $0x120] sm:$0xff] (%p2697_p6), %v2056_v13 }
 0x1d6   : > { %v1882_v40 = vpack.c.bf16 %v1848_v36, %v1847_v35  ;;  %v1067_v41 = vadd.f32 %v1066_v39, %v977_v34  ;;  %v1849_v49 = vsel %vm2993_vm1, %v1780_v43, %v1714_v37  ;;  %2059 = vst [vmem:[%s3367_s12 + $0x130] sm:$0xff] (%p2697_p6), %v2058_v14 }
 0x1d7   : > { %v1645_v42 = vmul.f32 %v2973_v2, %v1243_v38  ;;  %2061 = vst [vmem:[%s3367_s12 + $0x140] sm:$0xff] (%p2697_p6), %v2060_v15  ;;  %v2076_v25 = vld [vmem:[%s3008_s24 + $0xe0] sm:$0xff] (%p2697_p6) }
 0x1d8   : > { %1914 = vst [vmem:[%s3008_s24 + $0xe8] sm:$0xff] %v1882_v40  ;;  %v1646_v45 = vmul.f32 %v2968_v57, %v1067_v41 }
 0x1d9   : > { %v1715_v44 = vadd.f32 %v2976_v7, %v1645_v42  ;;  %2063 = vst [vmem:[%s3367_s12 + $0x150] sm:$0xff] (%p2697_p6), %v2062_v16 }
 0x1da   : > { %v1716_v51 = vadd.f32 %v2971_v62, %v1646_v45  ;;  %v2020_v62 = vld [vmem:[%s3008_s24] sm:$0xff] (%p2697_p6)  ;;  %2065 = vst [vmem:[%s3367_s12 + $0x160] sm:$0xff] (%p2697_p6), %v2064_v17 }
 0x1db   : > { %v1781_v46 = vmax.f32 %v1715_v44, 0.0  ;;  %v1155_v47 = vpop.f32.mrf.mxu2  ;;  %2021 = vst [vmem:[%s3367_s12] sm:$0xff] (%p2697_p6), %v2020_v62 }
 0x1dc   : > { %v1244_v48 = vpop.f32.mrf.mxu3  ;;  %v1782_v55 = vmax.f32 %v1716_v51, 0.0  ;;  %2067 = vst [vmem:[%s3367_s12 + $0x170] sm:$0xff] (%p2697_p6), %v2066_v18 }
 0x1dd   : > { %v1850_v50 = vsel %vm2997_vm2, %v1781_v46, %v1715_v44  ;;  %v1245_v52 = vadd.f32 %v1244_v48, %v1155_v47  ;;  %2069 = vst [vmem:[%s3367_s12 + $0x180] sm:$0xff] (%p2697_p6), %v2068_v19 }
 0x1de   : > { %v1883_v53 = vpack.c.bf16 %v1850_v50, %v1849_v49  ;;  %v1851_v58 = vsel %vm2993_vm1, %v1782_v55, %v1716_v51  ;;  %2071 = vst [vmem:[%s3367_s12 + $0x190] sm:$0xff] (%p2697_p6), %v2070_v22 }
 0x1df   : > { %v1647_v54 = vmul.f32 %v2973_v2, %v1245_v52  ;;  %v2022_v2 = vld [vmem:[%s3008_s24 + $0x8] sm:$0xff] (%p2697_p6)  ;;  %2073 = vst [vmem:[%s3367_s12 + $0x1a0] sm:$0xff] (%p2697_p6), %v2072_v23 }
 0x1e0   : > { %1915 = vst [vmem:[%s3008_s24 + $0xf0] sm:$0xff] %v1883_v53  ;;  %v2078_v26 = vld [vmem:[%s3008_s24 + $0xe8] sm:$0xff] (%p2697_p6) }
 0x1e1   : > { %v1717_v57 = vadd.f32 %v2976_v7, %v1647_v54  ;;  %v2024_v7 = vld [vmem:[%s3008_s24 + $0x10] sm:$0xff] (%p2697_p6)  ;;  %2023 = vst [vmem:[%s3367_s12 + $0x10] sm:$0xff] (%p2697_p6), %v2022_v2 }
 0x1e2   : > { %2025 = vst [vmem:[%s3367_s12 + $0x20] sm:$0xff] (%p2697_p6), %v2024_v7 }
 0x1e3   : > { %v1783_v56 = vmax.f32 %v1717_v57, 0.0  ;;  %2075 = vst [vmem:[%s3367_s12 + $0x1b0] sm:$0xff] (%p2697_p6), %v2074_v24 }
 0x1e4   : > { %1923 = sbr.rel (!%p2697_p6) target bundleno = 497 (0x1f1), region = 94  ;;  %2077 = vst [vmem:[%s3367_s12 + $0x1c0] sm:$0xff] (%p2697_p6), %v2076_v25 }
 0x1e5   : > { %v1852_v59 = vsel %vm2997_vm2, %v1783_v56, %v1717_v57  ;;  %2079 = vst [vmem:[%s3367_s12 + $0x1d0] sm:$0xff] (%p2697_p6), %v2078_v26 }
 0x1e6   : > { %v1884_v60 = vpack.c.bf16 %v1852_v59, %v1851_v58 }
 0x1e7   : > { %v2080_v27 = vld [vmem:[%s3008_s24 + $0xf0] sm:$0xff] (%p2697_p6) }
 0x1e8   : > { %1916 = vst [vmem:[%s3008_s24 + $0xf8] sm:$0xff] %v1884_v60 }
 0x1e9   : > { %2081 = vst [vmem:[%s3367_s12 + $0x1e0] sm:$0xff] %v2080_v27 }
 0x1ef   : > { %v2082_v28 = vld [vmem:[%s3008_s24 + $0xf8] sm:$0xff] }
 0x1f0   : > { %2083 = vst [vmem:[%s3367_s12 + $0x1f0] sm:$0xff] %v2082_v28 }
 0x1f1 PF: > { %s15_s22 = sadd.s32 1, %s2629_s22   ;;  %s3457_s18 = smov %s2617_s19 }
 0x1f2   : > { %p12_p12 = scmp.ge.s32.totalorder %s15_s22, 4   ;;  %s3458_s19 = smov %s2702_s28 }
 0x1f3   : > { %s3459_s20 = smov %s2625_s21  ;;  %s3460_s21 = smov %s3462_s23 }
 0x1f4   :  { %14 = sbr.rel (!%p12_p12) target bundleno = 3 (0x3), region = 175 }

// kernel: _residual_block_forward.3
= control target key start
LH: loop header
LB: loop body
LE: loop exit
PB: predicated region body
PF: predicated region fallthrough
CT: control target
= control target key end

     0   :  { %s2889_s0 = inlined_call_operand.vmem [shape: bf16[256,256], index: 0, kind: input, shape index: {}]   ;;  %s2890_s1 = inlined_call_operand.vmem [shape: bf16[256,256], index: 1, kind: input, shape index: {}]   ;;  %s2891_s2 = inlined_call_operand.vmem [shape: f32[1,256], index: 2, kind: input, shape index: {}]   ;;  %s2892_s3 = inlined_call_operand.vmem [shape: f32[1,256], index: 3, kind: input, shape index: {}]   ;;  %s2893_s4 = inlined_call_operand.vmem [shape: bf16[256,512], index: 4, kind: input, shape index: {}]   ;;  %s2894_s5 = inlined_call_operand.vmem [shape: f32[256,256], index: 5, kind: output, shape index: {}]  }
   0x1   :  { %v1911_v0 = vld [vmem:[%s2890_s1 + $0x70] sm:$0xf]  ;;  %v2028_v1 = vld [vmem:[%s2890_s1 + $0x74] sm:$0xf0]  ;;  %v2027_v5 = vld [vmem:[%s2890_s1 + $0x74] sm:$0xf] }
   0x2   :  { %v1975_v2 = vld [vmem:[%s2890_s1 + $0xf0] sm:$0xf]  ;;  %v1912_v3 = vor.u32 %v2028_v1, %v1911_v0  ;;  %v2044_v4 = vld [vmem:[%s2890_s1 + $0xf4] sm:$0xf0]  ;;  %v1913_v6 = vld [vmem:[%s2890_s1 + $0x78] sm:$0xf0] }
   0x3   :  { %v1976_v7 = vor.u32 %v2044_v4, %v1975_v2  ;;  %v1916_v8 = vor.u32 %v2027_v5, %v1913_v6  ;;  %v2043_v9 = vld [vmem:[%s2890_s1 + $0xf4] sm:$0xf]  ;;  %v1977_v10 = vld [vmem:[%s2890_s1 + $0xf8] sm:$0xf0]  ;;  %v1903_v11 = vld [vmem:[%s2890_s1 + $0x60] sm:$0xf] }
   0x4   :  { %569 = vmatpush.bf16.msra.mxu0 %v1912_v3  ;;  %v1980_v12 = vor.u32 %v2043_v9, %v1977_v10  ;;  %v2026_v13 = vld [vmem:[%s2890_s1 + $0x64] sm:$0xf0]  ;;  %v1967_v14 = vld [vmem:[%s2890_s1 + $0xe0] sm:$0xf]  ;;  %v2025_v18 = vld [vmem:[%s2890_s1 + $0x64] sm:$0xf] }
   0x5   :  { %v2042_v15 = vld [vmem:[%s2890_s1 + $0xe4] sm:$0xf0]  ;;  %658 = vmatpush.bf16.msra.mxu1 %v1976_v7  ;;  %747 = vmatpush.bf16.msra.mxu2 %v1916_v8  ;;  %v1904_v16 = vor.u32 %v2026_v13, %v1903_v11  ;;  %v1905_v19 = vld [vmem:[%s2890_s1 + $0x68] sm:$0xf0]  ;;  %v2041_v20 = vld [vmem:[%s2890_s1 + $0xe4] sm:$0xf] }
   0x6   :  { %v1968_v17 = vor.u32 %v2042_v15, %v1967_v14  ;;  %836 = vmatpush.bf16.msra.mxu3 %v1980_v12  ;;  %v1908_v21 = vor.u32 %v2025_v18, %v1905_v19  ;;  %v1969_v22 = vld [vmem:[%s2890_s1 + $0xe8] sm:$0xf0]  ;;  %v1895_v23 = vld [vmem:[%s2890_s1 + $0x50] sm:$0xf]  ;;  %v2024_v24 = vld [vmem:[%s2890_s1 + $0x54] sm:$0xf0] }
   0x7   :  { %v1972_v25 = vor.u32 %v2041_v20, %v1969_v22  ;;  %v1959_v26 = vld [vmem:[%s2890_s1 + $0xd0] sm:$0xf]  ;;  %v2040_v27 = vld [vmem:[%s2890_s1 + $0xd4] sm:$0xf0]  ;;  %v2023_v28 = vld [vmem:[%s2890_s1 + $0x54] sm:$0xf]  ;;  %v1896_v29 = vor.u32 %v2024_v24, %v1895_v23 }
   0x8   :  { %570 = vmatpush.bf16.msra.mxu0 %v1904_v16  ;;  %v1897_v30 = vld [vmem:[%s2890_s1 + $0x58] sm:$0xf0]  ;;  %v2039_v31 = vld [vmem:[%s2890_s1 + $0xd4] sm:$0xf]  ;;  %v1960_v33 = vor.u32 %v2040_v27, %v1959_v26  ;;  %v1887_v35 = vld [vmem:[%s2890_s1 + $0x40] sm:$0xf] }
   0x9   :  { %v1961_v32 = vld [vmem:[%s2890_s1 + $0xd8] sm:$0xf0]  ;;  %659 = vmatpush.bf16.msra.mxu1 %v1968_v17  ;;  %748 = vmatpush.bf16.msra.mxu2 %v1908_v21  ;;  %v1900_v34 = vor.u32 %v2023_v28, %v1897_v30  ;;  %v2022_v36 = vld [vmem:[%s2890_s1 + $0x44] sm:$0xf0]  ;;  %v1951_v37 = vld [vmem:[%s2890_s1 + $0xc0] sm:$0xf] }
   0xa   :  { %837 = vmatpush.bf16.msra.mxu3 %v1972_v25  ;;  %v1964_v38 = vor.u32 %v2039_v31, %v1961_v32  ;;  %v2038_v39 = vld [vmem:[%s2890_s1 + $0xc4] sm:$0xf0]  ;;  %v2021_v40 = vld [vmem:[%s2890_s1 + $0x44] sm:$0xf]  ;;  %v1889_v41 = vld [vmem:[%s2890_s1 + $0x48] sm:$0xf0]  ;;  %v1888_v44 = vor.u32 %v2022_v36, %v1887_v35 }
   0xb   :  { %v2037_v42 = vld [vmem:[%s2890_s1 + $0xc4] sm:$0xf]  ;;  %v1953_v43 = vld [vmem:[%s2890_s1 + $0xc8] sm:$0xf0]  ;;  %v1952_v45 = vor.u32 %v2038_v39, %v1951_v37  ;;  %v1892_v46 = vor.u32 %v2021_v40, %v1889_v41  ;;  %v1879_v47 = vld [vmem:[%s2890_s1 + $0x30] sm:$0xf] }
   0xc   :  { %571 = vmatpush.bf16.msra.mxu0 %v1896_v29  ;;  %v2020_v48 = vld [vmem:[%s2890_s1 + $0x34] sm:$0xf0]  ;;  %v1943_v49 = vld [vmem:[%s2890_s1 + $0xb0] sm:$0xf]  ;;  %v1956_v50 = vor.u32 %v2037_v42, %v1953_v43  ;;  %v2019_v52 = vld [vmem:[%s2890_s1 + $0x34] sm:$0xf] }
   0xd   :  { %660 = vmatpush.bf16.msra.mxu1 %v1960_v33  ;;  %749 = vmatpush.bf16.msra.mxu2 %v1900_v34  ;;  %v2036_v51 = vld [vmem:[%s2890_s1 + $0xb4] sm:$0xf0]  ;;  %v1881_v53 = vld [vmem:[%s2890_s1 + $0x38] sm:$0xf0]  ;;  %v2035_v54 = vld [vmem:[%s2890_s1 + $0xb4] sm:$0xf]  ;;  %v1880_v56 = vor.u32 %v2020_v48, %v1879_v47 }
   0xe   :  { %838 = vmatpush.bf16.msra.mxu3 %v1964_v38  ;;  %v1945_v55 = vld [vmem:[%s2890_s1 + $0xb8] sm:$0xf0]  ;;  %v1944_v57 = vor.u32 %v2036_v51, %v1943_v49  ;;  %v1884_v58 = vor.u32 %v2019_v52, %v1881_v53  ;;  %v1871_v59 = vld [vmem:[%s2890_s1 + $0x20] sm:$0xf]  ;;  %v2018_v60 = vld [vmem:[%s2890_s1 + $0x24] sm:$0xf0] }
   0xf   :  { %v1935_v61 = vld [vmem:[%s2890_s1 + $0xa0] sm:$0xf]  ;;  %v1948_v62 = vor.u32 %v2035_v54, %v1945_v55  ;;  %v2034_v63 = vld [vmem:[%s2890_s1 + $0xa4] sm:$0xf0]  ;;  %v2017_v0 = vld [vmem:[%s2890_s1 + $0x24] sm:$0xf]  ;;  %v1872_v4 = vor.u32 %v2018_v60, %v1871_v59 }
  0x10   :  { %572 = vmatpush.bf16.msra.mxu0 %v1888_v44  ;;  %v1873_v1 = vld [vmem:[%s2890_s1 + $0x28] sm:$0xf0]  ;;  %v2033_v2 = vld [vmem:[%s2890_s1 + $0xa4] sm:$0xf]  ;;  %v1936_v5 = vor.u32 %v2034_v63, %v1935_v61  ;;  %v1863_v7 = vld [vmem:[%s2890_s1 + $0x10] sm:$0xf] }
  0x11   :  { %661 = vmatpush.bf16.msra.mxu1 %v1952_v45  ;;  %750 = vmatpush.bf16.msra.mxu2 %v1892_v46  ;;  %v1937_v3 = vld [vmem:[%s2890_s1 + $0xa8] sm:$0xf0]  ;;  %v1876_v6 = vor.u32 %v2017_v0, %v1873_v1  ;;  %v2016_v8 = vld [vmem:[%s2890_s1 + $0x14] sm:$0xf0]  ;;  %v1927_v9 = vld [vmem:[%s2890_s1 + $0x90] sm:$0xf] }
  0x12   :  { %839 = vmatpush.bf16.msra.mxu3 %v1956_v50  ;;  %v1940_v10 = vor.u32 %v2033_v2, %v1937_v3  ;;  %v2032_v11 = vld [vmem:[%s2890_s1 + $0x94] sm:$0xf0]  ;;  %v2015_v12 = vld [vmem:[%s2890_s1 + $0x14] sm:$0xf]  ;;  %v1865_v13 = vld [vmem:[%s2890_s1 + $0x18] sm:$0xf0]  ;;  %v1864_v16 = vor.u32 %v2016_v8, %v1863_v7 }
  0x13   :  { %v2031_v14 = vld [vmem:[%s2890_s1 + $0x94] sm:$0xf]  ;;  %v1929_v15 = vld [vmem:[%s2890_s1 + $0x98] sm:$0xf0]  ;;  %v1928_v17 = vor.u32 %v2032_v11, %v1927_v9  ;;  %v1868_v18 = vor.u32 %v2015_v12, %v1865_v13  ;;  %v1855_v19 = vld [vmem:[%s2890_s1] sm:$0xf] }
  0x14   :  { %573 = vmatpush.bf16.msra.mxu0 %v1880_v56  ;;  %v2014_v20 = vld [vmem:[%s2890_s1 + $0x4] sm:$0xf0]  ;;  %v1919_v21 = vld [vmem:[%s2890_s1 + $0x80] sm:$0xf]  ;;  %v1932_v22 = vor.u32 %v2031_v14, %v1929_v15  ;;  %v2013_v24 = vld [vmem:[%s2890_s1 + $0x4] sm:$0xf] }
  0x15   :  { %662 = vmatpush.bf16.msra.mxu1 %v1944_v57  ;;  %751 = vmatpush.bf16.msra.mxu2 %v1884_v58  ;;  %v2030_v23 = vld [vmem:[%s2890_s1 + $0x84] sm:$0xf0]  ;;  %v1857_v25 = vld [vmem:[%s2890_s1 + $0x8] sm:$0xf0]  ;;  %v2029_v26 = vld [vmem:[%s2890_s1 + $0x84] sm:$0xf]  ;;  %v1856_v28 = vor.u32 %v2014_v20, %v1855_v19 }
  0x16   :  { %840 = vmatpush.bf16.msra.mxu3 %v1948_v62  ;;  %v1921_v27 = vld [vmem:[%s2890_s1 + $0x88] sm:$0xf0]  ;;  %v1727_v29 = vld [vmem:[%s2889_s0] sm:$0xf]  ;;  %v1982_v30 = vld [vmem:[%s2889_s0 + $0x4] sm:$0xf0]  ;;  %v1920_v31 = vor.u32 %v2030_v23, %v1919_v21  ;;  %v1860_v32 = vor.u32 %v2013_v24, %v1857_v25 }
  0x17   :  { %v1981_v33 = vld [vmem:[%s2889_s0 + $0x4] sm:$0xf]  ;;  %v1729_v34 = vld [vmem:[%s2889_s0 + $0x8] sm:$0xf0]  ;;  %v1924_v35 = vor.u32 %v2029_v26, %v1921_v27  ;;  %v1728_v36 = vor.u32 %v1982_v30, %v1727_v29  ;;  %v1735_v38 = vld [vmem:[%s2889_s0 + $0x10] sm:$0xf] }
  0x18   :  { %574 = vmatpush.bf16.msra.mxu0 %v1872_v4  ;;  %v1732_v37 = vor.u32 %v1981_v33, %v1729_v34  ;;  %v1984_v39 = vld [vmem:[%s2889_s0 + $0x14] sm:$0xf0]  ;;  %v1983_v40 = vld [vmem:[%s2889_s0 + $0x14] sm:$0xf]  ;;  %v1737_v41 = vld [vmem:[%s2889_s0 + $0x18] sm:$0xf0] }
  0x19   :  { %663 = vmatpush.bf16.msra.mxu1 %v1936_v5  ;;  %752 = vmatpush.bf16.msra.mxu2 %v1876_v6  ;;  %v1736_v42 = vor.u32 %v1984_v39, %v1735_v38  ;;  %v1740_v43 = vor.u32 %v1983_v40, %v1737_v41  ;;  %v1743_v44 = vld [vmem:[%s2889_s0 + $0x20] sm:$0xf]  ;;  %v1986_v45 = vld [vmem:[%s2889_s0 + $0x24] sm:$0xf0]  ;;  %v1985_v46 = vld [vmem:[%s2889_s0 + $0x24] sm:$0xf] }
  0x1a   :  { %841 = vmatpush.bf16.msra.mxu3 %v1940_v10  ;;  %v1745_v47 = vld [vmem:[%s2889_s0 + $0x28] sm:$0xf0]  ;;  %v1744_v48 = vor.u32 %v1986_v45, %v1743_v44  ;;  %v1751_v50 = vld [vmem:[%s2889_s0 + $0x30] sm:$0xf]  ;;  %v1988_v51 = vld [vmem:[%s2889_s0 + $0x34] sm:$0xf0] }
  0x1b   :  { %v1748_v49 = vor.u32 %v1985_v46, %v1745_v47  ;;  %v1987_v52 = vld [vmem:[%s2889_s0 + $0x34] sm:$0xf]  ;;  %v1753_v53 = vld [vmem:[%s2889_s0 + $0x38] sm:$0xf0]  ;;  %v1752_v54 = vor.u32 %v1988_v51, %v1751_v50  ;;  %v1759_v56 = vld [vmem:[%s2889_s0 + $0x40] sm:$0xf] }
  0x1c   :  { %575 = vmatpush.bf16.msra.mxu0 %v1864_v16  ;;  %v1756_v55 = vor.u32 %v1987_v52, %v1753_v53  ;;  %v1990_v57 = vld [vmem:[%s2889_s0 + $0x44] sm:$0xf0]  ;;  %v1989_v58 = vld [vmem:[%s2889_s0 + $0x44] sm:$0xf]  ;;  %v1761_v59 = vld [vmem:[%s2889_s0 + $0x48] sm:$0xf0] }
  0x1d   :  { %664 = vmatpush.bf16.msra.mxu1 %v1928_v17  ;;  %753 = vmatpush.bf16.msra.mxu2 %v1868_v18  ;;  %v1760_v60 = vor.u32 %v1990_v57, %v1759_v56  ;;  %v1764_v61 = vor.u32 %v1989_v58, %v1761_v59  ;;  %v1767_v62 = vld [vmem:[%s2889_s0 + $0x50] sm:$0xf]  ;;  %v1992_v63 = vld [vmem:[%s2889_s0 + $0x54] sm:$0xf0]  ;;  %v1991_v0 = vld [vmem:[%s2889_s0 + $0x54] sm:$0xf] }
  0x1e   :  { %842 = vmatpush.bf16.msra.mxu3 %v1932_v22  ;;  %v1769_v1 = vld [vmem:[%s2889_s0 + $0x58] sm:$0xf0]  ;;  %v1768_v2 = vor.u32 %v1992_v63, %v1767_v62  ;;  %v1775_v4 = vld [vmem:[%s2889_s0 + $0x60] sm:$0xf]  ;;  %v1994_v5 = vld [vmem:[%s2889_s0 + $0x64] sm:$0xf0] }
  0x1f   :  { %v1772_v3 = vor.u32 %v1991_v0, %v1769_v1  ;;  %v1993_v6 = vld [vmem:[%s2889_s0 + $0x64] sm:$0xf]  ;;  %v1777_v7 = vld [vmem:[%s2889_s0 + $0x68] sm:$0xf0]  ;;  %v1776_v8 = vor.u32 %v1994_v5, %v1775_v4  ;;  %v1783_v10 = vld [vmem:[%s2889_s0 + $0x70] sm:$0xf] }
  0x20   :  { %576 = vmatpush.bf16.msra.mxu0 %v1856_v28  ;;  %v1780_v9 = vor.u32 %v1993_v6, %v1777_v7  ;;  %v1996_v11 = vld [vmem:[%s2889_s0 + $0x74] sm:$0xf0]  ;;  %v1995_v12 = vld [vmem:[%s2889_s0 + $0x74] sm:$0xf]  ;;  %v1785_v13 = vld [vmem:[%s2889_s0 + $0x78] sm:$0xf0] }
  0x21   :  { %665 = vmatpush.bf16.msra.mxu1 %v1920_v31  ;;  %754 = vmatpush.bf16.msra.mxu2 %v1860_v32  ;;  %v1784_v14 = vor.u32 %v1996_v11, %v1783_v10  ;;  %v1788_v15 = vor.u32 %v1995_v12, %v1785_v13  ;;  %v1791_v16 = vld [vmem:[%s2889_s0 + $0x80] sm:$0xf]  ;;  %v1998_v17 = vld [vmem:[%s2889_s0 + $0x84] sm:$0xf0]  ;;  %v1997_v19 = vld [vmem:[%s2889_s0 + $0x84] sm:$0xf] }
  0x22   :  { %843 = vmatpush.bf16.msra.mxu3 %v1924_v35  ;;  %v1256_v18 = vld [vmem:[%s2891_s2] sm:$0x3]  ;;  %v1793_v20 = vld [vmem:[%s2889_s0 + $0x88] sm:$0xf0]  ;;  %v1792_v22 = vor.u32 %v1998_v17, %v1791_v16  ;;  %v1694_v40 = vld [vmem:[%s2893_s4 + $0x18] sm:$0xff] }
  0x23   :  { %577 = vmatmul.bf16.vlgmr.msra.gmra.mxu0 %v1728_v36  ;;  %v1326_v21 = vld [vmem:[%s2892_s3] sm:$0x3]  ;;  %v2381_v24 = vperm.slane %v1256_v18, 0  ;;  %v1796_v25 = vor.u32 %v1997_v19, %v1793_v20  ;;  %v1693_v26 = vld [vmem:[%s2893_s4 + $0x8] sm:$0xff]  ;;  %v2390_v34 = vperm.slane %v1256_v18, 1  ;;  %v1430_v47 = vunpack.c.l.bf16 %v1694_v40  ;;  %v1696_v16 = vld [vmem:[%s2893_s4 + $0x38] sm:$0xff] }
  0x24   :  { %666 = vmatmul.bf16.vlgmr.msra.gmra.mxu1 %v1732_v37  ;;  %755 = vmatmul.bf16.vlgmr.msra.gmra.mxu2 %v1728_v36  ;;  %v2386_v29 = vperm.slane %v1326_v21, 0  ;;  %v1428_v31 = vunpack.c.l.bf16 %v1693_v26  ;;  %v2392_v39 = vperm.slane %v1326_v21, 1  ;;  %v1429_v45 = vunpack.c.h.bf16 %v1693_v26  ;;  %v1999_v51 = vld [vmem:[%s2889_s0 + $0x94] sm:$0xf]  ;;  %v1801_v52 = vld [vmem:[%s2889_s0 + $0x98] sm:$0xf0] }
  0x25   :  { %844 = vmatmul.bf16.vlgmr.msra.gmra.mxu3 %v1732_v37  ;;  %v1695_v63 = vld [vmem:[%s2893_s4 + $0x28] sm:$0xff]  ;;  %v1431_v4 = vunpack.c.h.bf16 %v1694_v40 }
  0x26   :  { %v1432_v6 = vunpack.c.l.bf16 %v1695_v63  ;;  %v1433_v21 = vunpack.c.h.bf16 %v1695_v63  ;;  %v2002_v26 = vld [vmem:[%s2889_s0 + $0xa4] sm:$0xf0] }
  0x33   :  { %582 = vmatmul.bf16.gmra.mxu0 %v1736_v42 }
  0x34   :  { %671 = vmatmul.bf16.gmra.mxu1 %v1740_v43  ;;  %760 = vmatmul.bf16.gmra.mxu2 %v1736_v42 }
  0x35   :  { %849 = vmatmul.bf16.gmra.mxu3 %v1740_v43 }
  0x43   :  { %587 = vmatmul.bf16.gmra.mxu0 %v1744_v48 }
  0x44   :  { %676 = vmatmul.bf16.gmra.mxu1 %v1748_v49  ;;  %765 = vmatmul.bf16.gmra.mxu2 %v1744_v48  ;;  %v1799_v48 = vld [vmem:[%s2889_s0 + $0x90] sm:$0xf] }
  0x45   :  { %854 = vmatmul.bf16.gmra.mxu3 %v1748_v49  ;;  %v2000_v49 = vld [vmem:[%s2889_s0 + $0x94] sm:$0xf0] }
  0x46   :  { %v1800_v56 = vor.u32 %v2000_v49, %v1799_v48  ;;  %v1435_v48 = vunpack.c.h.bf16 %v1696_v16 }
  0x53   :  { %592 = vmatmul.bf16.gmra.mxu0 %v1752_v54 }
  0x54   :  { %681 = vmatmul.bf16.gmra.mxu1 %v1756_v55  ;;  %770 = vmatmul.bf16.gmra.mxu2 %v1752_v54 }
  0x55   :  { %859 = vmatmul.bf16.gmra.mxu3 %v1756_v55 }
  0x63   :  { %597 = vmatmul.bf16.gmra.mxu0 %v1760_v60 }
  0x64   :  { %686 = vmatmul.bf16.gmra.mxu1 %v1764_v61  ;;  %775 = vmatmul.bf16.gmra.mxu2 %v1760_v60  ;;  %v1804_v60 = vor.u32 %v1999_v51, %v1801_v52 }
  0x65   :  { %864 = vmatmul.bf16.gmra.mxu3 %v1764_v61 }
  0x73   :  { %602 = vmatmul.bf16.gmra.mxu0 %v1768_v2 }
  0x74   :  { %691 = vmatmul.bf16.gmra.mxu1 %v1772_v3  ;;  %780 = vmatmul.bf16.gmra.mxu2 %v1768_v2 }
  0x75   :  { %869 = vmatmul.bf16.gmra.mxu3 %v1772_v3 }
  0x83   :  { %607 = vmatmul.bf16.gmra.mxu0 %v1776_v8 }
  0x84   :  { %696 = vmatmul.bf16.gmra.mxu1 %v1780_v9  ;;  %785 = vmatmul.bf16.gmra.mxu2 %v1776_v8 }
  0x85   :  { %874 = vmatmul.bf16.gmra.mxu3 %v1780_v9 }
  0x93   :  { %612 = vmatmul.bf16.gmra.mxu0 %v1784_v14 }
  0x94   :  { %701 = vmatmul.bf16.gmra.mxu1 %v1788_v15  ;;  %790 = vmatmul.bf16.gmra.mxu2 %v1784_v14 }
  0x95   :  { %879 = vmatmul.bf16.gmra.mxu3 %v1788_v15 }
  0xa0   :  { %v578_v23 = vpop.f32.mrf.mxu0 }
  0xa1   :  { %v667_v27 = vpop.f32.mrf.mxu1 }
  0xa2   :  { %v668_v28 = vadd.f32 %v667_v27, %v578_v23  ;;  %v1434_v23 = vunpack.c.l.bf16 %v1696_v16 }
  0xa3   :  { %617 = vmatmul.bf16.gmra.mxu0 %v1792_v22 }
  0xa4   :  { %v1262_v30 = vmul.f32 %v2381_v24, %v668_v28  ;;  %706 = vmatmul.bf16.gmra.mxu1 %v1796_v25  ;;  %795 = vmatmul.bf16.gmra.mxu2 %v1792_v22  ;;  %v2001_v28 = vld [vmem:[%s2889_s0 + $0xa4] sm:$0xf] }
  0xa5   :  { %884 = vmatmul.bf16.gmra.mxu3 %v1796_v25  ;;  %v1807_v25 = vld [vmem:[%s2889_s0 + $0xa0] sm:$0xf] }
  0xa6   :  { %v1332_v32 = vadd.f32 %v2386_v29, %v1262_v30  ;;  %v1809_v30 = vld [vmem:[%s2889_s0 + $0xa8] sm:$0xf0] }
  0xa7   :  { %v756_v33 = vpop.f32.mrf.mxu2  ;;  %v1812_v40 = vor.u32 %v2001_v28, %v1809_v30 }
  0xa8   :  { %v1492_v35 = vadd.f32 %v1428_v31, %v1332_v32  ;;  %v845_v36 = vpop.f32.mrf.mxu3  ;;  %v580_v37 = vpop.f32.mrf.mxu0 }
  0xa9   :  { %v846_v38 = vadd.f32 %v845_v36, %v756_v33  ;;  %v669_v41 = vpop.f32.mrf.mxu1 }
  0xaa   :  { %v1556_v42 = vmax.f32 %v1492_v35, 0.0  ;;  %v670_v43 = vadd.f32 %v669_v41, %v580_v37  ;;  %v1808_v35 = vor.u32 %v2002_v26, %v1807_v25 }
  0xab   :  { %v1263_v44 = vmul.f32 %v2390_v34, %v846_v38 }
  0xac   :  { %1620 = vst [vmem:[%s2894_s5] sm:$0xff] %v1556_v42  ;;  %v1264_v46 = vmul.f32 %v2381_v24, %v670_v43  ;;  %v1697_v43 = vld [vmem:[%s2893_s4 + $0x48] sm:$0xff] }
  0xad   :  { %v1333_v50 = vadd.f32 %v2392_v39, %v1263_v44 }
  0xae   :  { %v1334_v53 = vadd.f32 %v2386_v29, %v1264_v46 }
  0xaf   :  { %v1493_v54 = vadd.f32 %v1429_v45, %v1333_v50  ;;  %v758_v55 = vpop.f32.mrf.mxu2  ;;  %v1436_v50 = vunpack.c.l.bf16 %v1697_v43 }
  0xb0   :  { %v1494_v57 = vadd.f32 %v1430_v47, %v1334_v53  ;;  %v847_v58 = vpop.f32.mrf.mxu3  ;;  %v583_v59 = vpop.f32.mrf.mxu0 }
  0xb1   :  { %v1557_v61 = vmax.f32 %v1493_v54, 0.0  ;;  %v848_v62 = vadd.f32 %v847_v58, %v758_v55  ;;  %v672_v0 = vpop.f32.mrf.mxu1 }
  0xb2   :  { %v1558_v1 = vmax.f32 %v1494_v57, 0.0  ;;  %v673_v2 = vadd.f32 %v672_v0, %v583_v59 }
  0xb3   :  { %1621 = vst [vmem:[%s2894_s5 + $0x8] sm:$0xff] %v1557_v61  ;;  %v1265_v3 = vmul.f32 %v2390_v34, %v848_v62  ;;  %622 = vmatmul.bf16.gmra.mxu0 %v1800_v56 }
  0xb4   :  { %1622 = vst [vmem:[%s2894_s5 + $0x10] sm:$0xff] %v1558_v1  ;;  %v1266_v5 = vmul.f32 %v2381_v24, %v673_v2  ;;  %711 = vmatmul.bf16.gmra.mxu1 %v1804_v60  ;;  %800 = vmatmul.bf16.gmra.mxu2 %v1800_v56  ;;  %v1437_v1 = vunpack.c.h.bf16 %v1697_v43 }
  0xb5   :  { %v1335_v7 = vadd.f32 %v2392_v39, %v1265_v3  ;;  %889 = vmatmul.bf16.gmra.mxu3 %v1804_v60  ;;  %v1698_v60 = vld [vmem:[%s2893_s4 + $0x58] sm:$0xff] }
  0xb6   :  { %v1336_v8 = vadd.f32 %v2386_v29, %v1266_v5  ;;  %v1438_v3 = vunpack.c.l.bf16 %v1698_v60  ;;  %v2004_v5 = vld [vmem:[%s2889_s0 + $0xb4] sm:$0xf0]  ;;  %v1439_v25 = vunpack.c.h.bf16 %v1698_v60 }
  0xb7   :  { %v1495_v9 = vadd.f32 %v1431_v4, %v1335_v7  ;;  %v761_v10 = vpop.f32.mrf.mxu2  ;;  %v1815_v4 = vld [vmem:[%s2889_s0 + $0xb0] sm:$0xf]  ;;  %v2003_v7 = vld [vmem:[%s2889_s0 + $0xb4] sm:$0xf] }
  0xb8   :  { %v1496_v11 = vadd.f32 %v1432_v6, %v1336_v8  ;;  %v850_v12 = vpop.f32.mrf.mxu3  ;;  %v585_v13 = vpop.f32.mrf.mxu0  ;;  %v1817_v8 = vld [vmem:[%s2889_s0 + $0xb8] sm:$0xf0] }
  0xb9   :  { %v1559_v14 = vmax.f32 %v1495_v9, 0.0  ;;  %v851_v15 = vadd.f32 %v850_v12, %v761_v10  ;;  %v674_v17 = vpop.f32.mrf.mxu1  ;;  %v1816_v12 = vor.u32 %v2004_v5, %v1815_v4  ;;  %v1820_v16 = vor.u32 %v2003_v7, %v1817_v8 }
  0xba   :  { %v1560_v18 = vmax.f32 %v1496_v11, 0.0  ;;  %v675_v19 = vadd.f32 %v674_v17, %v585_v13 }
  0xbb   :  { %1623 = vst [vmem:[%s2894_s5 + $0x18] sm:$0xff] %v1559_v14  ;;  %v1267_v20 = vmul.f32 %v2390_v34, %v851_v15 }
  0xbc   :  { %1624 = vst [vmem:[%s2894_s5 + $0x20] sm:$0xff] %v1560_v18  ;;  %v1268_v22 = vmul.f32 %v2381_v24, %v675_v19  ;;  %v1699_v19 = vld [vmem:[%s2893_s4 + $0x68] sm:$0xff] }
  0xbd   :  { %v1337_v27 = vadd.f32 %v2392_v39, %v1267_v20 }
  0xbe   :  { %v1338_v31 = vadd.f32 %v2386_v29, %v1268_v22 }
  0xbf   :  { %v1497_v32 = vadd.f32 %v1433_v21, %v1337_v27  ;;  %v763_v33 = vpop.f32.mrf.mxu2  ;;  %v1440_v27 = vunpack.c.l.bf16 %v1699_v19 }
  0xc0   :  { %v1498_v36 = vadd.f32 %v1434_v23, %v1338_v31  ;;  %v852_v37 = vpop.f32.mrf.mxu3  ;;  %v588_v38 = vpop.f32.mrf.mxu0 }
  0xc1   :  { %v1561_v41 = vmax.f32 %v1497_v32, 0.0  ;;  %v853_v42 = vadd.f32 %v852_v37, %v763_v33  ;;  %v677_v44 = vpop.f32.mrf.mxu1 }
  0xc2   :  { %v1562_v45 = vmax.f32 %v1498_v36, 0.0  ;;  %v678_v46 = vadd.f32 %v677_v44, %v588_v38 }
  0xc3   :  { %1625 = vst [vmem:[%s2894_s5 + $0x28] sm:$0xff] %v1561_v41  ;;  %v1269_v47 = vmul.f32 %v2390_v34, %v853_v42  ;;  %627 = vmatmul.bf16.gmra.mxu0 %v1808_v35 }
  0xc4   :  { %1626 = vst [vmem:[%s2894_s5 + $0x30] sm:$0xff] %v1562_v45  ;;  %v1270_v49 = vmul.f32 %v2381_v24, %v678_v46  ;;  %716 = vmatmul.bf16.gmra.mxu1 %v1812_v40  ;;  %805 = vmatmul.bf16.gmra.mxu2 %v1808_v35  ;;  %v1441_v45 = vunpack.c.h.bf16 %v1699_v19 }
  0xc5   :  { %v1339_v51 = vadd.f32 %v2392_v39, %v1269_v47  ;;  %894 = vmatmul.bf16.gmra.mxu3 %v1812_v40  ;;  %v1700_v40 = vld [vmem:[%s2893_s4 + $0x78] sm:$0xff] }
  0xc6   :  { %v1340_v52 = vadd.f32 %v2386_v29, %v1270_v49  ;;  %v1442_v47 = vunpack.c.l.bf16 %v1700_v40  ;;  %v2006_v49 = vld [vmem:[%s2889_s0 + $0xc4] sm:$0xf0]  ;;  %v1443_v4 = vunpack.c.h.bf16 %v1700_v40 }
  0xc7   :  { %v1499_v53 = vadd.f32 %v1435_v48, %v1339_v51  ;;  %v766_v54 = vpop.f32.mrf.mxu2  ;;  %v1823_v48 = vld [vmem:[%s2889_s0 + $0xc0] sm:$0xf]  ;;  %v2005_v51 = vld [vmem:[%s2889_s0 + $0xc4] sm:$0xf] }
  0xc8   :  { %v1500_v55 = vadd.f32 %v1436_v50, %v1340_v52  ;;  %v855_v56 = vpop.f32.mrf.mxu3  ;;  %v590_v57 = vpop.f32.mrf.mxu0  ;;  %v1825_v52 = vld [vmem:[%s2889_s0 + $0xc8] sm:$0xf0] }
  0xc9   :  { %v1563_v58 = vmax.f32 %v1499_v53, 0.0  ;;  %v856_v59 = vadd.f32 %v855_v56, %v766_v54  ;;  %v679_v61 = vpop.f32.mrf.mxu1  ;;  %v1824_v56 = vor.u32 %v2006_v49, %v1823_v48  ;;  %v1828_v60 = vor.u32 %v2005_v51, %v1825_v52 }
  0xca   :  { %v1564_v62 = vmax.f32 %v1500_v55, 0.0  ;;  %v680_v63 = vadd.f32 %v679_v61, %v590_v57 }
  0xcb   :  { %1627 = vst [vmem:[%s2894_s5 + $0x38] sm:$0xff] %v1563_v58  ;;  %v1271_v0 = vmul.f32 %v2390_v34, %v856_v59 }
  0xcc   :  { %1628 = vst [vmem:[%s2894_s5 + $0x40] sm:$0xff] %v1564_v62  ;;  %v1272_v2 = vmul.f32 %v2381_v24, %v680_v63  ;;  %v1701_v63 = vld [vmem:[%s2893_s4 + $0x88] sm:$0xff] }
  0xcd   :  { %v1341_v6 = vadd.f32 %v2392_v39, %v1271_v0 }
  0xce   :  { %v1342_v9 = vadd.f32 %v2386_v29, %v1272_v2 }
  0xcf   :  { %v1501_v10 = vadd.f32 %v1437_v1, %v1341_v6  ;;  %v768_v11 = vpop.f32.mrf.mxu2  ;;  %v1444_v6 = vunpack.c.l.bf16 %v1701_v63 }
  0xd0   :  { %v1502_v13 = vadd.f32 %v1438_v3, %v1342_v9  ;;  %v857_v14 = vpop.f32.mrf.mxu3  ;;  %v593_v15 = vpop.f32.mrf.mxu0 }
  0xd1   :  { %v1565_v17 = vmax.f32 %v1501_v10, 0.0  ;;  %v858_v18 = vadd.f32 %v857_v14, %v768_v11  ;;  %v682_v20 = vpop.f32.mrf.mxu1 }
  0xd2   :  { %v1566_v21 = vmax.f32 %v1502_v13, 0.0  ;;  %v683_v22 = vadd.f32 %v682_v20, %v593_v15 }
  0xd3   :  { %1629 = vst [vmem:[%s2894_s5 + $0x48] sm:$0xff] %v1565_v17  ;;  %v1273_v23 = vmul.f32 %v2390_v34, %v858_v18  ;;  %632 = vmatmul.bf16.gmra.mxu0 %v1816_v12 }
  0xd4   :  { %1630 = vst [vmem:[%s2894_s5 + $0x50] sm:$0xff] %v1566_v21  ;;  %v1274_v26 = vmul.f32 %v2381_v24, %v683_v22  ;;  %721 = vmatmul.bf16.gmra.mxu1 %v1820_v16  ;;  %810 = vmatmul.bf16.gmra.mxu2 %v1816_v12  ;;  %v1445_v21 = vunpack.c.h.bf16 %v1701_v63 }
  0xd5   :  { %v1343_v28 = vadd.f32 %v2392_v39, %v1273_v23  ;;  %899 = vmatmul.bf16.gmra.mxu3 %v1820_v16  ;;  %v1702_v16 = vld [vmem:[%s2893_s4 + $0x98] sm:$0xff] }
  0xd6   :  { %v1344_v30 = vadd.f32 %v2386_v29, %v1274_v26  ;;  %v1446_v23 = vunpack.c.l.bf16 %v1702_v16  ;;  %v2008_v26 = vld [vmem:[%s2889_s0 + $0xd4] sm:$0xf0]  ;;  %v1447_v48 = vunpack.c.h.bf16 %v1702_v16 }
  0xd7   :  { %v1503_v31 = vadd.f32 %v1439_v25, %v1343_v28  ;;  %v771_v32 = vpop.f32.mrf.mxu2  ;;  %v1831_v25 = vld [vmem:[%s2889_s0 + $0xd0] sm:$0xf]  ;;  %v2007_v28 = vld [vmem:[%s2889_s0 + $0xd4] sm:$0xf] }
  0xd8   :  { %v1504_v33 = vadd.f32 %v1440_v27, %v1344_v30  ;;  %v860_v35 = vpop.f32.mrf.mxu3  ;;  %v595_v36 = vpop.f32.mrf.mxu0  ;;  %v1833_v30 = vld [vmem:[%s2889_s0 + $0xd8] sm:$0xf0] }
  0xd9   :  { %v1567_v37 = vmax.f32 %v1503_v31, 0.0  ;;  %v861_v38 = vadd.f32 %v860_v35, %v771_v32  ;;  %v684_v41 = vpop.f32.mrf.mxu1  ;;  %v1832_v35 = vor.u32 %v2008_v26, %v1831_v25  ;;  %v1836_v40 = vor.u32 %v2007_v28, %v1833_v30 }
  0xda   :  { %v1568_v42 = vmax.f32 %v1504_v33, 0.0  ;;  %v685_v43 = vadd.f32 %v684_v41, %v595_v36 }
  0xdb   :  { %1631 = vst [vmem:[%s2894_s5 + $0x58] sm:$0xff] %v1567_v37  ;;  %v1275_v44 = vmul.f32 %v2390_v34, %v861_v38 }
  0xdc   :  { %1632 = vst [vmem:[%s2894_s5 + $0x60] sm:$0xff] %v1568_v42  ;;  %v1276_v46 = vmul.f32 %v2381_v24, %v685_v43  ;;  %v1703_v43 = vld [vmem:[%s2893_s4 + $0xa8] sm:$0xff] }
  0xdd   :  { %v1345_v50 = vadd.f32 %v2392_v39, %v1275_v44 }
  0xde   :  { %v1346_v53 = vadd.f32 %v2386_v29, %v1276_v46 }
  0xdf   :  { %v1505_v54 = vadd.f32 %v1441_v45, %v1345_v50  ;;  %v773_v55 = vpop.f32.mrf.mxu2  ;;  %v1448_v50 = vunpack.c.l.bf16 %v1703_v43 }
  0xe0   :  { %v1506_v57 = vadd.f32 %v1442_v47, %v1346_v53  ;;  %v862_v58 = vpop.f32.mrf.mxu3  ;;  %v598_v59 = vpop.f32.mrf.mxu0 }
  0xe1   :  { %v1569_v61 = vmax.f32 %v1505_v54, 0.0  ;;  %v863_v62 = vadd.f32 %v862_v58, %v773_v55  ;;  %v687_v0 = vpop.f32.mrf.mxu1 }
  0xe2   :  { %v1570_v1 = vmax.f32 %v1506_v57, 0.0  ;;  %v688_v2 = vadd.f32 %v687_v0, %v598_v59 }
  0xe3   :  { %1633 = vst [vmem:[%s2894_s5 + $0x68] sm:$0xff] %v1569_v61  ;;  %v1277_v3 = vmul.f32 %v2390_v34, %v863_v62  ;;  %637 = vmatmul.bf16.gmra.mxu0 %v1824_v56 }
  0xe4   :  { %1634 = vst [vmem:[%s2894_s5 + $0x70] sm:$0xff] %v1570_v1  ;;  %v1278_v5 = vmul.f32 %v2381_v24, %v688_v2  ;;  %726 = vmatmul.bf16.gmra.mxu1 %v1828_v60  ;;  %815 = vmatmul.bf16.gmra.mxu2 %v1824_v56  ;;  %v1449_v1 = vunpack.c.h.bf16 %v1703_v43 }
  0xe5   :  { %v1347_v7 = vadd.f32 %v2392_v39, %v1277_v3  ;;  %904 = vmatmul.bf16.gmra.mxu3 %v1828_v60  ;;  %v1704_v60 = vld [vmem:[%s2893_s4 + $0xb8] sm:$0xff] }
  0xe6   :  { %v1348_v8 = vadd.f32 %v2386_v29, %v1278_v5  ;;  %v1450_v3 = vunpack.c.l.bf16 %v1704_v60  ;;  %v2010_v5 = vld [vmem:[%s2889_s0 + $0xe4] sm:$0xf0]  ;;  %v1451_v25 = vunpack.c.h.bf16 %v1704_v60 }
  0xe7   :  { %v1507_v9 = vadd.f32 %v1443_v4, %v1347_v7  ;;  %v776_v10 = vpop.f32.mrf.mxu2  ;;  %v1839_v4 = vld [vmem:[%s2889_s0 + $0xe0] sm:$0xf]  ;;  %v2009_v7 = vld [vmem:[%s2889_s0 + $0xe4] sm:$0xf] }
  0xe8   :  { %v1508_v11 = vadd.f32 %v1444_v6, %v1348_v8  ;;  %v865_v12 = vpop.f32.mrf.mxu3  ;;  %v600_v13 = vpop.f32.mrf.mxu0  ;;  %v1841_v8 = vld [vmem:[%s2889_s0 + $0xe8] sm:$0xf0] }
  0xe9   :  { %v1571_v14 = vmax.f32 %v1507_v9, 0.0  ;;  %v866_v15 = vadd.f32 %v865_v12, %v776_v10  ;;  %v689_v17 = vpop.f32.mrf.mxu1  ;;  %v1840_v12 = vor.u32 %v2010_v5, %v1839_v4  ;;  %v1844_v16 = vor.u32 %v2009_v7, %v1841_v8 }
  0xea   :  { %v1572_v18 = vmax.f32 %v1508_v11, 0.0  ;;  %v690_v19 = vadd.f32 %v689_v17, %v600_v13 }
  0xeb   :  { %1635 = vst [vmem:[%s2894_s5 + $0x78] sm:$0xff] %v1571_v14  ;;  %v1279_v20 = vmul.f32 %v2390_v34, %v866_v15 }
  0xec   :  { %1636 = vst [vmem:[%s2894_s5 + $0x80] sm:$0xff] %v1572_v18  ;;  %v1280_v22 = vmul.f32 %v2381_v24, %v690_v19  ;;  %v1705_v19 = vld [vmem:[%s2893_s4 + $0xc8] sm:$0xff] }
  0xed   :  { %v1349_v27 = vadd.f32 %v2392_v39, %v1279_v20 }
  0xee   :  { %v1350_v31 = vadd.f32 %v2386_v29, %v1280_v22 }
  0xef   :  { %v1509_v32 = vadd.f32 %v1445_v21, %v1349_v27  ;;  %v778_v33 = vpop.f32.mrf.mxu2  ;;  %v1452_v27 = vunpack.c.l.bf16 %v1705_v19 }
  0xf0   :  { %v1510_v36 = vadd.f32 %v1446_v23, %v1350_v31  ;;  %v867_v37 = vpop.f32.mrf.mxu3  ;;  %v603_v38 = vpop.f32.mrf.mxu0 }
  0xf1   :  { %v1573_v41 = vmax.f32 %v1509_v32, 0.0  ;;  %v868_v42 = vadd.f32 %v867_v37, %v778_v33  ;;  %v692_v44 = vpop.f32.mrf.mxu1 }
  0xf2   :  { %v1574_v45 = vmax.f32 %v1510_v36, 0.0  ;;  %v693_v46 = vadd.f32 %v692_v44, %v603_v38 }
  0xf3   :  { %1637 = vst [vmem:[%s2894_s5 + $0x88] sm:$0xff] %v1573_v41  ;;  %v1281_v47 = vmul.f32 %v2390_v34, %v868_v42  ;;  %642 = vmatmul.bf16.gmra.mxu0 %v1832_v35 }
  0xf4   :  { %1638 = vst [vmem:[%s2894_s5 + $0x90] sm:$0xff] %v1574_v45  ;;  %v1282_v49 = vmul.f32 %v2381_v24, %v693_v46  ;;  %731 = vmatmul.bf16.gmra.mxu1 %v1836_v40  ;;  %820 = vmatmul.bf16.gmra.mxu2 %v1832_v35  ;;  %v1453_v45 = vunpack.c.h.bf16 %v1705_v19 }
  0xf5   :  { %v1351_v51 = vadd.f32 %v2392_v39, %v1281_v47  ;;  %909 = vmatmul.bf16.gmra.mxu3 %v1836_v40  ;;  %v1706_v40 = vld [vmem:[%s2893_s4 + $0xd8] sm:$0xff] }
  0xf6   :  { %v1352_v52 = vadd.f32 %v2386_v29, %v1282_v49  ;;  %v1454_v47 = vunpack.c.l.bf16 %v1706_v40  ;;  %v2012_v49 = vld [vmem:[%s2889_s0 + $0xf4] sm:$0xf0]  ;;  %v1455_v4 = vunpack.c.h.bf16 %v1706_v40 }
  0xf7   :  { %v1511_v53 = vadd.f32 %v1447_v48, %v1351_v51  ;;  %v781_v54 = vpop.f32.mrf.mxu2  ;;  %v1847_v48 = vld [vmem:[%s2889_s0 + $0xf0] sm:$0xf]  ;;  %v2011_v51 = vld [vmem:[%s2889_s0 + $0xf4] sm:$0xf] }
  0xf8   :  { %v1512_v55 = vadd.f32 %v1448_v50, %v1352_v52  ;;  %v870_v56 = vpop.f32.mrf.mxu3  ;;  %v605_v57 = vpop.f32.mrf.mxu0  ;;  %v1849_v52 = vld [vmem:[%s2889_s0 + $0xf8] sm:$0xf0] }
  0xf9   :  { %v1575_v58 = vmax.f32 %v1511_v53, 0.0  ;;  %v871_v59 = vadd.f32 %v870_v56, %v781_v54  ;;  %v694_v61 = vpop.f32.mrf.mxu1  ;;  %v1848_v56 = vor.u32 %v2012_v49, %v1847_v48  ;;  %v1852_v60 = vor.u32 %v2011_v51, %v1849_v52 }
  0xfa   :  { %v1576_v62 = vmax.f32 %v1512_v55, 0.0  ;;  %v695_v63 = vadd.f32 %v694_v61, %v605_v57 }
  0xfb   :  { %1639 = vst [vmem:[%s2894_s5 + $0x98] sm:$0xff] %v1575_v58  ;;  %v1283_v0 = vmul.f32 %v2390_v34, %v871_v59 }
  0xfc   :  { %1640 = vst [vmem:[%s2894_s5 + $0xa0] sm:$0xff] %v1576_v62  ;;  %v1284_v2 = vmul.f32 %v2381_v24, %v695_v63  ;;  %v1707_v63 = vld [vmem:[%s2893_s4 + $0xe8] sm:$0xff] }
  0xfd   :  { %v1353_v6 = vadd.f32 %v2392_v39, %v1283_v0 }
  0xfe   :  { %v1354_v9 = vadd.f32 %v2386_v29, %v1284_v2 }
  0xff   :  { %v1513_v10 = vadd.f32 %v1449_v1, %v1353_v6  ;;  %v783_v11 = vpop.f32.mrf.mxu2  ;;  %v1456_v6 = vunpack.c.l.bf16 %v1707_v63 }
 0x100   :  { %v1514_v13 = vadd.f32 %v1450_v3, %v1354_v9  ;;  %v872_v14 = vpop.f32.mrf.mxu3  ;;  %v608_v15 = vpop.f32.mrf.mxu0 }
 0x101   :  { %v1577_v17 = vmax.f32 %v1513_v10, 0.0  ;;  %v873_v18 = vadd.f32 %v872_v14, %v783_v11  ;;  %v697_v20 = vpop.f32.mrf.mxu1 }
 0x102   :  { %v1578_v21 = vmax.f32 %v1514_v13, 0.0  ;;  %v698_v22 = vadd.f32 %v697_v20, %v608_v15 }
 0x103   :  { %1641 = vst [vmem:[%s2894_s5 + $0xa8] sm:$0xff] %v1577_v17  ;;  %v1285_v23 = vmul.f32 %v2390_v34, %v873_v18  ;;  %647 = vmatmul.bf16.gmra.mxu0 %v1840_v12 }
 0x104   :  { %1642 = vst [vmem:[%s2894_s5 + $0xb0] sm:$0xff] %v1578_v21  ;;  %v1286_v26 = vmul.f32 %v2381_v24, %v698_v22  ;;  %736 = vmatmul.bf16.gmra.mxu1 %v1844_v16  ;;  %825 = vmatmul.bf16.gmra.mxu2 %v1840_v12  ;;  %v1457_v21 = vunpack.c.h.bf16 %v1707_v63 }
 0x105   :  { %v1355_v28 = vadd.f32 %v2392_v39, %v1285_v23  ;;  %914 = vmatmul.bf16.gmra.mxu3 %v1844_v16  ;;  %v1708_v16 = vld [vmem:[%s2893_s4 + $0xf8] sm:$0xff] }
 0x106   :  { %v1356_v30 = vadd.f32 %v2386_v29, %v1286_v26  ;;  %v1458_v23 = vunpack.c.l.bf16 %v1708_v16 }
 0x107   :  { %v1515_v31 = vadd.f32 %v1451_v25, %v1355_v28  ;;  %v786_v32 = vpop.f32.mrf.mxu2 }
 0x108   :  { %v1516_v33 = vadd.f32 %v1452_v27, %v1356_v30  ;;  %v875_v35 = vpop.f32.mrf.mxu3  ;;  %v610_v36 = vpop.f32.mrf.mxu0 }
 0x109   :  { %v1579_v37 = vmax.f32 %v1515_v31, 0.0  ;;  %v876_v38 = vadd.f32 %v875_v35, %v786_v32  ;;  %v699_v41 = vpop.f32.mrf.mxu1 }
 0x10a   :  { %v1580_v42 = vmax.f32 %v1516_v33, 0.0  ;;  %v700_v43 = vadd.f32 %v699_v41, %v610_v36  ;;  %v1709_v36 = vld [vmem:[%s2893_s4 + $0x108] sm:$0xff] }
 0x10b   :  { %1643 = vst [vmem:[%s2894_s5 + $0xb8] sm:$0xff] %v1579_v37  ;;  %v1287_v44 = vmul.f32 %v2390_v34, %v876_v38 }
 0x10c   :  { %1644 = vst [vmem:[%s2894_s5 + $0xc0] sm:$0xff] %v1580_v42  ;;  %v1288_v46 = vmul.f32 %v2381_v24, %v700_v43  ;;  %v1459_v42 = vunpack.c.h.bf16 %v1708_v16 }
 0x10d   :  { %v1357_v50 = vadd.f32 %v2392_v39, %v1287_v44  ;;  %v1460_v44 = vunpack.c.l.bf16 %v1709_v36 }
 0x10e   :  { %v1358_v53 = vadd.f32 %v2386_v29, %v1288_v46 }
 0x10f   :  { %v1517_v54 = vadd.f32 %v1453_v45, %v1357_v50  ;;  %v788_v55 = vpop.f32.mrf.mxu2 }
 0x110   :  { %v1518_v57 = vadd.f32 %v1454_v47, %v1358_v53  ;;  %v877_v58 = vpop.f32.mrf.mxu3  ;;  %v613_v59 = vpop.f32.mrf.mxu0 }
 0x111   :  { %v1581_v61 = vmax.f32 %v1517_v54, 0.0  ;;  %v878_v62 = vadd.f32 %v877_v58, %v788_v55  ;;  %v702_v0 = vpop.f32.mrf.mxu1  ;;  %v1710_v54 = vld [vmem:[%s2893_s4 + $0x118] sm:$0xff] }
 0x112   :  { %v1582_v1 = vmax.f32 %v1518_v57, 0.0  ;;  %v703_v2 = vadd.f32 %v702_v0, %v613_v59  ;;  %v1461_v59 = vunpack.c.h.bf16 %v1709_v36 }
 0x113   :  { %1645 = vst [vmem:[%s2894_s5 + $0xc8] sm:$0xff] %v1581_v61  ;;  %v1289_v3 = vmul.f32 %v2390_v34, %v878_v62  ;;  %652 = vmatmul.bf16.gmra.mxu0 %v1848_v56  ;;  %v1462_v61 = vunpack.c.l.bf16 %v1710_v54 }
 0x114   :  { %1646 = vst [vmem:[%s2894_s5 + $0xd0] sm:$0xff] %v1582_v1  ;;  %v1290_v5 = vmul.f32 %v2381_v24, %v703_v2  ;;  %741 = vmatmul.bf16.gmra.mxu1 %v1852_v60  ;;  %830 = vmatmul.bf16.gmra.mxu2 %v1848_v56 }
 0x115   :  { %v1359_v7 = vadd.f32 %v2392_v39, %v1289_v3  ;;  %919 = vmatmul.bf16.gmra.mxu3 %v1852_v60 }
 0x116   :  { %v1360_v8 = vadd.f32 %v2386_v29, %v1290_v5 }
 0x117   :  { %v1519_v9 = vadd.f32 %v1455_v4, %v1359_v7  ;;  %v791_v10 = vpop.f32.mrf.mxu2  ;;  %v1711_v7 = vld [vmem:[%s2893_s4 + $0x128] sm:$0xff] }
 0x118   :  { %v1520_v11 = vadd.f32 %v1456_v6, %v1360_v8  ;;  %v880_v12 = vpop.f32.mrf.mxu3  ;;  %v615_v13 = vpop.f32.mrf.mxu0 }
 0x119   :  { %v1583_v14 = vmax.f32 %v1519_v9, 0.0  ;;  %v881_v15 = vadd.f32 %v880_v12, %v791_v10  ;;  %v704_v17 = vpop.f32.mrf.mxu1  ;;  %v1463_v12 = vunpack.c.h.bf16 %v1710_v54 }
 0x11a   :  { %v1584_v18 = vmax.f32 %v1520_v11, 0.0  ;;  %v705_v19 = vadd.f32 %v704_v17, %v615_v13 }
 0x11b   :  { %1647 = vst [vmem:[%s2894_s5 + $0xd8] sm:$0xff] %v1583_v14  ;;  %v1291_v20 = vmul.f32 %v2390_v34, %v881_v15  ;;  %v1464_v14 = vunpack.c.l.bf16 %v1711_v7 }
 0x11c   :  { %1648 = vst [vmem:[%s2894_s5 + $0xe0] sm:$0xff] %v1584_v18  ;;  %v1292_v22 = vmul.f32 %v2381_v24, %v705_v19 }
 0x11d   :  { %v1361_v25 = vadd.f32 %v2392_v39, %v1291_v20 }
 0x11e   :  { %v1362_v26 = vadd.f32 %v2386_v29, %v1292_v22 }
 0x11f   :  { %v1521_v27 = vadd.f32 %v1457_v21, %v1361_v25  ;;  %v793_v28 = vpop.f32.mrf.mxu2  ;;  %v1712_v25 = vld [vmem:[%s2893_s4 + $0x138] sm:$0xff] }
 0x120   :  { %v1522_v30 = vadd.f32 %v1458_v23, %v1362_v26  ;;  %v882_v31 = vpop.f32.mrf.mxu3  ;;  %v618_v32 = vpop.f32.mrf.mxu0 }
 0x121   :  { %v1585_v33 = vmax.f32 %v1521_v27, 0.0  ;;  %v883_v35 = vadd.f32 %v882_v31, %v793_v28  ;;  %v707_v37 = vpop.f32.mrf.mxu1  ;;  %v1465_v31 = vunpack.c.h.bf16 %v1711_v7 }
 0x122   :  { %v1586_v38 = vmax.f32 %v1522_v30, 0.0  ;;  %v708_v40 = vadd.f32 %v707_v37, %v618_v32 }
 0x123   :  { %1649 = vst [vmem:[%s2894_s5 + $0xe8] sm:$0xff] %v1585_v33  ;;  %v1293_v41 = vmul.f32 %v2390_v34, %v883_v35  ;;  %v1466_v33 = vunpack.c.l.bf16 %v1712_v25 }
 0x124   :  { %1650 = vst [vmem:[%s2894_s5 + $0xf0] sm:$0xff] %v1586_v38  ;;  %v1294_v43 = vmul.f32 %v2381_v24, %v708_v40 }
 0x125   :  { %v1363_v45 = vadd.f32 %v2392_v39, %v1293_v41 }
 0x126   :  { %v1364_v46 = vadd.f32 %v2386_v29, %v1294_v43 }
 0x127   :  { %v1523_v47 = vadd.f32 %v1459_v42, %v1363_v45  ;;  %v796_v48 = vpop.f32.mrf.mxu2  ;;  %v1713_v45 = vld [vmem:[%s2893_s4 + $0x148] sm:$0xff] }
 0x128   :  { %v1524_v49 = vadd.f32 %v1460_v44, %v1364_v46  ;;  %v885_v50 = vpop.f32.mrf.mxu3  ;;  %v620_v51 = vpop.f32.mrf.mxu0 }
 0x129   :  { %v1587_v52 = vmax.f32 %v1523_v47, 0.0  ;;  %v886_v53 = vadd.f32 %v885_v50, %v796_v48  ;;  %v709_v55 = vpop.f32.mrf.mxu1  ;;  %v1467_v50 = vunpack.c.h.bf16 %v1712_v25 }
 0x12a   :  { %v1588_v56 = vmax.f32 %v1524_v49, 0.0  ;;  %v710_v57 = vadd.f32 %v709_v55, %v620_v51 }
 0x12b   :  { %1651 = vst [vmem:[%s2894_s5 + $0xf8] sm:$0xff] %v1587_v52  ;;  %v1295_v58 = vmul.f32 %v2390_v34, %v886_v53  ;;  %v1468_v52 = vunpack.c.l.bf16 %v1713_v45 }
 0x12c   :  { %1652 = vst [vmem:[%s2894_s5 + $0x100] sm:$0xff] %v1588_v56  ;;  %v1296_v60 = vmul.f32 %v2381_v24, %v710_v57 }
 0x12d   :  { %v1365_v62 = vadd.f32 %v2392_v39, %v1295_v58 }
 0x12e   :  { %v1366_v63 = vadd.f32 %v2386_v29, %v1296_v60 }
 0x12f   :  { %v1525_v0 = vadd.f32 %v1461_v59, %v1365_v62  ;;  %v798_v1 = vpop.f32.mrf.mxu2  ;;  %v1714_v62 = vld [vmem:[%s2893_s4 + $0x158] sm:$0xff] }
 0x130   :  { %v1526_v2 = vadd.f32 %v1462_v61, %v1366_v63  ;;  %v887_v3 = vpop.f32.mrf.mxu3  ;;  %v623_v4 = vpop.f32.mrf.mxu0 }
 0x131   :  { %v1589_v5 = vmax.f32 %v1525_v0, 0.0  ;;  %v888_v6 = vadd.f32 %v887_v3, %v798_v1  ;;  %v712_v8 = vpop.f32.mrf.mxu1  ;;  %v1469_v3 = vunpack.c.h.bf16 %v1713_v45 }
 0x132   :  { %v1590_v9 = vmax.f32 %v1526_v2, 0.0  ;;  %v713_v10 = vadd.f32 %v712_v8, %v623_v4 }
 0x133   :  { %1653 = vst [vmem:[%s2894_s5 + $0x108] sm:$0xff] %v1589_v5  ;;  %v1297_v11 = vmul.f32 %v2390_v34, %v888_v6  ;;  %v1470_v5 = vunpack.c.l.bf16 %v1714_v62 }
 0x134   :  { %1654 = vst [vmem:[%s2894_s5 + $0x110] sm:$0xff] %v1590_v9  ;;  %v1298_v13 = vmul.f32 %v2381_v24, %v713_v10 }
 0x135   :  { %v1367_v15 = vadd.f32 %v2392_v39, %v1297_v11 }
 0x136   :  { %v1368_v16 = vadd.f32 %v2386_v29, %v1298_v13 }
 0x137   :  { %v1527_v17 = vadd.f32 %v1463_v12, %v1367_v15  ;;  %v801_v18 = vpop.f32.mrf.mxu2  ;;  %v1715_v15 = vld [vmem:[%s2893_s4 + $0x168] sm:$0xff] }
 0x138   :  { %v1528_v19 = vadd.f32 %v1464_v14, %v1368_v16  ;;  %v890_v20 = vpop.f32.mrf.mxu3  ;;  %v625_v21 = vpop.f32.mrf.mxu0 }
 0x139   :  { %v1591_v22 = vmax.f32 %v1527_v17, 0.0  ;;  %v891_v23 = vadd.f32 %v890_v20, %v801_v18  ;;  %v714_v26 = vpop.f32.mrf.mxu1  ;;  %v1471_v20 = vunpack.c.h.bf16 %v1714_v62 }
 0x13a   :  { %v1592_v27 = vmax.f32 %v1528_v19, 0.0  ;;  %v715_v28 = vadd.f32 %v714_v26, %v625_v21 }
 0x13b   :  { %1655 = vst [vmem:[%s2894_s5 + $0x118] sm:$0xff] %v1591_v22  ;;  %v1299_v30 = vmul.f32 %v2390_v34, %v891_v23  ;;  %v1472_v22 = vunpack.c.l.bf16 %v1715_v15 }
 0x13c   :  { %1656 = vst [vmem:[%s2894_s5 + $0x120] sm:$0xff] %v1592_v27  ;;  %v1300_v32 = vmul.f32 %v2381_v24, %v715_v28 }
 0x13d   :  { %v1369_v35 = vadd.f32 %v2392_v39, %v1299_v30 }
 0x13e   :  { %v1370_v36 = vadd.f32 %v2386_v29, %v1300_v32 }
 0x13f   :  { %v1529_v37 = vadd.f32 %v1465_v31, %v1369_v35  ;;  %v803_v38 = vpop.f32.mrf.mxu2  ;;  %v1716_v35 = vld [vmem:[%s2893_s4 + $0x178] sm:$0xff] }
 0x140   :  { %v1530_v40 = vadd.f32 %v1466_v33, %v1370_v36  ;;  %v892_v41 = vpop.f32.mrf.mxu3  ;;  %v628_v42 = vpop.f32.mrf.mxu0 }
 0x141   :  { %v1593_v43 = vmax.f32 %v1529_v37, 0.0  ;;  %v893_v44 = vadd.f32 %v892_v41, %v803_v38  ;;  %v717_v46 = vpop.f32.mrf.mxu1  ;;  %v1473_v41 = vunpack.c.h.bf16 %v1715_v15 }
 0x142   :  { %v1594_v47 = vmax.f32 %v1530_v40, 0.0  ;;  %v718_v48 = vadd.f32 %v717_v46, %v628_v42 }
 0x143   :  { %1657 = vst [vmem:[%s2894_s5 + $0x128] sm:$0xff] %v1593_v43  ;;  %v1301_v49 = vmul.f32 %v2390_v34, %v893_v44  ;;  %v1474_v43 = vunpack.c.l.bf16 %v1716_v35 }
 0x144   :  { %1658 = vst [vmem:[%s2894_s5 + $0x130] sm:$0xff] %v1594_v47  ;;  %v1302_v51 = vmul.f32 %v2381_v24, %v718_v48 }
 0x145   :  { %v1371_v53 = vadd.f32 %v2392_v39, %v1301_v49 }
 0x146   :  { %v1372_v54 = vadd.f32 %v2386_v29, %v1302_v51 }
 0x147   :  { %v1531_v55 = vadd.f32 %v1467_v50, %v1371_v53  ;;  %v806_v56 = vpop.f32.mrf.mxu2  ;;  %v1717_v53 = vld [vmem:[%s2893_s4 + $0x188] sm:$0xff] }
 0x148   :  { %v1532_v57 = vadd.f32 %v1468_v52, %v1372_v54  ;;  %v895_v58 = vpop.f32.mrf.mxu3  ;;  %v630_v59 = vpop.f32.mrf.mxu0 }
 0x149   :  { %v1595_v60 = vmax.f32 %v1531_v55, 0.0  ;;  %v896_v61 = vadd.f32 %v895_v58, %v806_v56  ;;  %v719_v63 = vpop.f32.mrf.mxu1  ;;  %v1475_v58 = vunpack.c.h.bf16 %v1716_v35 }
 0x14a   :  { %v1596_v0 = vmax.f32 %v1532_v57, 0.0  ;;  %v720_v1 = vadd.f32 %v719_v63, %v630_v59 }
 0x14b   :  { %1659 = vst [vmem:[%s2894_s5 + $0x138] sm:$0xff] %v1595_v60  ;;  %v1303_v2 = vmul.f32 %v2390_v34, %v896_v61  ;;  %v1476_v60 = vunpack.c.l.bf16 %v1717_v53 }
 0x14c   :  { %1660 = vst [vmem:[%s2894_s5 + $0x140] sm:$0xff] %v1596_v0  ;;  %v1304_v4 = vmul.f32 %v2381_v24, %v720_v1 }
 0x14d   :  { %v1373_v6 = vadd.f32 %v2392_v39, %v1303_v2 }
 0x14e   :  { %v1374_v7 = vadd.f32 %v2386_v29, %v1304_v4 }
 0x14f   :  { %v1533_v8 = vadd.f32 %v1469_v3, %v1373_v6  ;;  %v808_v9 = vpop.f32.mrf.mxu2  ;;  %v1718_v6 = vld [vmem:[%s2893_s4 + $0x198] sm:$0xff] }
 0x150   :  { %v1534_v10 = vadd.f32 %v1470_v5, %v1374_v7  ;;  %v897_v11 = vpop.f32.mrf.mxu3  ;;  %v633_v12 = vpop.f32.mrf.mxu0 }
 0x151   :  { %v1597_v13 = vmax.f32 %v1533_v8, 0.0  ;;  %v898_v14 = vadd.f32 %v897_v11, %v808_v9  ;;  %v722_v16 = vpop.f32.mrf.mxu1  ;;  %v1477_v11 = vunpack.c.h.bf16 %v1717_v53 }
 0x152   :  { %v1598_v17 = vmax.f32 %v1534_v10, 0.0  ;;  %v723_v18 = vadd.f32 %v722_v16, %v633_v12 }
 0x153   :  { %1661 = vst [vmem:[%s2894_s5 + $0x148] sm:$0xff] %v1597_v13  ;;  %v1305_v19 = vmul.f32 %v2390_v34, %v898_v14  ;;  %v1478_v13 = vunpack.c.l.bf16 %v1718_v6 }
 0x154   :  { %1662 = vst [vmem:[%s2894_s5 + $0x150] sm:$0xff] %v1598_v17  ;;  %v1306_v21 = vmul.f32 %v2381_v24, %v723_v18 }
 0x155   :  { %v1375_v23 = vadd.f32 %v2392_v39, %v1305_v19 }
 0x156   :  { %v1376_v25 = vadd.f32 %v2386_v29, %v1306_v21 }
 0x157   :  { %v1535_v26 = vadd.f32 %v1471_v20, %v1375_v23  ;;  %v811_v27 = vpop.f32.mrf.mxu2  ;;  %v1719_v23 = vld [vmem:[%s2893_s4 + $0x1a8] sm:$0xff] }
 0x158   :  { %v1536_v28 = vadd.f32 %v1472_v22, %v1376_v25  ;;  %v900_v30 = vpop.f32.mrf.mxu3  ;;  %v635_v31 = vpop.f32.mrf.mxu0 }
 0x159   :  { %v1599_v32 = vmax.f32 %v1535_v26, 0.0  ;;  %v901_v33 = vadd.f32 %v900_v30, %v811_v27  ;;  %v724_v36 = vpop.f32.mrf.mxu1  ;;  %v1479_v30 = vunpack.c.h.bf16 %v1718_v6 }
 0x15a   :  { %v1600_v37 = vmax.f32 %v1536_v28, 0.0  ;;  %v725_v38 = vadd.f32 %v724_v36, %v635_v31 }
 0x15b   :  { %1663 = vst [vmem:[%s2894_s5 + $0x158] sm:$0xff] %v1599_v32  ;;  %v1307_v40 = vmul.f32 %v2390_v34, %v901_v33  ;;  %v1480_v32 = vunpack.c.l.bf16 %v1719_v23 }
 0x15c   :  { %1664 = vst [vmem:[%s2894_s5 + $0x160] sm:$0xff] %v1600_v37  ;;  %v1308_v42 = vmul.f32 %v2381_v24, %v725_v38 }
 0x15d   :  { %v1377_v44 = vadd.f32 %v2392_v39, %v1307_v40 }
 0x15e   :  { %v1378_v45 = vadd.f32 %v2386_v29, %v1308_v42 }
 0x15f   :  { %v1537_v46 = vadd.f32 %v1473_v41, %v1377_v44  ;;  %v813_v47 = vpop.f32.mrf.mxu2  ;;  %v1720_v44 = vld [vmem:[%s2893_s4 + $0x1b8] sm:$0xff] }
 0x160   :  { %v1538_v48 = vadd.f32 %v1474_v43, %v1378_v45  ;;  %v902_v49 = vpop.f32.mrf.mxu3  ;;  %v638_v50 = vpop.f32.mrf.mxu0 }
 0x161   :  { %v1601_v51 = vmax.f32 %v1537_v46, 0.0  ;;  %v903_v52 = vadd.f32 %v902_v49, %v813_v47  ;;  %v727_v54 = vpop.f32.mrf.mxu1  ;;  %v1481_v49 = vunpack.c.h.bf16 %v1719_v23 }
 0x162   :  { %v1602_v55 = vmax.f32 %v1538_v48, 0.0  ;;  %v728_v56 = vadd.f32 %v727_v54, %v638_v50 }
 0x163   :  { %1665 = vst [vmem:[%s2894_s5 + $0x168] sm:$0xff] %v1601_v51  ;;  %v1309_v57 = vmul.f32 %v2390_v34, %v903_v52  ;;  %v1482_v51 = vunpack.c.l.bf16 %v1720_v44 }
 0x164   :  { %1666 = vst [vmem:[%s2894_s5 + $0x170] sm:$0xff] %v1602_v55  ;;  %v1310_v59 = vmul.f32 %v2381_v24, %v728_v56 }
 0x165   :  { %v1379_v61 = vadd.f32 %v2392_v39, %v1309_v57 }
 0x166   :  { %v1380_v62 = vadd.f32 %v2386_v29, %v1310_v59 }
 0x167   :  { %v1539_v63 = vadd.f32 %v1475_v58, %v1379_v61  ;;  %v816_v0 = vpop.f32.mrf.mxu2  ;;  %v1721_v61 = vld [vmem:[%s2893_s4 + $0x1c8] sm:$0xff] }
 0x168   :  { %v1540_v1 = vadd.f32 %v1476_v60, %v1380_v62  ;;  %v905_v2 = vpop.f32.mrf.mxu3  ;;  %v640_v3 = vpop.f32.mrf.mxu0 }
 0x169   :  { %v1603_v4 = vmax.f32 %v1539_v63, 0.0  ;;  %v906_v5 = vadd.f32 %v905_v2, %v816_v0  ;;  %v729_v7 = vpop.f32.mrf.mxu1  ;;  %v1483_v2 = vunpack.c.h.bf16 %v1720_v44 }
 0x16a   :  { %v1604_v8 = vmax.f32 %v1540_v1, 0.0  ;;  %v730_v9 = vadd.f32 %v729_v7, %v640_v3 }
 0x16b   :  { %1667 = vst [vmem:[%s2894_s5 + $0x178] sm:$0xff] %v1603_v4  ;;  %v1311_v10 = vmul.f32 %v2390_v34, %v906_v5  ;;  %v1484_v4 = vunpack.c.l.bf16 %v1721_v61 }
 0x16c   :  { %1668 = vst [vmem:[%s2894_s5 + $0x180] sm:$0xff] %v1604_v8  ;;  %v1312_v12 = vmul.f32 %v2381_v24, %v730_v9 }
 0x16d   :  { %v1381_v14 = vadd.f32 %v2392_v39, %v1311_v10 }
 0x16e   :  { %v1382_v15 = vadd.f32 %v2386_v29, %v1312_v12 }
 0x16f   :  { %v1541_v16 = vadd.f32 %v1477_v11, %v1381_v14  ;;  %v818_v17 = vpop.f32.mrf.mxu2  ;;  %v1722_v14 = vld [vmem:[%s2893_s4 + $0x1d8] sm:$0xff] }
 0x170   :  { %v1542_v18 = vadd.f32 %v1478_v13, %v1382_v15  ;;  %v907_v19 = vpop.f32.mrf.mxu3  ;;  %v643_v20 = vpop.f32.mrf.mxu0 }
 0x171   :  { %v1605_v21 = vmax.f32 %v1541_v16, 0.0  ;;  %v908_v22 = vadd.f32 %v907_v19, %v818_v17  ;;  %v732_v25 = vpop.f32.mrf.mxu1  ;;  %v1485_v19 = vunpack.c.h.bf16 %v1721_v61 }
 0x172   :  { %v1606_v26 = vmax.f32 %v1542_v18, 0.0  ;;  %v733_v27 = vadd.f32 %v732_v25, %v643_v20 }
 0x173   :  { %1669 = vst [vmem:[%s2894_s5 + $0x188] sm:$0xff] %v1605_v21  ;;  %v1313_v28 = vmul.f32 %v2390_v34, %v908_v22  ;;  %v1486_v21 = vunpack.c.l.bf16 %v1722_v14 }
 0x174   :  { %1670 = vst [vmem:[%s2894_s5 + $0x190] sm:$0xff] %v1606_v26  ;;  %v1314_v31 = vmul.f32 %v2381_v24, %v733_v27 }
 0x175   :  { %v1383_v33 = vadd.f32 %v2392_v39, %v1313_v28 }
 0x176   :  { %v1384_v35 = vadd.f32 %v2386_v29, %v1314_v31 }
 0x177   :  { %v1543_v36 = vadd.f32 %v1479_v30, %v1383_v33  ;;  %v821_v37 = vpop.f32.mrf.mxu2  ;;  %v1723_v33 = vld [vmem:[%s2893_s4 + $0x1e8] sm:$0xff] }
 0x178   :  { %v1544_v38 = vadd.f32 %v1480_v32, %v1384_v35  ;;  %v910_v40 = vpop.f32.mrf.mxu3  ;;  %v645_v41 = vpop.f32.mrf.mxu0 }
 0x179   :  { %v1607_v42 = vmax.f32 %v1543_v36, 0.0  ;;  %v911_v43 = vadd.f32 %v910_v40, %v821_v37  ;;  %v734_v45 = vpop.f32.mrf.mxu1  ;;  %v1487_v40 = vunpack.c.h.bf16 %v1722_v14 }
 0x17a   :  { %v1608_v46 = vmax.f32 %v1544_v38, 0.0  ;;  %v735_v47 = vadd.f32 %v734_v45, %v645_v41 }
 0x17b   :  { %1671 = vst [vmem:[%s2894_s5 + $0x198] sm:$0xff] %v1607_v42  ;;  %v1315_v48 = vmul.f32 %v2390_v34, %v911_v43  ;;  %v1488_v42 = vunpack.c.l.bf16 %v1723_v33 }
 0x17c   :  { %1672 = vst [vmem:[%s2894_s5 + $0x1a0] sm:$0xff] %v1608_v46  ;;  %v1316_v50 = vmul.f32 %v2381_v24, %v735_v47 }
 0x17d   :  { %v1385_v52 = vadd.f32 %v2392_v39, %v1315_v48 }
 0x17e   :  { %v1386_v53 = vadd.f32 %v2386_v29, %v1316_v50 }
 0x17f   :  { %v1545_v54 = vadd.f32 %v1481_v49, %v1385_v52  ;;  %v823_v55 = vpop.f32.mrf.mxu2  ;;  %v1724_v52 = vld [vmem:[%s2893_s4 + $0x1f8] sm:$0xff] }
 0x180   :  { %v1546_v56 = vadd.f32 %v1482_v51, %v1386_v53  ;;  %v912_v57 = vpop.f32.mrf.mxu3  ;;  %v648_v58 = vpop.f32.mrf.mxu0 }
 0x181   :  { %v1609_v59 = vmax.f32 %v1545_v54, 0.0  ;;  %v913_v60 = vadd.f32 %v912_v57, %v823_v55  ;;  %v737_v62 = vpop.f32.mrf.mxu1  ;;  %v1489_v57 = vunpack.c.h.bf16 %v1723_v33 }
 0x182   :  { %v1610_v63 = vmax.f32 %v1546_v56, 0.0  ;;  %v738_v0 = vadd.f32 %v737_v62, %v648_v58 }
 0x183   :  { %1673 = vst [vmem:[%s2894_s5 + $0x1a8] sm:$0xff] %v1609_v59  ;;  %v1317_v1 = vmul.f32 %v2390_v34, %v913_v60  ;;  %v1490_v59 = vunpack.c.l.bf16 %v1724_v52 }
 0x184   :  { %1674 = vst [vmem:[%s2894_s5 + $0x1b0] sm:$0xff] %v1610_v63  ;;  %v1318_v3 = vmul.f32 %v2381_v24, %v738_v0 }
 0x185   :  { %v1387_v5 = vadd.f32 %v2392_v39, %v1317_v1 }
 0x186   :  { %v1388_v6 = vadd.f32 %v2386_v29, %v1318_v3 }
 0x187   :  { %v1547_v7 = vadd.f32 %v1483_v2, %v1387_v5  ;;  %v826_v8 = vpop.f32.mrf.mxu2 }
 0x188   :  { %v1548_v9 = vadd.f32 %v1484_v4, %v1388_v6  ;;  %v915_v10 = vpop.f32.mrf.mxu3  ;;  %v650_v11 = vpop.f32.mrf.mxu0  ;;  %v1491_v6 = vunpack.c.h.bf16 %v1724_v52 }
 0x189   :  { %v1611_v12 = vmax.f32 %v1547_v7, 0.0  ;;  %v916_v13 = vadd.f32 %v915_v10, %v826_v8  ;;  %v739_v15 = vpop.f32.mrf.mxu1 }
 0x18a   :  { %v1612_v16 = vmax.f32 %v1548_v9, 0.0  ;;  %v740_v17 = vadd.f32 %v739_v15, %v650_v11 }
 0x18b   :  { %1675 = vst [vmem:[%s2894_s5 + $0x1b8] sm:$0xff] %v1611_v12  ;;  %v1319_v18 = vmul.f32 %v2390_v34, %v916_v13 }
 0x18c   :  { %1676 = vst [vmem:[%s2894_s5 + $0x1c0] sm:$0xff] %v1612_v16  ;;  %v1320_v20 = vmul.f32 %v2381_v24, %v740_v17 }
 0x18d   :  { %v1389_v22 = vadd.f32 %v2392_v39, %v1319_v18 }
 0x18e   :  { %v1390_v23 = vadd.f32 %v2386_v29, %v1320_v20 }
 0x18f   :  { %v1549_v25 = vadd.f32 %v1485_v19, %v1389_v22  ;;  %v828_v26 = vpop.f32.mrf.mxu2 }
 0x190   :  { %v1550_v27 = vadd.f32 %v1486_v21, %v1390_v23  ;;  %v917_v28 = vpop.f32.mrf.mxu3  ;;  %v653_v30 = vpop.f32.mrf.mxu0 }
 0x191   :  { %v1613_v31 = vmax.f32 %v1549_v25, 0.0  ;;  %v918_v32 = vadd.f32 %v917_v28, %v828_v26  ;;  %v742_v35 = vpop.f32.mrf.mxu1 }
 0x192   :  { %v1614_v36 = vmax.f32 %v1550_v27, 0.0  ;;  %v743_v37 = vadd.f32 %v742_v35, %v653_v30 }
 0x193   :  { %1677 = vst [vmem:[%s2894_s5 + $0x1c8] sm:$0xff] %v1613_v31  ;;  %v1321_v38 = vmul.f32 %v2390_v34, %v918_v32 }
 0x194   :  { %1678 = vst [vmem:[%s2894_s5 + $0x1d0] sm:$0xff] %v1614_v36  ;;  %v1322_v41 = vmul.f32 %v2381_v24, %v743_v37 }
 0x195   :  { %v1391_v43 = vadd.f32 %v2392_v39, %v1321_v38 }
 0x196   :  { %v1392_v44 = vadd.f32 %v2386_v29, %v1322_v41 }
 0x197   :  { %v1551_v45 = vadd.f32 %v1487_v40, %v1391_v43  ;;  %v831_v46 = vpop.f32.mrf.mxu2 }
 0x198   :  { %v1552_v47 = vadd.f32 %v1488_v42, %v1392_v44  ;;  %v920_v48 = vpop.f32.mrf.mxu3  ;;  %v655_v49 = vpop.f32.mrf.mxu0 }
 0x199   :  { %v1615_v50 = vmax.f32 %v1551_v45, 0.0  ;;  %v921_v51 = vadd.f32 %v920_v48, %v831_v46  ;;  %v744_v53 = vpop.f32.mrf.mxu1 }
 0x19a   :  { %v1616_v54 = vmax.f32 %v1552_v47, 0.0  ;;  %v745_v55 = vadd.f32 %v744_v53, %v655_v49 }
 0x19b   :  { %1679 = vst [vmem:[%s2894_s5 + $0x1d8] sm:$0xff] %v1615_v50  ;;  %v1323_v56 = vmul.f32 %v2390_v34, %v921_v51 }
 0x19c   :  { %1680 = vst [vmem:[%s2894_s5 + $0x1e0] sm:$0xff] %v1616_v54  ;;  %v1324_v58 = vmul.f32 %v2381_v24, %v745_v55 }
 0x19d   :  { %v1393_v60 = vadd.f32 %v2392_v39, %v1323_v56 }
 0x19e   :  { %v1394_v61 = vadd.f32 %v2386_v29, %v1324_v58 }
 0x19f   :  { %v1553_v62 = vadd.f32 %v1489_v57, %v1393_v60  ;;  %v833_v63 = vpop.f32.mrf.mxu2 }
 0x1a0   :  { %v1554_v0 = vadd.f32 %v1490_v59, %v1394_v61  ;;  %v922_v1 = vpop.f32.mrf.mxu3 }
 0x1a1   :  { %v1617_v2 = vmax.f32 %v1553_v62, 0.0  ;;  %v923_v3 = vadd.f32 %v922_v1, %v833_v63 }
 0x1a2   :  { %v1618_v4 = vmax.f32 %v1554_v0, 0.0 }
 0x1a3   :  { %1681 = vst [vmem:[%s2894_s5 + $0x1e8] sm:$0xff] %v1617_v2  ;;  %v1325_v5 = vmul.f32 %v2390_v34, %v923_v3 }
 0x1a4   :  { %1682 = vst [vmem:[%s2894_s5 + $0x1f0] sm:$0xff] %v1618_v4 }
 0x1a5   :  { %v1395_v24 = vadd.f32 %v2392_v39, %v1325_v5 }
 0x1a7   :  { %v1555_v29 = vadd.f32 %v1491_v6, %v1395_v24 }
 0x1a9   :  { %v1619_v7 = vmax.f32 %v1555_v29, 0.0 }
 0x1ab   :  { %1683 = vst [vmem:[%s2894_s5 + $0x1f8] sm:$0xff] %v1619_v7 }

</bundles_post_ra>
